<compile_context>
chip_gen: v6e
topology: v6e:2x2x1
jax: 0.10.0
libtpu: 0.0.40
codegen_flags: <defaults>
</compile_context>

<pallas_src>
import functools
import math

import jax
import jax.numpy as jnp
from jax.experimental import pallas as pl
from jax.experimental.pallas import tpu as pltpu

EPS = 1e-5  # PyTorch GroupNorm default


# ---------------------------------------------------------------------------
# In-kernel helpers (operate on f32 values resident in VMEM)
# ---------------------------------------------------------------------------
def _silu(x):
    return x * jax.nn.sigmoid(x)


def _im2col_same(x, K):
    """x: (C, L) -> (K*C, L) column slab for a stride-1 'same' conv (odd K)."""
    C, L = x.shape
    pad = K // 2
    if pad:
        z = jnp.zeros((C, pad), x.dtype)
        xp = jnp.concatenate([z, x, z], axis=1)
    else:
        xp = x
    if K == 1:
        return xp
    return jnp.concatenate([xp[:, k:k + L] for k in range(K)], axis=0)


def _conv_same(x, w_flat, b, K):
    """'same' Conv1d as one MXU matmul. w_flat: (C_out, K*C_in), b: (C_out, 1)."""
    return jnp.dot(w_flat, _im2col_same(x, K), preferred_element_type=jnp.float32) + b


def _decimate(y, s):
    """y[:, ::s] via a 0/1 selection matmul (avoids strided lane gathers)."""
    _, L = y.shape
    Lo = (L - 1) // s + 1
    rows = jax.lax.broadcasted_iota(jnp.int32, (L, Lo), 0)
    cols = jax.lax.broadcasted_iota(jnp.int32, (L, Lo), 1)
    sel = (rows == cols * s).astype(jnp.float32)
    return jnp.dot(y, sel, preferred_element_type=jnp.float32)


def _upsample_nearest(x, r):
    """nn.Upsample(mode='nearest', scale_factor=r) via a 0/1 selection matmul."""
    _, L = x.shape
    Lo = L * r
    rows = jax.lax.broadcasted_iota(jnp.int32, (L, Lo), 0)
    cols = jax.lax.broadcasted_iota(jnp.int32, (L, Lo), 1)
    sel = ((cols >= rows * r) & (cols < (rows + 1) * r)).astype(jnp.float32)
    return jnp.dot(x, sel, preferred_element_type=jnp.float32)


def _group_norm(x, gamma, beta, groups, eps):
    C, L = x.shape
    if groups == C:
        mean = jnp.mean(x, axis=1, keepdims=True)
        var = jnp.mean(jnp.square(x - mean), axis=1, keepdims=True)
        xn = (x - mean) * jax.lax.rsqrt(var + eps)
    else:
        xg = x.reshape(groups, C // groups, L)
        mean = jnp.mean(xg, axis=(1, 2), keepdims=True)
        var = jnp.mean(jnp.square(xg - mean), axis=(1, 2), keepdims=True)
        xn = ((xg - mean) * jax.lax.rsqrt(var + eps)).reshape(C, L)
    return xn * gamma + beta


def _convblock_core(sources, w1_list, b1, g1, be1, scale, shift,
                    w2, b2, g2, be2, res, *, K, groups):
    """ConvBlock1D body: conv1(concat sources) -> GN -> SiLU -> fused FiLM -> SiLU ->
    conv2 -> GN -> SiLU -> + res. The concat is avoided via per-source matmuls."""
    acc = None
    for src, w in zip(sources, w1_list):
        d = jnp.dot(w, _im2col_same(src, K), preferred_element_type=jnp.float32)
        acc = d if acc is None else acc + d
    h = acc + b1
    h = _group_norm(h, g1, be1, groups, EPS)
    h = _silu(h)
    h = h * scale + shift            # FiLM(time) composed with FiLM(zsem)
    h = _silu(h)
    h = _conv_same(h, w2, b2, K)
    h = _group_norm(h, g2, be2, groups, EPS)
    h = _silu(h)
    return h + res


# ---------------------------------------------------------------------------
# Fused Pallas kernels (one grid step = one batch element)
# ---------------------------------------------------------------------------
def _encoder_kernel(x_ref, tc_ref, w1x_ref, w1t_ref, b1_ref, g1_ref, be1_ref,
                    sc_ref, sh_ref, w2_ref, b2_ref, g2_ref, be2_ref,
                    wp_ref, bp_ref, skip_ref, xd_ref, *, K, groups, ratio):
    """EncoderBlock1D: ConvBlock + (possibly strided) pool conv, two outputs."""
    x = x_ref[...].astype(jnp.float32)
    tc = tc_ref[...].astype(jnp.float32)
    skip = _convblock_core(
        [x, tc], [w1x_ref[...], w1t_ref[...]],
        b1_ref[...], g1_ref[...], be1_ref[...],
        sc_ref[...], sh_ref[...],
        w2_ref[...], b2_ref[...], g2_ref[...], be2_ref[...],
        res=x, K=K, groups=groups)
    skip_ref[...] = skip.astype(skip_ref.dtype)
    pooled = _conv_same(skip, wp_ref[...], bp_ref[...], K)
    if ratio > 1:
        pooled = _decimate(pooled, ratio)     # strided conv == same conv + decimation (odd K)
    xd_ref[...] = pooled.astype(xd_ref.dtype)


def _middle_kernel(x_ref, tc_ref, w1x_ref, w1t_ref, b1_ref, g1_ref, be1_ref,
                   sc_ref, sh_ref, w2_ref, b2_ref, g2_ref, be2_ref, o_ref,
                   *, K, groups):
    """MiddleBlock1D: a single ConvBlock (self-attn is Identity for this config)."""
    x = x_ref[...].astype(jnp.float32)
    tc = tc_ref[...].astype(jnp.float32)
    out = _convblock_core(
        [x, tc], [w1x_ref[...], w1t_ref[...]],
        b1_ref[...], g1_ref[...], be1_ref[...],
        sc_ref[...], sh_ref[...],
        w2_ref[...], b2_ref[...], g2_ref[...], be2_ref[...],
        res=x, K=K, groups=groups)
    o_ref[...] = out.astype(o_ref.dtype)


def _decoder_kernel(x_ref, skip_ref, tc_ref, *rest, K, groups, ratio, has_upconv):
    """DecoderBlock1D: [nearest upsample + up conv] + ConvBlock (with skip & to_out)."""
    if has_upconv:
        (wu_ref, bu_ref, w1h_ref, w1s_ref, w1t_ref, b1_ref, g1_ref, be1_ref,
         sc_ref, sh_ref, w2_ref, b2_ref, g2_ref, be2_ref, wr_ref, br_ref,
         o_ref) = rest
    else:
        (w1h_ref, w1s_ref, w1t_ref, b1_ref, g1_ref, be1_ref,
         sc_ref, sh_ref, w2_ref, b2_ref, g2_ref, be2_ref, wr_ref, br_ref,
         o_ref) = rest
    x = x_ref[...].astype(jnp.float32)
    if ratio > 1:
        x = _upsample_nearest(x, ratio)
    if has_upconv:
        h = _conv_same(x, wu_ref[...], bu_ref[...], 3)   # up conv has kernel_size=3
    else:
        h = x                                            # nn.Identity
    skip = skip_ref[...].astype(jnp.float32)
    tc = tc_ref[...].astype(jnp.float32)
    # to_out: 1x1 conv applied to the (post-up, pre-concat) residual path
    res = jnp.dot(wr_ref[...], h, preferred_element_type=jnp.float32) + br_ref[...]
    out = _convblock_core(
        [h, skip, tc], [w1h_ref[...], w1s_ref[...], w1t_ref[...]],
        b1_ref[...], g1_ref[...], be1_ref[...],
        sc_ref[...], sh_ref[...],
        w2_ref[...], b2_ref[...], g2_ref[...], be2_ref[...],
        res=res, K=K, groups=groups)
    o_ref[...] = out.astype(o_ref.dtype)


def _cond_kernel(x_ref, w_ref, b_ref, o_ref, *, K, ratio):
    """cond_emb_time level: Conv1d (optionally strided) + SiLU."""
    x = x_ref[...].astype(jnp.float32)
    y = _conv_same(x, w_ref[...], b_ref[...], K)
    if ratio > 1:
        y = _decimate(y, ratio)          # decimation commutes with the elementwise SiLU
    y = _silu(y)
    o_ref[...] = y.astype(o_ref.dtype)


# ---------------------------------------------------------------------------
# Glue helpers (run in plain XLA; weight reshapes fold to constants under jit)
# ---------------------------------------------------------------------------
def _groups_of(C):
    g = min(16, C)
    assert C % g == 0, f"GroupNorm: channels {C} not divisible by groups {g}"
    return g


def _flat_w(w):
    """(C_out, C_in, K) -> (C_out, K*C_in) im2col weight layout (column = k*C_in + c)."""
    C_out, C_in, K = w.shape
    return jnp.transpose(w, (0, 2, 1)).reshape(C_out, K * C_in)


def _col(v):
    return v.reshape(-1, 1)


def _act_spec(C, L):
    return pl.BlockSpec((None, C, L), lambda i: (i, 0, 0))


def _w_spec(shape):
    return pl.BlockSpec(shape, lambda i: (0, 0))


def _parallel():
    return pltpu.CompilerParams(dimension_semantics=("parallel",))


def _film_scale_shift(p, time_emb, zsem):
    """time_mlp / cond_mlp as plain XLA dots; fuse both FiLMs: x*tm+ta then x*zm+za
    == x*(tm*zm) + (ta*zm + za). Returns (scale, shift) each of shape (B, C_out, 1)."""
    t = jnp.dot(time_emb, p["t_w1"]) + p["t_b1"]
    t = t * jax.nn.sigmoid(t)
    t = jnp.dot(t, p["t_w2"]) + p["t_b2"]
    tm, ta = jnp.split(t, 2, axis=-1)
    if zsem is not None:
        z = jnp.dot(zsem, p["c_w1"]) + p["c_b1"]
        z = z * jax.nn.sigmoid(z)
        z = jnp.dot(z, p["c_w2"]) + p["c_b2"]
        zm, za = jnp.split(z, 2, axis=-1)
        scale = tm * zm
        shift = ta * zm + za
    else:
        scale, shift = tm, ta
    return (scale[:, :, None].astype(jnp.float32),
            shift[:, :, None].astype(jnp.float32))


# ---------------------------------------------------------------------------
# pallas_call wrappers (one call per network block)
# ---------------------------------------------------------------------------
def cond_conv(ce, tc):
    B, Cin, L = tc.shape
    Co, _, K = ce["w"].shape
    assert K % 2 == 1
    ratio = ce["stride"]
    Lo = (L - 1) // ratio + 1 if ratio > 1 else L
    wf = _flat_w(ce["w"])
    kern = functools.partial(_cond_kernel, K=K, ratio=ratio)
    cost = pl.CostEstimate(flops=2 * B * Co * K * Cin * L,
                           transcendentals=B * Co * Lo,
                           bytes_accessed=4 * B * (Cin * L + Co * Lo) + 4 * int(wf.size))
    return pl.pallas_call(
        kern,
        out_shape=jax.ShapeDtypeStruct((B, Co, Lo), tc.dtype),
        grid=(B,),
        in_specs=[_act_spec(Cin, L), _w_spec(wf.shape), _w_spec((Co, 1))],
        out_specs=_act_spec(Co, Lo),
        compiler_params=_parallel(),
        cost_estimate=cost,
    )(tc, wf, _col(ce["b"]))


def encoder_block(p, x, tc, time_emb, zsem):
    B, Cx, L = x.shape
    Ctc = tc.shape[1]
    cb = p["conv"]
    C_out, _, K = cb["conv1_w"].shape
    assert K % 2 == 1
    groups = _groups_of(C_out)
    ratio = p["ratio"]
    Cp = p["pool_w"].shape[0]
    Lo = (L - 1) // ratio + 1 if ratio > 1 else L

    scale, shift = _film_scale_shift(cb, time_emb, zsem)
    w1 = cb["conv1_w"]                       # (C_out, Cx + Ctc, K), concat order [x, tc]
    w1x, w1t = _flat_w(w1[:, :Cx]), _flat_w(w1[:, Cx:])
    w2 = _flat_w(cb["conv2_w"])
    wp = _flat_w(p["pool_w"])

    kern = functools.partial(_encoder_kernel, K=K, groups=groups, ratio=ratio)
    flops = 2 * B * L * (C_out * K * (Cx + Ctc) + C_out * K * C_out + Cp * K * C_out)
    bytes_accessed = (4 * B * L * (Cx + Ctc + C_out) + 4 * B * Lo * Cp
                      + 4 * int(w1x.size + w1t.size + w2.size + wp.size))
    skip, xd = pl.pallas_call(
        kern,
        out_shape=(jax.ShapeDtypeStruct((B, C_out, L), x.dtype),
                   jax.ShapeDtypeStruct((B, Cp, Lo), x.dtype)),
        grid=(B,),
        in_specs=[
            _act_spec(Cx, L), _act_spec(Ctc, L),
            _w_spec(w1x.shape), _w_spec(w1t.shape), _w_spec((C_out, 1)),
            _w_spec((C_out, 1)), _w_spec((C_out, 1)),
            _act_spec(C_out, 1), _act_spec(C_out, 1),
            _w_spec(w2.shape), _w_spec((C_out, 1)),
            _w_spec((C_out, 1)), _w_spec((C_out, 1)),
            _w_spec(wp.shape), _w_spec((Cp, 1)),
        ],
        out_specs=(_act_spec(C_out, L), _act_spec(Cp, Lo)),
        compiler_params=_parallel(),
        cost_estimate=pl.CostEstimate(flops=flops, transcendentals=5 * B * C_out * L,
                                      bytes_accessed=bytes_accessed),
    )(x, tc, w1x, w1t, _col(cb["conv1_b"]), _col(cb["gn1_w"]), _col(cb["gn1_b"]),
      scale, shift, w2, _col(cb["conv2_b"]), _col(cb["gn2_w"]), _col(cb["gn2_b"]),
      wp, _col(p["pool_b"]))
    return xd, skip


def middle_block(p, x, tc, time_emb, zsem):
    B, Cx, L = x.shape
    Ctc = tc.shape[1]
    C_out, _, K = p["conv1_w"].shape
    assert K % 2 == 1
    groups = _groups_of(C_out)

    scale, shift = _film_scale_shift(p, time_emb, zsem)
    w1 = p["conv1_w"]
    w1x, w1t = _flat_w(w1[:, :Cx]), _flat_w(w1[:, Cx:])
    w2 = _flat_w(p["conv2_w"])

    kern = functools.partial(_middle_kernel, K=K, groups=groups)
    flops = 2 * B * L * C_out * K * (Cx + Ctc + C_out)
    bytes_accessed = (4 * B * L * (Cx + Ctc + C_out)
                      + 4 * int(w1x.size + w1t.size + w2.size))
    return pl.pallas_call(
        kern,
        out_shape=jax.ShapeDtypeStruct((B, C_out, L), x.dtype),
        grid=(B,),
        in_specs=[
            _act_spec(Cx, L), _act_spec(Ctc, L),
            _w_spec(w1x.shape), _w_spec(w1t.shape), _w_spec((C_out, 1)),
            _w_spec((C_out, 1)), _w_spec((C_out, 1)),
            _act_spec(C_out, 1), _act_spec(C_out, 1),
            _w_spec(w2.shape), _w_spec((C_out, 1)),
            _w_spec((C_out, 1)), _w_spec((C_out, 1)),
        ],
        out_specs=_act_spec(C_out, L),
        compiler_params=_parallel(),
        cost_estimate=pl.CostEstimate(flops=flops, transcendentals=5 * B * C_out * L,
                                      bytes_accessed=bytes_accessed),
    )(x, tc, w1x, w1t, _col(p["conv1_b"]), _col(p["gn1_w"]), _col(p["gn1_b"]),
      scale, shift, w2, _col(p["conv2_b"]), _col(p["gn2_w"]), _col(p["gn2_b"]))


def decoder_block(p, x, skip, tc, time_emb, zsem):
    B, Cin, Lin = x.shape
    Cs, L = skip.shape[1], skip.shape[2]
    Ctc = tc.shape[1]
    cb = p["conv"]
    C_out, _, K = cb["conv1_w"].shape
    assert K % 2 == 1
    groups = _groups_of(C_out)
    ratio = p["ratio"]
    has_upconv = p["up_w"] is not None
    L_up = Lin * ratio if ratio > 1 else Lin
    assert L_up == L and tc.shape[2] == L

    scale, shift = _film_scale_shift(cb, time_emb, zsem)
    w1 = cb["conv1_w"]                       # concat order [post-up x, skip, time_cond]
    w1h = _flat_w(w1[:, :C_out])
    w1s = _flat_w(w1[:, C_out:C_out + Cs])
    w1t = _flat_w(w1[:, C_out + Cs:])
    w2 = _flat_w(cb["conv2_w"])
    wr = cb["to_out_w"][:, :, 0]             # 1x1 conv -> plain (C_out, C_out) matrix
    br = _col(cb["to_out_b"])

    args = [x, skip, tc]
    specs = [_act_spec(Cin, Lin), _act_spec(Cs, L), _act_spec(Ctc, L)]
    if has_upconv:
        wu = _flat_w(p["up_w"])
        args += [wu, _col(p["up_b"])]
        specs += [_w_spec(wu.shape), _w_spec((C_out, 1))]
    args += [w1h, w1s, w1t, _col(cb["conv1_b"]), _col(cb["gn1_w"]), _col(cb["gn1_b"]),
             scale, shift, w2, _col(cb["conv2_b"]), _col(cb["gn2_w"]), _col(cb["gn2_b"]),
             wr, br]
    specs += [_w_spec(w1h.shape), _w_spec(w1s.shape), _w_spec(w1t.shape),
              _w_spec((C_out, 1)), _w_spec((C_out, 1)), _w_spec((C_out, 1)),
              _act_spec(C_out, 1), _act_spec(C_out, 1),
              _w_spec(w2.shape), _w_spec((C_out, 1)),
              _w_spec((C_out, 1)), _w_spec((C_out, 1)),
              _w_spec(wr.shape), _w_spec((C_out, 1))]

    kern = functools.partial(_decoder_kernel, K=K, groups=groups,
                             ratio=ratio, has_upconv=has_upconv)
    flops = 2 * B * L * (C_out * K * (C_out + Cs + Ctc) + C_out * K * C_out
                         + C_out * C_out + (3 * C_out * Cin if has_upconv else 0))
    bytes_accessed = (4 * B * (Cin * Lin + (Cs + Ctc + C_out) * L)
                      + 4 * int(w1h.size + w1s.size + w1t.size + w2.size + wr.size))
    return pl.pallas_call(
        kern,
        out_shape=jax.ShapeDtypeStruct((B, C_out, L), x.dtype),
        grid=(B,),
        in_specs=specs,
        out_specs=_act_spec(C_out, L),
        compiler_params=_parallel(),
        cost_estimate=pl.CostEstimate(flops=flops, transcendentals=5 * B * C_out * L,
                                      bytes_accessed=bytes_accessed),
    )(*args)


# ---------------------------------------------------------------------------
# Parameter construction (deterministic synthetic init; mirrors __init__ shapes)
# ---------------------------------------------------------------------------
class KeyGen:
    def __init__(self, key):
        self.key = key

    def __call__(self):
        self.key, sub = jax.random.split(self.key)
        return sub


def _w(kg, shape):
    return 0.1 * jax.random.normal(kg(), shape, jnp.float32)


def init_conv_block(kg, in_c, out_c, skip_c, tcc, time_ch, cond_ch, K):
    p = {
        "conv1_w": _w(kg, (out_c, in_c + skip_c + tcc, K)),
        "conv1_b": jnp.zeros((out_c,), jnp.float32),
        "gn1_w": jnp.ones((out_c,), jnp.float32),
        "gn1_b": jnp.zeros((out_c,), jnp.float32),
        "conv2_w": _w(kg, (out_c, out_c, K)),
        "conv2_b": jnp.zeros((out_c,), jnp.float32),
        "gn2_w": jnp.ones((out_c,), jnp.float32),
        "gn2_b": jnp.zeros((out_c,), jnp.float32),
        # Linear weights stored as (in, out)
        "t_w1": _w(kg, (time_ch, 128)), "t_b1": jnp.zeros((128,), jnp.float32),
        "t_w2": _w(kg, (128, 2 * out_c)), "t_b2": jnp.zeros((2 * out_c,), jnp.float32),
        "c_w1": _w(kg, (cond_ch, 128)), "c_b1": jnp.zeros((128,), jnp.float32),
        "c_w2": _w(kg, (128, 2 * out_c)), "c_b2": jnp.zeros((2 * out_c,), jnp.float32),
    }
    if skip_c:
        p["to_out_w"] = _w(kg, (out_c, in_c, 1))
        p["to_out_b"] = jnp.zeros((out_c,), jnp.float32)
    else:
        p["to_out_w"], p["to_out_b"] = None, None
    return p


def init_decoder_block(kg, in_c, out_c, ratio, skip_size, tcc, time_ch, cond_ch, K):
    blk = {"ratio": ratio}
    if ratio == 1 and in_c == out_c:
        blk["up_w"], blk["up_b"] = None, None            # nn.Identity
    else:
        blk["up_w"] = _w(kg, (out_c, in_c, 3))
        blk["up_b"] = jnp.zeros((out_c,), jnp.float32)
    skip_c = skip_size if skip_size is not None else out_c
    blk["conv"] = init_conv_block(kg, out_c, out_c, skip_c, tcc, time_ch, cond_ch, K)
    return blk


def init_unet1d(key, *, in_size, out_size, channels, ratios, kernel_size,
                time_channels, time_cond_in_channels, time_cond_channels, z_channels):
    kg = KeyGen(key)
    n = len(channels)
    ratios = [1] + list(ratios)
    cond_channels = z_channels                           # cond={} -> only z_channels
    K = kernel_size
    tcc = time_cond_channels
    params = {}

    # cond_emb_time: first stride-1 conv, then one conv per encoder level
    ce = [{"w": _w(kg, (tcc, time_cond_in_channels, K)),
           "b": jnp.zeros((tcc,), jnp.float32), "stride": 1}]
    for i in range(n):
        ce.append({"w": _w(kg, (tcc, tcc, K)),
                   "b": jnp.zeros((tcc,), jnp.float32), "stride": ratios[i]})
    params["cond_emb"] = ce

    # encoder blocks
    down = []
    enc_in = [in_size] + channels[:-1]
    for i in range(n):
        in_c, out_c = enc_in[i], channels[i]
        down.append({
            "ratio": ratios[i],
            "conv": init_conv_block(kg, in_c, in_c, 0, tcc, time_channels, cond_channels, K),
            "pool_w": _w(kg, (out_c, in_c, K)),
            "pool_b": jnp.zeros((out_c,), jnp.float32),
        })
    params["down"] = down

    # middle block
    params["middle"] = init_conv_block(kg, channels[-1], channels[-1], 0, tcc,
                                       time_channels, cond_channels, K)

    # decoder blocks
    up = []
    for i in range(1, n):
        up.append(init_decoder_block(kg, channels[n - i], channels[n - i - 1],
                                     ratios[n - i], None, tcc, time_channels,
                                     cond_channels, K))
    up.append(init_decoder_block(kg, channels[0], out_size, ratios[0], in_size,
                                 tcc, time_channels, cond_channels, K))
    params["up"] = up
    return params


# ---------------------------------------------------------------------------
# Forward pass
# ---------------------------------------------------------------------------
def sinusoidal_time_embedding(t, dim):
    # TODO(synk): SPE class source not provided; standard sinusoidal embedding used (glue).
    half = dim // 2
    freqs = jnp.exp(-math.log(10000.0) * jnp.arange(half, dtype=jnp.float32) / half)
    ang = t.astype(jnp.float32)[:, None] * freqs[None, :]
    return jnp.concatenate([jnp.sin(ang), jnp.cos(ang)], axis=-1)


def unet1d_forward(params, x, time, time_cond, zsem, *, time_channels):
    """UNET1D.forward for the time_cond_channels != 0 / cond_type='all' / no-context path.
    (SelfAttention1d / CrossAttention1d are nn.Identity for this configuration.)"""
    time_emb = sinusoidal_time_embedding(time, time_channels).astype(jnp.float32)
    skips, tconds = [], []
    tc = time_cond
    for enc, ce in zip(params["down"], params["cond_emb"]):
        tc = cond_conv(ce, tc)
        x, skip = encoder_block(enc, x, tc, time_emb, zsem)
        tconds.append(tc)
        skips.append(skip)
    tc = cond_conv(params["cond_emb"][-1], tc)
    x = middle_block(params["middle"], x, tc, time_emb, zsem)
    for dec in params["up"]:
        skip = skips.pop(-1)
        tcd = tconds.pop(-1)
        x = decoder_block(dec, x, skip, tcd, time_emb, zsem)
    return x


# ---------------------------------------------------------------------------
if __name__ == "__main__":
    B, L = 2, 16
    in_size = 4
    channels = [8, 16]
    ratios = [2, 2]                 # becomes [1, 2, 2] internally (as in the module)
    kernel_size = 5
    time_channels = 16
    time_cond_in_channels = 1
    time_cond_channels = 8
    z_channels = 8

    root = jax.random.PRNGKey(0)
    k_params, k_x, k_t, k_tc, k_z = jax.random.split(root, 5)

    params = init_unet1d(k_params, in_size=in_size, out_size=in_size,
                         channels=channels, ratios=ratios, kernel_size=kernel_size,
                         time_channels=time_channels,
                         time_cond_in_channels=time_cond_in_channels,
                         time_cond_channels=time_cond_channels,
                         z_channels=z_channels)

    x = jax.random.normal(k_x, (B, in_size, L), jnp.float32)
    time = jax.random.uniform(k_t, (B,), jnp.float32) * 100.0
    time_cond = jax.random.normal(k_tc, (B, time_cond_in_channels, L), jnp.float32)
    zsem = jax.random.normal(k_z, (B, z_channels), jnp.float32)

    # jit the whole forward so XLA fuses the remaining (tiny) glue around the
    # fused Pallas block kernels; params are closed over as constants.
    fwd = jax.jit(functools.partial(unet1d_forward, params,
                                    time_channels=time_channels))
    out = jax.block_until_ready(fwd(x, time, time_cond, zsem))
    assert out.shape == (B, in_size, L), out.shape
    assert bool(jnp.all(jnp.isfinite(out)))
    print("KERNEL_OK")
</pallas_src>

<mosaic_0001>
module attributes {stable_mosaic.version = 11 : i64} {
  func.func @_cond_kernel(%arg0: i32, %arg1: memref<1x1x16xf32, #tpu.memory_space<vmem>>, %arg2: memref<8x5xf32, #tpu.memory_space<vmem>>, %arg3: memref<8x1xf32, #tpu.memory_space<vmem>>, %arg4: memref<1x8x16xf32, #tpu.memory_space<vmem>>) attributes {dimension_semantics = [#tpu.dimension_semantics<parallel>], iteration_bounds = array<i64: 2>, scalar_prefetch = 0 : i64, scratch_operands = 0 : i64, tpu.core_type = #tpu.core_type<tc>, window_params = [{transform_indices = @transform_0, window_bounds = array<i64: 1, 1, 16>}, {pipeline_mode = #tpu.pipeline_mode<synchronous>, transform_indices = @transform_1, window_bounds = array<i64: 8, 5>}, {pipeline_mode = #tpu.pipeline_mode<synchronous>, transform_indices = @transform_2, window_bounds = array<i64: 8, 1>}, {transform_indices = @transform_3, window_bounds = array<i64: 1, 8, 16>}]} {
    %c0 = arith.constant 0 : index
    %c0_0 = arith.constant 0 : index
    %c0_1 = arith.constant 0 : index
    %0 = vector.load %arg1[%c0, %c0_0, %c0_1] : memref<1x1x16xf32, #tpu.memory_space<vmem>>, vector<1x1x16xf32>
    %1 = vector.shape_cast %0 : vector<1x1x16xf32> to vector<1x16xf32>
    %c0_2 = arith.constant 0 : index
    %c0_3 = arith.constant 0 : index
    %2 = vector.load %arg2[%c0_2, %c0_3] : memref<8x5xf32, #tpu.memory_space<vmem>>, vector<8x5xf32>
    %c0_4 = arith.constant 0 : index
    %c0_5 = arith.constant 0 : index
    %3 = vector.load %arg3[%c0_4, %c0_5] : memref<8x1xf32, #tpu.memory_space<vmem>>, vector<8x1xf32>
    %cst = arith.constant 0.000000e+00 : f32
    %4 = vector.broadcast %cst : f32 to vector<1x2xf32>
    %5 = tpu.concatenate %4, %1, %4 in 1 : vector<1x2xf32>, vector<1x16xf32>, vector<1x2xf32> -> vector<1x20xf32>
    %6 = vector.extract_strided_slice %5 {offsets = [0, 0], sizes = [1, 16], strides = [1, 1]} : vector<1x20xf32> to vector<1x16xf32>
    %7 = vector.extract_strided_slice %5 {offsets = [0, 1], sizes = [1, 16], strides = [1, 1]} : vector<1x20xf32> to vector<1x16xf32>
    %8 = vector.extract_strided_slice %5 {offsets = [0, 2], sizes = [1, 16], strides = [1, 1]} : vector<1x20xf32> to vector<1x16xf32>
    %9 = vector.extract_strided_slice %5 {offsets = [0, 3], sizes = [1, 16], strides = [1, 1]} : vector<1x20xf32> to vector<1x16xf32>
    %10 = vector.extract_strided_slice %5 {offsets = [0, 4], sizes = [1, 16], strides = [1, 1]} : vector<1x20xf32> to vector<1x16xf32>
    %11 = tpu.concatenate %6, %7, %8, %9, %10 in 0 : vector<1x16xf32>, vector<1x16xf32>, vector<1x16xf32>, vector<1x16xf32>, vector<1x16xf32> -> vector<5x16xf32>
    %cst_6 = arith.constant dense<0.000000e+00> : vector<8x16xf32>
    %12 = tpu.matmul %2, %11, %cst_6 {dimension_numbers = #tpu.dot_dimension_numbers<[1], [0], [0], [1], [0, 0, 1, 1], [], []>} : vector<8x5xf32>, vector<5x16xf32>, vector<8x16xf32> -> vector<8x16xf32>
    %13 = vector.broadcast %3 : vector<8x1xf32> to vector<8x16xf32>
    %14 = arith.addf %12, %13 : vector<8x16xf32>
    %15 = arith.negf %14 : vector<8x16xf32>
    %16 = math.exp %15 : vector<8x16xf32>
    %cst_7 = arith.constant 1.000000e+00 : f32
    %17 = vector.broadcast %cst_7 : f32 to vector<8x16xf32>
    %18 = arith.addf %17, %16 : vector<8x16xf32>
    %19 = arith.divf %17, %18 : vector<8x16xf32>
    %20 = arith.mulf %14, %19 : vector<8x16xf32>
    %c0_8 = arith.constant 0 : index
    %c0_9 = arith.constant 0 : index
    %c0_10 = arith.constant 0 : index
    %21 = vector.load %arg4[%c0_8, %c0_9, %c0_10] : memref<1x8x16xf32, #tpu.memory_space<vmem>>, vector<1x8x16xf32>
    %22 = vector.shape_cast %21 : vector<1x8x16xf32> to vector<8x16xf32>
    %23 = vector.shape_cast %20 : vector<8x16xf32> to vector<1x8x16xf32>
    tpu.vector_store %arg4[%c0_8, %c0_9, %c0_10], %23 {strides = array<i32>} : memref<1x8x16xf32, #tpu.memory_space<vmem>>, vector<1x8x16xf32>,
    return
  }
  func.func @transform_0(%arg0: i32) -> (i32, i32, i32) {
    %c0_i32 = arith.constant 0 : i32
    %c0_i32_0 = arith.constant 0 : i32
    %c0_i32_1 = arith.constant 0 : i32
    return %arg0, %c0_i32, %c0_i32_0 : i32, i32, i32
  }
  func.func @transform_1(%arg0: i32) -> (i32, i32) {
    %c0_i32 = arith.constant 0 : i32
    %c0_i32_0 = arith.constant 0 : i32
    %c0_i32_1 = arith.constant 0 : i32
    return %c0_i32, %c0_i32_0 : i32, i32
  }
  func.func @transform_2(%arg0: i32) -> (i32, i32) {
    %c0_i32 = arith.constant 0 : i32
    %c0_i32_0 = arith.constant 0 : i32
    %c0_i32_1 = arith.constant 0 : i32
    return %c0_i32, %c0_i32_0 : i32, i32
  }
  func.func @transform_3(%arg0: i32) -> (i32, i32, i32) {
    %c0_i32 = arith.constant 0 : i32
    %c0_i32_0 = arith.constant 0 : i32
    %c0_i32_1 = arith.constant 0 : i32
    return %arg0, %c0_i32, %c0_i32_0 : i32, i32, i32
  }
}

module attributes {stable_mosaic.version = 11 : i64} {
  func.func @_encoder_kernel(%arg0: i32, %arg1: memref<1x4x16xf32, #tpu.memory_space<vmem>>, %arg2: memref<1x8x16xf32, #tpu.memory_space<vmem>>, %arg3: memref<4x20xf32, #tpu.memory_space<vmem>>, %arg4: memref<4x40xf32, #tpu.memory_space<vmem>>, %arg5: memref<4x1xf32, #tpu.memory_space<vmem>>, %arg6: memref<4x1xf32, #tpu.memory_space<vmem>>, %arg7: memref<4x1xf32, #tpu.memory_space<vmem>>, %arg8: memref<1x4x1xf32, #tpu.memory_space<vmem>>, %arg9: memref<1x4x1xf32, #tpu.memory_space<vmem>>, %arg10: memref<4x20xf32, #tpu.memory_space<vmem>>, %arg11: memref<4x1xf32, #tpu.memory_space<vmem>>, %arg12: memref<4x1xf32, #tpu.memory_space<vmem>>, %arg13: memref<4x1xf32, #tpu.memory_space<vmem>>, %arg14: memref<8x20xf32, #tpu.memory_space<vmem>>, %arg15: memref<8x1xf32, #tpu.memory_space<vmem>>, %arg16: memref<1x4x16xf32, #tpu.memory_space<vmem>>, %arg17: memref<1x8x16xf32, #tpu.memory_space<vmem>>) attributes {dimension_semantics = [#tpu.dimension_semantics<parallel>], iteration_bounds = array<i64: 2>, scalar_prefetch = 0 : i64, scratch_operands = 0 : i64, tpu.core_type = #tpu.core_type<tc>, window_params = [{transform_indices = @transform_0, window_bounds = array<i64: 1, 4, 16>}, {transform_indices = @transform_1, window_bounds = array<i64: 1, 8, 16>}, {pipeline_mode = #tpu.pipeline_mode<synchronous>, transform_indices = @transform_2, window_bounds = array<i64: 4, 20>}, {pipeline_mode = #tpu.pipeline_mode<synchronous>, transform_indices = @transform_3, window_bounds = array<i64: 4, 40>}, {pipeline_mode = #tpu.pipeline_mode<synchronous>, transform_indices = @transform_4, window_bounds = array<i64: 4, 1>}, {pipeline_mode = #tpu.pipeline_mode<synchronous>, transform_indices = @transform_5, window_bounds = array<i64: 4, 1>}, {pipeline_mode = #tpu.pipeline_mode<synchronous>, transform_indices = @transform_6, window_bounds = array<i64: 4, 1>}, {transform_indices = @transform_7, window_bounds = array<i64: 1, 4, 1>}, {transform_indices = @transform_8, window_bounds = array<i64: 1, 4, 1>}, {pipeline_mode = #tpu.pipeline_mode<synchronous>, transform_indices = @transform_9, window_bounds = array<i64: 4, 20>}, {pipeline_mode = #tpu.pipeline_mode<synchronous>, transform_indices = @transform_10, window_bounds = array<i64: 4, 1>}, {pipeline_mode = #tpu.pipeline_mode<synchronous>, transform_indices = @transform_11, window_bounds = array<i64: 4, 1>}, {pipeline_mode = #tpu.pipeline_mode<synchronous>, transform_indices = @transform_12, window_bounds = array<i64: 4, 1>}, {pipeline_mode = #tpu.pipeline_mode<synchronous>, transform_indices = @transform_13, window_bounds = array<i64: 8, 20>}, {pipeline_mode = #tpu.pipeline_mode<synchronous>, transform_indices = @transform_14, window_bounds = array<i64: 8, 1>}, {transform_indices = @transform_15, window_bounds = array<i64: 1, 4, 16>}, {transform_indices = @transform_16, window_bounds = array<i64: 1, 8, 16>}]} {
    %c0 = arith.constant 0 : index
    %c0_0 = arith.constant 0 : index
    %c0_1 = arith.constant 0 : index
    %0 = vector.load %arg1[%c0, %c0_0, %c0_1] : memref<1x4x16xf32, #tpu.memory_space<vmem>>, vector<1x4x16xf32>
    %1 = vector.shape_cast %0 : vector<1x4x16xf32> to vector<4x16xf32>
    %c0_2 = arith.constant 0 : index
    %c0_3 = arith.constant 0 : index
    %c0_4 = arith.constant 0 : index
    %2 = vector.load %arg2[%c0_2, %c0_3, %c0_4] : memref<1x8x16xf32, #tpu.memory_space<vmem>>, vector<1x8x16xf32>
    %3 = vector.shape_cast %2 : vector<1x8x16xf32> to vector<8x16xf32>
    %c0_5 = arith.constant 0 : index
    %c0_6 = arith.constant 0 : index
    %4 = vector.load %arg3[%c0_5, %c0_6] : memref<4x20xf32, #tpu.memory_space<vmem>>, vector<4x20xf32>
    %c0_7 = arith.constant 0 : index
    %c0_8 = arith.constant 0 : index
    %5 = vector.load %arg4[%c0_7, %c0_8] : memref<4x40xf32, #tpu.memory_space<vmem>>, vector<4x40xf32>
    %c0_9 = arith.constant 0 : index
    %c0_10 = arith.constant 0 : index
    %6 = vector.load %arg5[%c0_9, %c0_10] : memref<4x1xf32, #tpu.memory_space<vmem>>, vector<4x1xf32>
    %c0_11 = arith.constant 0 : index
    %c0_12 = arith.constant 0 : index
    %7 = vector.load %arg6[%c0_11, %c0_12] : memref<4x1xf32, #tpu.memory_space<vmem>>, vector<4x1xf32>
    %c0_13 = arith.constant 0 : index
    %c0_14 = arith.constant 0 : index
    %8 = vector.load %arg7[%c0_13, %c0_14] : memref<4x1xf32, #tpu.memory_space<vmem>>, vector<4x1xf32>
    %c0_15 = arith.constant 0 : index
    %c0_16 = arith.constant 0 : index
    %c0_17 = arith.constant 0 : index
    %9 = vector.load %arg8[%c0_15, %c0_16, %c0_17] : memref<1x4x1xf32, #tpu.memory_space<vmem>>, vector<1x4x1xf32>
    %10 = vector.shape_cast %9 : vector<1x4x1xf32> to vector<4x1xf32>
    %c0_18 = arith.constant 0 : index
    %c0_19 = arith.constant 0 : index
    %c0_20 = arith.constant 0 : index
    %11 = vector.load %arg9[%c0_18, %c0_19, %c0_20] : memref<1x4x1xf32, #tpu.memory_space<vmem>>, vector<1x4x1xf32>
    %12 = vector.shape_cast %11 : vector<1x4x1xf32> to vector<4x1xf32>
    %c0_21 = arith.constant 0 : index
    %c0_22 = arith.constant 0 : index
    %13 = vector.load %arg10[%c0_21, %c0_22] : memref<4x20xf32, #tpu.memory_space<vmem>>, vector<4x20xf32>
    %c0_23 = arith.constant 0 : index
    %c0_24 = arith.constant 0 : index
    %14 = vector.load %arg11[%c0_23, %c0_24] : memref<4x1xf32, #tpu.memory_space<vmem>>, vector<4x1xf32>
    %c0_25 = arith.constant 0 : index
    %c0_26 = arith.constant 0 : index
    %15 = vector.load %arg12[%c0_25, %c0_26] : memref<4x1xf32, #tpu.memory_space<vmem>>, vector<4x1xf32>
    %c0_27 = arith.constant 0 : index
    %c0_28 = arith.constant 0 : index
    %16 = vector.load %arg13[%c0_27, %c0_28] : memref<4x1xf32, #tpu.memory_space<vmem>>, vector<4x1xf32>
    %cst = arith.constant 0.000000e+00 : f32
    %17 = vector.broadcast %cst : f32 to vector<4x2xf32>
    %18 = tpu.concatenate %17, %1, %17 in 1 : vector<4x2xf32>, vector<4x16xf32>, vector<4x2xf32> -> vector<4x20xf32>
    %19 = vector.extract_strided_slice %18 {offsets = [0, 0], sizes = [4, 16], strides = [1, 1]} : vector<4x20xf32> to vector<4x16xf32>
    %20 = vector.extract_strided_slice %18 {offsets = [0, 1], sizes = [4, 16], strides = [1, 1]} : vector<4x20xf32> to vector<4x16xf32>
    %21 = vector.extract_strided_slice %18 {offsets = [0, 2], sizes = [4, 16], strides = [1, 1]} : vector<4x20xf32> to vector<4x16xf32>
    %22 = vector.extract_strided_slice %18 {offsets = [0, 3], sizes = [4, 16], strides = [1, 1]} : vector<4x20xf32> to vector<4x16xf32>
    %23 = vector.extract_strided_slice %18 {offsets = [0, 4], sizes = [4, 16], strides = [1, 1]} : vector<4x20xf32> to vector<4x16xf32>
    %24 = tpu.concatenate %19, %20, %21, %22, %23 in 0 : vector<4x16xf32>, vector<4x16xf32>, vector<4x16xf32>, vector<4x16xf32>, vector<4x16xf32> -> vector<20x16xf32>
    %cst_29 = arith.constant dense<0.000000e+00> : vector<4x16xf32>
    %25 = tpu.matmul %4, %24, %cst_29 {dimension_numbers = #tpu.dot_dimension_numbers<[1], [0], [0], [1], [0, 0, 1, 1], [], []>} : vector<4x20xf32>, vector<20x16xf32>, vector<4x16xf32> -> vector<4x16xf32>
    %cst_30 = arith.constant 0.000000e+00 : f32
    %26 = vector.broadcast %cst_30 : f32 to vector<8x2xf32>
    %27 = tpu.concatenate %26, %3, %26 in 1 : vector<8x2xf32>, vector<8x16xf32>, vector<8x2xf32> -> vector<8x20xf32>
    %28 = vector.extract_strided_slice %27 {offsets = [0, 0], sizes = [8, 16], strides = [1, 1]} : vector<8x20xf32> to vector<8x16xf32>
    %29 = vector.extract_strided_slice %27 {offsets = [0, 1], sizes = [8, 16], strides = [1, 1]} : vector<8x20xf32> to vector<8x16xf32>
    %30 = vector.extract_strided_slice %27 {offsets = [0, 2], sizes = [8, 16], strides = [1, 1]} : vector<8x20xf32> to vector<8x16xf32>
    %31 = vector.extract_strided_slice %27 {offsets = [0, 3], sizes = [8, 16], strides = [1, 1]} : vector<8x20xf32> to vector<8x16xf32>
    %32 = vector.extract_strided_slice %27 {offsets = [0, 4], sizes = [8, 16], strides = [1, 1]} : vector<8x20xf32> to vector<8x16xf32>
    %33 = tpu.concatenate %28, %29, %30, %31, %32 in 0 : vector<8x16xf32>, vector<8x16xf32>, vector<8x16xf32>, vector<8x16xf32>, vector<8x16xf32> -> vector<40x16xf32>
    %cst_31 = arith.constant dense<0.000000e+00> : vector<4x16xf32>
    %34 = tpu.matmul %5, %33, %cst_31 {dimension_numbers = #tpu.dot_dimension_numbers<[1], [0], [0], [1], [0, 0, 1, 1], [], []>} : vector<4x40xf32>, vector<40x16xf32>, vector<4x16xf32> -> vector<4x16xf32>
    %35 = arith.addf %25, %34 : vector<4x16xf32>
    %36 = vector.broadcast %6 : vector<4x1xf32> to vector<4x16xf32>
    %37 = arith.addf %35, %36 : vector<4x16xf32>
    %cst_32 = arith.constant dense<0.000000e+00> : vector<4xf32>
    %38 = vector.multi_reduction <add>, %37, %cst_32 [1] : vector<4x16xf32> to vector<4xf32>
    %39 = vector.shape_cast %38 : vector<4xf32> to vector<4x1xf32>
    %cst_33 = arith.constant 1.600000e+01 : f32
    %40 = vector.broadcast %cst_33 : f32 to vector<4x1xf32>
    %41 = arith.divf %39, %40 : vector<4x1xf32>
    %42 = vector.broadcast %41 : vector<4x1xf32> to vector<4x16xf32>
    %43 = arith.subf %37, %42 : vector<4x16xf32>
    %44 = arith.mulf %43, %43 : vector<4x16xf32>
    %cst_34 = arith.constant dense<0.000000e+00> : vector<4xf32>
    %45 = vector.multi_reduction <add>, %44, %cst_34 [1] : vector<4x16xf32> to vector<4xf32>
    %46 = vector.shape_cast %45 : vector<4xf32> to vector<4x1xf32>
    %cst_35 = arith.constant 1.600000e+01 : f32
    %47 = vector.broadcast %cst_35 : f32 to vector<4x1xf32>
    %48 = arith.divf %46, %47 : vector<4x1xf32>
    %49 = vector.broadcast %41 : vector<4x1xf32> to vector<4x16xf32>
    %50 = arith.subf %37, %49 : vector<4x16xf32>
    %cst_36 = arith.constant 9.99999974E-6 : f32
    %51 = vector.broadcast %cst_36 : f32 to vector<4x1xf32>
    %52 = arith.addf %48, %51 : vector<4x1xf32>
    %53 = math.rsqrt %52 : vector<4x1xf32>
    %54 = vector.broadcast %53 : vector<4x1xf32> to vector<4x16xf32>
    %55 = arith.mulf %50, %54 : vector<4x16xf32>
    %56 = vector.broadcast %7 : vector<4x1xf32> to vector<4x16xf32>
    %57 = arith.mulf %55, %56 : vector<4x16xf32>
    %58 = vector.broadcast %8 : vector<4x1xf32> to vector<4x16xf32>
    %59 = arith.addf %57, %58 : vector<4x16xf32>
    %60 = arith.negf %59 : vector<4x16xf32>
    %61 = math.exp %60 : vector<4x16xf32>
    %cst_37 = arith.constant 1.000000e+00 : f32
    %62 = vector.broadcast %cst_37 : f32 to vector<4x16xf32>
    %63 = arith.addf %62, %61 : vector<4x16xf32>
    %64 = arith.divf %62, %63 : vector<4x16xf32>
    %65 = arith.mulf %59, %64 : vector<4x16xf32>
    %66 = vector.broadcast %10 : vector<4x1xf32> to vector<4x16xf32>
    %67 = arith.mulf %65, %66 : vector<4x16xf32>
    %68 = vector.broadcast %12 : vector<4x1xf32> to vector<4x16xf32>
    %69 = arith.addf %67, %68 : vector<4x16xf32>
    %70 = arith.negf %69 : vector<4x16xf32>
    %71 = math.exp %70 : vector<4x16xf32>
    %cst_38 = arith.constant 1.000000e+00 : f32
    %72 = vector.broadcast %cst_38 : f32 to vector<4x16xf32>
    %73 = arith.addf %72, %71 : vector<4x16xf32>
    %74 = arith.divf %72, %73 : vector<4x16xf32>
    %75 = arith.mulf %69, %74 : vector<4x16xf32>
    %cst_39 = arith.constant 0.000000e+00 : f32
    %76 = vector.broadcast %cst_39 : f32 to vector<4x2xf32>
    %77 = tpu.concatenate %76, %75, %76 in 1 : vector<4x2xf32>, vector<4x16xf32>, vector<4x2xf32> -> vector<4x20xf32>
    %78 = vector.extract_strided_slice %77 {offsets = [0, 0], sizes = [4, 16], strides = [1, 1]} : vector<4x20xf32> to vector<4x16xf32>
    %79 = vector.extract_strided_slice %77 {offsets = [0, 1], sizes = [4, 16], strides = [1, 1]} : vector<4x20xf32> to vector<4x16xf32>
    %80 = vector.extract_strided_slice %77 {offsets = [0, 2], sizes = [4, 16], strides = [1, 1]} : vector<4x20xf32> to vector<4x16xf32>
    %81 = vector.extract_strided_slice %77 {offsets = [0, 3], sizes = [4, 16], strides = [1, 1]} : vector<4x20xf32> to vector<4x16xf32>
    %82 = vector.extract_strided_slice %77 {offsets = [0, 4], sizes = [4, 16], strides = [1, 1]} : vector<4x20xf32> to vector<4x16xf32>
    %83 = tpu.concatenate %78, %79, %80, %81, %82 in 0 : vector<4x16xf32>, vector<4x16xf32>, vector<4x16xf32>, vector<4x16xf32>, vector<4x16xf32> -> vector<20x16xf32>
    %cst_40 = arith.constant dense<0.000000e+00> : vector<4x16xf32>
    %84 = tpu.matmul %13, %83, %cst_40 {dimension_numbers = #tpu.dot_dimension_numbers<[1], [0], [0], [1], [0, 0, 1, 1], [], []>} : vector<4x20xf32>, vector<20x16xf32>, vector<4x16xf32> -> vector<4x16xf32>
    %85 = vector.broadcast %14 : vector<4x1xf32> to vector<4x16xf32>
    %86 = arith.addf %84, %85 : vector<4x16xf32>
    %cst_41 = arith.constant dense<0.000000e+00> : vector<4xf32>
    %87 = vector.multi_reduction <add>, %86, %cst_41 [1] : vector<4x16xf32> to vector<4xf32>
    %88 = vector.shape_cast %87 : vector<4xf32> to vector<4x1xf32>
    %cst_42 = arith.constant 1.600000e+01 : f32
    %89 = vector.broadcast %cst_42 : f32 to vector<4x1xf32>
    %90 = arith.divf %88, %89 : vector<4x1xf32>
    %91 = vector.broadcast %90 : vector<4x1xf32> to vector<4x16xf32>
    %92 = arith.subf %86, %91 : vector<4x16xf32>
    %93 = arith.mulf %92, %92 : vector<4x16xf32>
    %cst_43 = arith.constant dense<0.000000e+00> : vector<4xf32>
    %94 = vector.multi_reduction <add>, %93, %cst_43 [1] : vector<4x16xf32> to vector<4xf32>
    %95 = vector.shape_cast %94 : vector<4xf32> to vector<4x1xf32>
    %cst_44 = arith.constant 1.600000e+01 : f32
    %96 = vector.broadcast %cst_44 : f32 to vector<4x1xf32>
    %97 = arith.divf %95, %96 : vector<4x1xf32>
    %98 = vector.broadcast %90 : vector<4x1xf32> to vector<4x16xf32>
    %99 = arith.subf %86, %98 : vector<4x16xf32>
    %cst_45 = arith.constant 9.99999974E-6 : f32
    %100 = vector.broadcast %cst_45 : f32 to vector<4x1xf32>
    %101 = arith.addf %97, %100 : vector<4x1xf32>
    %102 = math.rsqrt %101 : vector<4x1xf32>
    %103 = vector.broadcast %102 : vector<4x1xf32> to vector<4x16xf32>
    %104 = arith.mulf %99, %103 : vector<4x16xf32>
    %105 = vector.broadcast %15 : vector<4x1xf32> to vector<4x16xf32>
    %106 = arith.mulf %104, %105 : vector<4x16xf32>
    %107 = vector.broadcast %16 : vector<4x1xf32> to vector<4x16xf32>
    %108 = arith.addf %106, %107 : vector<4x16xf32>
    %109 = arith.negf %108 : vector<4x16xf32>
    %110 = math.exp %109 : vector<4x16xf32>
    %cst_46 = arith.constant 1.000000e+00 : f32
    %111 = vector.broadcast %cst_46 : f32 to vector<4x16xf32>
    %112 = arith.addf %111, %110 : vector<4x16xf32>
    %113 = arith.divf %111, %112 : vector<4x16xf32>
    %114 = arith.mulf %108, %113 : vector<4x16xf32>
    %115 = arith.addf %114, %1 : vector<4x16xf32>
    %c0_47 = arith.constant 0 : index
    %c0_48 = arith.constant 0 : index
    %c0_49 = arith.constant 0 : index
    %116 = vector.load %arg16[%c0_47, %c0_48, %c0_49] : memref<1x4x16xf32, #tpu.memory_space<vmem>>, vector<1x4x16xf32>
    %117 = vector.shape_cast %116 : vector<1x4x16xf32> to vector<4x16xf32>
    %118 = vector.shape_cast %115 : vector<4x16xf32> to vector<1x4x16xf32>
    tpu.vector_store %arg16[%c0_47, %c0_48, %c0_49], %118 {strides = array<i32>} : memref<1x4x16xf32, #tpu.memory_space<vmem>>, vector<1x4x16xf32>,
    %c0_50 = arith.constant 0 : index
    %c0_51 = arith.constant 0 : index
    %119 = vector.load %arg14[%c0_50, %c0_51] : memref<8x20xf32, #tpu.memory_space<vmem>>, vector<8x20xf32>
    %c0_52 = arith.constant 0 : index
    %c0_53 = arith.constant 0 : index
    %120 = vector.load %arg15[%c0_52, %c0_53] : memref<8x1xf32, #tpu.memory_space<vmem>>, vector<8x1xf32>
    %cst_54 = arith.constant 0.000000e+00 : f32
    %121 = vector.broadcast %cst_54 : f32 to vector<4x2xf32>
    %122 = tpu.concatenate %121, %115, %121 in 1 : vector<4x2xf32>, vector<4x16xf32>, vector<4x2xf32> -> vector<4x20xf32>
    %123 = vector.extract_strided_slice %122 {offsets = [0, 0], sizes = [4, 16], strides = [1, 1]} : vector<4x20xf32> to vector<4x16xf32>
    %124 = vector.extract_strided_slice %122 {offsets = [0, 1], sizes = [4, 16], strides = [1, 1]} : vector<4x20xf32> to vector<4x16xf32>
    %125 = vector.extract_strided_slice %122 {offsets = [0, 2], sizes = [4, 16], strides = [1, 1]} : vector<4x20xf32> to vector<4x16xf32>
    %126 = vector.extract_strided_slice %122 {offsets = [0, 3], sizes = [4, 16], strides = [1, 1]} : vector<4x20xf32> to vector<4x16xf32>
    %127 = vector.extract_strided_slice %122 {offsets = [0, 4], sizes = [4, 16], strides = [1, 1]} : vector<4x20xf32> to vector<4x16xf32>
    %128 = tpu.concatenate %123, %124, %125, %126, %127 in 0 : vector<4x16xf32>, vector<4x16xf32>, vector<4x16xf32>, vector<4x16xf32>, vector<4x16xf32> -> vector<20x16xf32>
    %cst_55 = arith.constant dense<0.000000e+00> : vector<8x16xf32>
    %129 = tpu.matmul %119, %128, %cst_55 {dimension_numbers = #tpu.dot_dimension_numbers<[1], [0], [0], [1], [0, 0, 1, 1], [], []>} : vector<8x20xf32>, vector<20x16xf32>, vector<8x16xf32> -> vector<8x16xf32>
    %130 = vector.broadcast %120 : vector<8x1xf32> to vector<8x16xf32>
    %131 = arith.addf %129, %130 : vector<8x16xf32>
    %c0_56 = arith.constant 0 : index
    %c0_57 = arith.constant 0 : index
    %c0_58 = arith.constant 0 : index
    %132 = vector.load %arg17[%c0_56, %c0_57, %c0_58] : memref<1x8x16xf32, #tpu.memory_space<vmem>>, vector<1x8x16xf32>
    %133 = vector.shape_cast %132 : vector<1x8x16xf32> to vector<8x16xf32>
    %134 = vector.shape_cast %131 : vector<8x16xf32> to vector<1x8x16xf32>
    tpu.vector_store %arg17[%c0_56, %c0_57, %c0_58], %134 {strides = array<i32>} : memref<1x8x16xf32, #tpu.memory_space<vmem>>, vector<1x8x16xf32>,
    return
  }
  func.func @transform_0(%arg0: i32) -> (i32, i32, i32) {
    %c0_i32 = arith.constant 0 : i32
    %c0_i32_0 = arith.constant 0 : i32
    %c0_i32_1 = arith.constant 0 : i32
    return %arg0, %c0_i32, %c0_i32_0 : i32, i32, i32
  }
  func.func @transform_1(%arg0: i32) -> (i32, i32, i32) {
    %c0_i32 = arith.constant 0 : i32
    %c0_i32_0 = arith.constant 0 : i32
    %c0_i32_1 = arith.constant 0 : i32
    return %arg0, %c0_i32, %c0_i32_0 : i32, i32, i32
  }
  func.func @transform_2(%arg0: i32) -> (i32, i32) {
    %c0_i32 = arith.constant 0 : i32
    %c0_i32_0 = arith.constant 0 : i32
    %c0_i32_1 = arith.constant 0 : i32
    return %c0_i32, %c0_i32_0 : i32, i32
  }
  func.func @transform_3(%arg0: i32) -> (i32, i32) {
    %c0_i32 = arith.constant 0 : i32
    %c0_i32_0 = arith.constant 0 : i32
    %c0_i32_1 = arith.constant 0 : i32
    return %c0_i32, %c0_i32_0 : i32, i32
  }
  func.func @transform_4(%arg0: i32) -> (i32, i32) {
    %c0_i32 = arith.constant 0 : i32
    %c0_i32_0 = arith.constant 0 : i32
    %c0_i32_1 = arith.constant 0 : i32
    return %c0_i32, %c0_i32_0 : i32, i32
  }
  func.func @transform_5(%arg0: i32) -> (i32, i32) {
    %c0_i32 = arith.constant 0 : i32
    %c0_i32_0 = arith.constant 0 : i32
    %c0_i32_1 = arith.constant 0 : i32
    return %c0_i32, %c0_i32_0 : i32, i32
  }
  func.func @transform_6(%arg0: i32) -> (i32, i32) {
    %c0_i32 = arith.constant 0 : i32
    %c0_i32_0 = arith.constant 0 : i32
    %c0_i32_1 = arith.constant 0 : i32
    return %c0_i32, %c0_i32_0 : i32, i32
  }
  func.func @transform_7(%arg0: i32) -> (i32, i32, i32) {
    %c0_i32 = arith.constant 0 : i32
    %c0_i32_0 = arith.constant 0 : i32
    %c0_i32_1 = arith.constant 0 : i32
    return %arg0, %c0_i32, %c0_i32_0 : i32, i32, i32
  }
  func.func @transform_8(%arg0: i32) -> (i32, i32, i32) {
    %c0_i32 = arith.constant 0 : i32
    %c0_i32_0 = arith.constant 0 : i32
    %c0_i32_1 = arith.constant 0 : i32
    return %arg0, %c0_i32, %c0_i32_0 : i32, i32, i32
  }
  func.func @transform_9(%arg0: i32) -> (i32, i32) {
    %c0_i32 = arith.constant 0 : i32
    %c0_i32_0 = arith.constant 0 : i32
    %c0_i32_1 = arith.constant 0 : i32
    return %c0_i32, %c0_i32_0 : i32, i32
  }
  func.func @transform_10(%arg0: i32) -> (i32, i32) {
    %c0_i32 = arith.constant 0 : i32
    %c0_i32_0 = arith.constant 0 : i32
    %c0_i32_1 = arith.constant 0 : i32
    return %c0_i32, %c0_i32_0 : i32, i32
  }
  func.func @transform_11(%arg0: i32) -> (i32, i32) {
    %c0_i32 = arith.constant 0 : i32
    %c0_i32_0 = arith.constant 0 : i32
    %c0_i32_1 = arith.constant 0 : i32
    return %c0_i32, %c0_i32_0 : i32, i32
  }
  func.func @transform_12(%arg0: i32) -> (i32, i32) {
    %c0_i32 = arith.constant 0 : i32
    %c0_i32_0 = arith.constant 0 : i32
    %c0_i32_1 = arith.constant 0 : i32
    return %c0_i32, %c0_i32_0 : i32, i32
  }
  func.func @transform_13(%arg0: i32) -> (i32, i32) {
    %c0_i32 = arith.constant 0 : i32
    %c0_i32_0 = arith.constant 0 : i32
    %c0_i32_1 = arith.constant 0 : i32
    return %c0_i32, %c0_i32_0 : i32, i32
  }
  func.func @transform_14(%arg0: i32) -> (i32, i32) {
    %c0_i32 = arith.constant 0 : i32
    %c0_i32_0 = arith.constant 0 : i32
    %c0_i32_1 = arith.constant 0 : i32
    return %c0_i32, %c0_i32_0 : i32, i32
  }
  func.func @transform_15(%arg0: i32) -> (i32, i32, i32) {
    %c0_i32 = arith.constant 0 : i32
    %c0_i32_0 = arith.constant 0 : i32
    %c0_i32_1 = arith.constant 0 : i32
    return %arg0, %c0_i32, %c0_i32_0 : i32, i32, i32
  }
  func.func @transform_16(%arg0: i32) -> (i32, i32, i32) {
    %c0_i32 = arith.constant 0 : i32
    %c0_i32_0 = arith.constant 0 : i32
    %c0_i32_1 = arith.constant 0 : i32
    return %arg0, %c0_i32, %c0_i32_0 : i32, i32, i32
  }
}

module attributes {stable_mosaic.version = 11 : i64} {
  func.func @_cond_kernel(%arg0: i32, %arg1: memref<1x8x16xf32, #tpu.memory_space<vmem>>, %arg2: memref<8x40xf32, #tpu.memory_space<vmem>>, %arg3: memref<8x1xf32, #tpu.memory_space<vmem>>, %arg4: memref<1x8x16xf32, #tpu.memory_space<vmem>>) attributes {dimension_semantics = [#tpu.dimension_semantics<parallel>], iteration_bounds = array<i64: 2>, scalar_prefetch = 0 : i64, scratch_operands = 0 : i64, tpu.core_type = #tpu.core_type<tc>, window_params = [{transform_indices = @transform_0, window_bounds = array<i64: 1, 8, 16>}, {pipeline_mode = #tpu.pipeline_mode<synchronous>, transform_indices = @transform_1, window_bounds = array<i64: 8, 40>}, {pipeline_mode = #tpu.pipeline_mode<synchronous>, transform_indices = @transform_2, window_bounds = array<i64: 8, 1>}, {transform_indices = @transform_3, window_bounds = array<i64: 1, 8, 16>}]} {
    %c0 = arith.constant 0 : index
    %c0_0 = arith.constant 0 : index
    %c0_1 = arith.constant 0 : index
    %0 = vector.load %arg1[%c0, %c0_0, %c0_1] : memref<1x8x16xf32, #tpu.memory_space<vmem>>, vector<1x8x16xf32>
    %1 = vector.shape_cast %0 : vector<1x8x16xf32> to vector<8x16xf32>
    %c0_2 = arith.constant 0 : index
    %c0_3 = arith.constant 0 : index
    %2 = vector.load %arg2[%c0_2, %c0_3] : memref<8x40xf32, #tpu.memory_space<vmem>>, vector<8x40xf32>
    %c0_4 = arith.constant 0 : index
    %c0_5 = arith.constant 0 : index
    %3 = vector.load %arg3[%c0_4, %c0_5] : memref<8x1xf32, #tpu.memory_space<vmem>>, vector<8x1xf32>
    %cst = arith.constant 0.000000e+00 : f32
    %4 = vector.broadcast %cst : f32 to vector<8x2xf32>
    %5 = tpu.concatenate %4, %1, %4 in 1 : vector<8x2xf32>, vector<8x16xf32>, vector<8x2xf32> -> vector<8x20xf32>
    %6 = vector.extract_strided_slice %5 {offsets = [0, 0], sizes = [8, 16], strides = [1, 1]} : vector<8x20xf32> to vector<8x16xf32>
    %7 = vector.extract_strided_slice %5 {offsets = [0, 1], sizes = [8, 16], strides = [1, 1]} : vector<8x20xf32> to vector<8x16xf32>
    %8 = vector.extract_strided_slice %5 {offsets = [0, 2], sizes = [8, 16], strides = [1, 1]} : vector<8x20xf32> to vector<8x16xf32>
    %9 = vector.extract_strided_slice %5 {offsets = [0, 3], sizes = [8, 16], strides = [1, 1]} : vector<8x20xf32> to vector<8x16xf32>
    %10 = vector.extract_strided_slice %5 {offsets = [0, 4], sizes = [8, 16], strides = [1, 1]} : vector<8x20xf32> to vector<8x16xf32>
    %11 = tpu.concatenate %6, %7, %8, %9, %10 in 0 : vector<8x16xf32>, vector<8x16xf32>, vector<8x16xf32>, vector<8x16xf32>, vector<8x16xf32> -> vector<40x16xf32>
    %cst_6 = arith.constant dense<0.000000e+00> : vector<8x16xf32>
    %12 = tpu.matmul %2, %11, %cst_6 {dimension_numbers = #tpu.dot_dimension_numbers<[1], [0], [0], [1], [0, 0, 1, 1], [], []>} : vector<8x40xf32>, vector<40x16xf32>, vector<8x16xf32> -> vector<8x16xf32>
    %13 = vector.broadcast %3 : vector<8x1xf32> to vector<8x16xf32>
    %14 = arith.addf %12, %13 : vector<8x16xf32>
    %15 = arith.negf %14 : vector<8x16xf32>
    %16 = math.exp %15 : vector<8x16xf32>
    %cst_7 = arith.constant 1.000000e+00 : f32
    %17 = vector.broadcast %cst_7 : f32 to vector<8x16xf32>
    %18 = arith.addf %17, %16 : vector<8x16xf32>
    %19 = arith.divf %17, %18 : vector<8x16xf32>
    %20 = arith.mulf %14, %19 : vector<8x16xf32>
    %c0_8 = arith.constant 0 : index
    %c0_9 = arith.constant 0 : index
    %c0_10 = arith.constant 0 : index
    %21 = vector.load %arg4[%c0_8, %c0_9, %c0_10] : memref<1x8x16xf32, #tpu.memory_space<vmem>>, vector<1x8x16xf32>
    %22 = vector.shape_cast %21 : vector<1x8x16xf32> to vector<8x16xf32>
    %23 = vector.shape_cast %20 : vector<8x16xf32> to vector<1x8x16xf32>
    tpu.vector_store %arg4[%c0_8, %c0_9, %c0_10], %23 {strides = array<i32>} : memref<1x8x16xf32, #tpu.memory_space<vmem>>, vector<1x8x16xf32>,
    return
  }
  func.func @transform_0(%arg0: i32) -> (i32, i32, i32) {
    %c0_i32 = arith.constant 0 : i32
    %c0_i32_0 = arith.constant 0 : i32
    %c0_i32_1 = arith.constant 0 : i32
    return %arg0, %c0_i32, %c0_i32_0 : i32, i32, i32
  }
  func.func @transform_1(%arg0: i32) -> (i32, i32) {
    %c0_i32 = arith.constant 0 : i32
    %c0_i32_0 = arith.constant 0 : i32
    %c0_i32_1 = arith.constant 0 : i32
    return %c0_i32, %c0_i32_0 : i32, i32
  }
  func.func @transform_2(%arg0: i32) -> (i32, i32) {
    %c0_i32 = arith.constant 0 : i32
    %c0_i32_0 = arith.constant 0 : i32
    %c0_i32_1 = arith.constant 0 : i32
    return %c0_i32, %c0_i32_0 : i32, i32
  }
  func.func @transform_3(%arg0: i32) -> (i32, i32, i32) {
    %c0_i32 = arith.constant 0 : i32
    %c0_i32_0 = arith.constant 0 : i32
    %c0_i32_1 = arith.constant 0 : i32
    return %arg0, %c0_i32, %c0_i32_0 : i32, i32, i32
  }
}

module attributes {stable_mosaic.version = 11 : i64} {
  func.func @_encoder_kernel(%arg0: i32, %arg1: memref<1x8x16xf32, #tpu.memory_space<vmem>>, %arg2: memref<1x8x16xf32, #tpu.memory_space<vmem>>, %arg3: memref<8x40xf32, #tpu.memory_space<vmem>>, %arg4: memref<8x40xf32, #tpu.memory_space<vmem>>, %arg5: memref<8x1xf32, #tpu.memory_space<vmem>>, %arg6: memref<8x1xf32, #tpu.memory_space<vmem>>, %arg7: memref<8x1xf32, #tpu.memory_space<vmem>>, %arg8: memref<1x8x1xf32, #tpu.memory_space<vmem>>, %arg9: memref<1x8x1xf32, #tpu.memory_space<vmem>>, %arg10: memref<8x40xf32, #tpu.memory_space<vmem>>, %arg11: memref<8x1xf32, #tpu.memory_space<vmem>>, %arg12: memref<8x1xf32, #tpu.memory_space<vmem>>, %arg13: memref<8x1xf32, #tpu.memory_space<vmem>>, %arg14: memref<16x40xf32, #tpu.memory_space<vmem>>, %arg15: memref<16x1xf32, #tpu.memory_space<vmem>>, %arg16: memref<1x8x16xf32, #tpu.memory_space<vmem>>, %arg17: memref<1x16x8xf32, #tpu.memory_space<vmem>>) attributes {dimension_semantics = [#tpu.dimension_semantics<parallel>], iteration_bounds = array<i64: 2>, scalar_prefetch = 0 : i64, scratch_operands = 0 : i64, tpu.core_type = #tpu.core_type<tc>, window_params = [{transform_indices = @transform_0, window_bounds = array<i64: 1, 8, 16>}, {transform_indices = @transform_1, window_bounds = array<i64: 1, 8, 16>}, {pipeline_mode = #tpu.pipeline_mode<synchronous>, transform_indices = @transform_2, window_bounds = array<i64: 8, 40>}, {pipeline_mode = #tpu.pipeline_mode<synchronous>, transform_indices = @transform_3, window_bounds = array<i64: 8, 40>}, {pipeline_mode = #tpu.pipeline_mode<synchronous>, transform_indices = @transform_4, window_bounds = array<i64: 8, 1>}, {pipeline_mode = #tpu.pipeline_mode<synchronous>, transform_indices = @transform_5, window_bounds = array<i64: 8, 1>}, {pipeline_mode = #tpu.pipeline_mode<synchronous>, transform_indices = @transform_6, window_bounds = array<i64: 8, 1>}, {transform_indices = @transform_7, window_bounds = array<i64: 1, 8, 1>}, {transform_indices = @transform_8, window_bounds = array<i64: 1, 8, 1>}, {pipeline_mode = #tpu.pipeline_mode<synchronous>, transform_indices = @transform_9, window_bounds = array<i64: 8, 40>}, {pipeline_mode = #tpu.pipeline_mode<synchronous>, transform_indices = @transform_10, window_bounds = array<i64: 8, 1>}, {pipeline_mode = #tpu.pipeline_mode<synchronous>, transform_indices = @transform_11, window_bounds = array<i64: 8, 1>}, {pipeline_mode = #tpu.pipeline_mode<synchronous>, transform_indices = @transform_12, window_bounds = array<i64: 8, 1>}, {pipeline_mode = #tpu.pipeline_mode<synchronous>, transform_indices = @transform_13, window_bounds = array<i64: 16, 40>}, {pipeline_mode = #tpu.pipeline_mode<synchronous>, transform_indices = @transform_14, window_bounds = array<i64: 16, 1>}, {transform_indices = @transform_15, window_bounds = array<i64: 1, 8, 16>}, {transform_indices = @transform_16, window_bounds = array<i64: 1, 16, 8>}]} {
    %c0 = arith.constant 0 : index
    %c0_0 = arith.constant 0 : index
    %c0_1 = arith.constant 0 : index
    %0 = vector.load %arg1[%c0, %c0_0, %c0_1] : memref<1x8x16xf32, #tpu.memory_space<vmem>>, vector<1x8x16xf32>
    %1 = vector.shape_cast %0 : vector<1x8x16xf32> to vector<8x16xf32>
    %c0_2 = arith.constant 0 : index
    %c0_3 = arith.constant 0 : index
    %c0_4 = arith.constant 0 : index
    %2 = vector.load %arg2[%c0_2, %c0_3, %c0_4] : memref<1x8x16xf32, #tpu.memory_space<vmem>>, vector<1x8x16xf32>
    %3 = vector.shape_cast %2 : vector<1x8x16xf32> to vector<8x16xf32>
    %c0_5 = arith.constant 0 : index
    %c0_6 = arith.constant 0 : index
    %4 = vector.load %arg3[%c0_5, %c0_6] : memref<8x40xf32, #tpu.memory_space<vmem>>, vector<8x40xf32>
    %c0_7 = arith.constant 0 : index
    %c0_8 = arith.constant 0 : index
    %5 = vector.load %arg4[%c0_7, %c0_8] : memref<8x40xf32, #tpu.memory_space<vmem>>, vector<8x40xf32>
    %c0_9 = arith.constant 0 : index
    %c0_10 = arith.constant 0 : index
    %6 = vector.load %arg5[%c0_9, %c0_10] : memref<8x1xf32, #tpu.memory_space<vmem>>, vector<8x1xf32>
    %c0_11 = arith.constant 0 : index
    %c0_12 = arith.constant 0 : index
    %7 = vector.load %arg6[%c0_11, %c0_12] : memref<8x1xf32, #tpu.memory_space<vmem>>, vector<8x1xf32>
    %c0_13 = arith.constant 0 : index
    %c0_14 = arith.constant 0 : index
    %8 = vector.load %arg7[%c0_13, %c0_14] : memref<8x1xf32, #tpu.memory_space<vmem>>, vector<8x1xf32>
    %c0_15 = arith.constant 0 : index
    %c0_16 = arith.constant 0 : index
    %c0_17 = arith.constant 0 : index
    %9 = vector.load %arg8[%c0_15, %c0_16, %c0_17] : memref<1x8x1xf32, #tpu.memory_space<vmem>>, vector<1x8x1xf32>
    %10 = vector.shape_cast %9 : vector<1x8x1xf32> to vector<8x1xf32>
    %c0_18 = arith.constant 0 : index
    %c0_19 = arith.constant 0 : index
    %c0_20 = arith.constant 0 : index
    %11 = vector.load %arg9[%c0_18, %c0_19, %c0_20] : memref<1x8x1xf32, #tpu.memory_space<vmem>>, vector<1x8x1xf32>
    %12 = vector.shape_cast %11 : vector<1x8x1xf32> to vector<8x1xf32>
    %c0_21 = arith.constant 0 : index
    %c0_22 = arith.constant 0 : index
    %13 = vector.load %arg10[%c0_21, %c0_22] : memref<8x40xf32, #tpu.memory_space<vmem>>, vector<8x40xf32>
    %c0_23 = arith.constant 0 : index
    %c0_24 = arith.constant 0 : index
    %14 = vector.load %arg11[%c0_23, %c0_24] : memref<8x1xf32, #tpu.memory_space<vmem>>, vector<8x1xf32>
    %c0_25 = arith.constant 0 : index
    %c0_26 = arith.constant 0 : index
    %15 = vector.load %arg12[%c0_25, %c0_26] : memref<8x1xf32, #tpu.memory_space<vmem>>, vector<8x1xf32>
    %c0_27 = arith.constant 0 : index
    %c0_28 = arith.constant 0 : index
    %16 = vector.load %arg13[%c0_27, %c0_28] : memref<8x1xf32, #tpu.memory_space<vmem>>, vector<8x1xf32>
    %cst = arith.constant 0.000000e+00 : f32
    %17 = vector.broadcast %cst : f32 to vector<8x2xf32>
    %18 = tpu.concatenate %17, %1, %17 in 1 : vector<8x2xf32>, vector<8x16xf32>, vector<8x2xf32> -> vector<8x20xf32>
    %19 = vector.extract_strided_slice %18 {offsets = [0, 0], sizes = [8, 16], strides = [1, 1]} : vector<8x20xf32> to vector<8x16xf32>
    %20 = vector.extract_strided_slice %18 {offsets = [0, 1], sizes = [8, 16], strides = [1, 1]} : vector<8x20xf32> to vector<8x16xf32>
    %21 = vector.extract_strided_slice %18 {offsets = [0, 2], sizes = [8, 16], strides = [1, 1]} : vector<8x20xf32> to vector<8x16xf32>
    %22 = vector.extract_strided_slice %18 {offsets = [0, 3], sizes = [8, 16], strides = [1, 1]} : vector<8x20xf32> to vector<8x16xf32>
    %23 = vector.extract_strided_slice %18 {offsets = [0, 4], sizes = [8, 16], strides = [1, 1]} : vector<8x20xf32> to vector<8x16xf32>
    %24 = tpu.concatenate %19, %20, %21, %22, %23 in 0 : vector<8x16xf32>, vector<8x16xf32>, vector<8x16xf32>, vector<8x16xf32>, vector<8x16xf32> -> vector<40x16xf32>
    %cst_29 = arith.constant dense<0.000000e+00> : vector<8x16xf32>
    %25 = tpu.matmul %4, %24, %cst_29 {dimension_numbers = #tpu.dot_dimension_numbers<[1], [0], [0], [1], [0, 0, 1, 1], [], []>} : vector<8x40xf32>, vector<40x16xf32>, vector<8x16xf32> -> vector<8x16xf32>
    %cst_30 = arith.constant 0.000000e+00 : f32
    %26 = vector.broadcast %cst_30 : f32 to vector<8x2xf32>
    %27 = tpu.concatenate %26, %3, %26 in 1 : vector<8x2xf32>, vector<8x16xf32>, vector<8x2xf32> -> vector<8x20xf32>
    %28 = vector.extract_strided_slice %27 {offsets = [0, 0], sizes = [8, 16], strides = [1, 1]} : vector<8x20xf32> to vector<8x16xf32>
    %29 = vector.extract_strided_slice %27 {offsets = [0, 1], sizes = [8, 16], strides = [1, 1]} : vector<8x20xf32> to vector<8x16xf32>
    %30 = vector.extract_strided_slice %27 {offsets = [0, 2], sizes = [8, 16], strides = [1, 1]} : vector<8x20xf32> to vector<8x16xf32>
    %31 = vector.extract_strided_slice %27 {offsets = [0, 3], sizes = [8, 16], strides = [1, 1]} : vector<8x20xf32> to vector<8x16xf32>
    %32 = vector.extract_strided_slice %27 {offsets = [0, 4], sizes = [8, 16], strides = [1, 1]} : vector<8x20xf32> to vector<8x16xf32>
    %33 = tpu.concatenate %28, %29, %30, %31, %32 in 0 : vector<8x16xf32>, vector<8x16xf32>, vector<8x16xf32>, vector<8x16xf32>, vector<8x16xf32> -> vector<40x16xf32>
    %cst_31 = arith.constant dense<0.000000e+00> : vector<8x16xf32>
    %34 = tpu.matmul %5, %33, %cst_31 {dimension_numbers = #tpu.dot_dimension_numbers<[1], [0], [0], [1], [0, 0, 1, 1], [], []>} : vector<8x40xf32>, vector<40x16xf32>, vector<8x16xf32> -> vector<8x16xf32>
    %35 = arith.addf %25, %34 : vector<8x16xf32>
    %36 = vector.broadcast %6 : vector<8x1xf32> to vector<8x16xf32>
    %37 = arith.addf %35, %36 : vector<8x16xf32>
    %cst_32 = arith.constant dense<0.000000e+00> : vector<8xf32>
    %38 = vector.multi_reduction <add>, %37, %cst_32 [1] : vector<8x16xf32> to vector<8xf32>
    %39 = vector.shape_cast %38 : vector<8xf32> to vector<8x1xf32>
    %cst_33 = arith.constant 1.600000e+01 : f32
    %40 = vector.broadcast %cst_33 : f32 to vector<8x1xf32>
    %41 = arith.divf %39, %40 : vector<8x1xf32>
    %42 = vector.broadcast %41 : vector<8x1xf32> to vector<8x16xf32>
    %43 = arith.subf %37, %42 : vector<8x16xf32>
    %44 = arith.mulf %43, %43 : vector<8x16xf32>
    %cst_34 = arith.constant dense<0.000000e+00> : vector<8xf32>
    %45 = vector.multi_reduction <add>, %44, %cst_34 [1] : vector<8x16xf32> to vector<8xf32>
    %46 = vector.shape_cast %45 : vector<8xf32> to vector<8x1xf32>
    %cst_35 = arith.constant 1.600000e+01 : f32
    %47 = vector.broadcast %cst_35 : f32 to vector<8x1xf32>
    %48 = arith.divf %46, %47 : vector<8x1xf32>
    %49 = vector.broadcast %41 : vector<8x1xf32> to vector<8x16xf32>
    %50 = arith.subf %37, %49 : vector<8x16xf32>
    %cst_36 = arith.constant 9.99999974E-6 : f32
    %51 = vector.broadcast %cst_36 : f32 to vector<8x1xf32>
    %52 = arith.addf %48, %51 : vector<8x1xf32>
    %53 = math.rsqrt %52 : vector<8x1xf32>
    %54 = vector.broadcast %53 : vector<8x1xf32> to vector<8x16xf32>
    %55 = arith.mulf %50, %54 : vector<8x16xf32>
    %56 = vector.broadcast %7 : vector<8x1xf32> to vector<8x16xf32>
    %57 = arith.mulf %55, %56 : vector<8x16xf32>
    %58 = vector.broadcast %8 : vector<8x1xf32> to vector<8x16xf32>
    %59 = arith.addf %57, %58 : vector<8x16xf32>
    %60 = arith.negf %59 : vector<8x16xf32>
    %61 = math.exp %60 : vector<8x16xf32>
    %cst_37 = arith.constant 1.000000e+00 : f32
    %62 = vector.broadcast %cst_37 : f32 to vector<8x16xf32>
    %63 = arith.addf %62, %61 : vector<8x16xf32>
    %64 = arith.divf %62, %63 : vector<8x16xf32>
    %65 = arith.mulf %59, %64 : vector<8x16xf32>
    %66 = vector.broadcast %10 : vector<8x1xf32> to vector<8x16xf32>
    %67 = arith.mulf %65, %66 : vector<8x16xf32>
    %68 = vector.broadcast %12 : vector<8x1xf32> to vector<8x16xf32>
    %69 = arith.addf %67, %68 : vector<8x16xf32>
    %70 = arith.negf %69 : vector<8x16xf32>
    %71 = math.exp %70 : vector<8x16xf32>
    %cst_38 = arith.constant 1.000000e+00 : f32
    %72 = vector.broadcast %cst_38 : f32 to vector<8x16xf32>
    %73 = arith.addf %72, %71 : vector<8x16xf32>
    %74 = arith.divf %72, %73 : vector<8x16xf32>
    %75 = arith.mulf %69, %74 : vector<8x16xf32>
    %cst_39 = arith.constant 0.000000e+00 : f32
    %76 = vector.broadcast %cst_39 : f32 to vector<8x2xf32>
    %77 = tpu.concatenate %76, %75, %76 in 1 : vector<8x2xf32>, vector<8x16xf32>, vector<8x2xf32> -> vector<8x20xf32>
    %78 = vector.extract_strided_slice %77 {offsets = [0, 0], sizes = [8, 16], strides = [1, 1]} : vector<8x20xf32> to vector<8x16xf32>
    %79 = vector.extract_strided_slice %77 {offsets = [0, 1], sizes = [8, 16], strides = [1, 1]} : vector<8x20xf32> to vector<8x16xf32>
    %80 = vector.extract_strided_slice %77 {offsets = [0, 2], sizes = [8, 16], strides = [1, 1]} : vector<8x20xf32> to vector<8x16xf32>
    %81 = vector.extract_strided_slice %77 {offsets = [0, 3], sizes = [8, 16], strides = [1, 1]} : vector<8x20xf32> to vector<8x16xf32>
    %82 = vector.extract_strided_slice %77 {offsets = [0, 4], sizes = [8, 16], strides = [1, 1]} : vector<8x20xf32> to vector<8x16xf32>
    %83 = tpu.concatenate %78, %79, %80, %81, %82 in 0 : vector<8x16xf32>, vector<8x16xf32>, vector<8x16xf32>, vector<8x16xf32>, vector<8x16xf32> -> vector<40x16xf32>
    %cst_40 = arith.constant dense<0.000000e+00> : vector<8x16xf32>
    %84 = tpu.matmul %13, %83, %cst_40 {dimension_numbers = #tpu.dot_dimension_numbers<[1], [0], [0], [1], [0, 0, 1, 1], [], []>} : vector<8x40xf32>, vector<40x16xf32>, vector<8x16xf32> -> vector<8x16xf32>
    %85 = vector.broadcast %14 : vector<8x1xf32> to vector<8x16xf32>
    %86 = arith.addf %84, %85 : vector<8x16xf32>
    %cst_41 = arith.constant dense<0.000000e+00> : vector<8xf32>
    %87 = vector.multi_reduction <add>, %86, %cst_41 [1] : vector<8x16xf32> to vector<8xf32>
    %88 = vector.shape_cast %87 : vector<8xf32> to vector<8x1xf32>
    %cst_42 = arith.constant 1.600000e+01 : f32
    %89 = vector.broadcast %cst_42 : f32 to vector<8x1xf32>
    %90 = arith.divf %88, %89 : vector<8x1xf32>
    %91 = vector.broadcast %90 : vector<8x1xf32> to vector<8x16xf32>
    %92 = arith.subf %86, %91 : vector<8x16xf32>
    %93 = arith.mulf %92, %92 : vector<8x16xf32>
    %cst_43 = arith.constant dense<0.000000e+00> : vector<8xf32>
    %94 = vector.multi_reduction <add>, %93, %cst_43 [1] : vector<8x16xf32> to vector<8xf32>
    %95 = vector.shape_cast %94 : vector<8xf32> to vector<8x1xf32>
    %cst_44 = arith.constant 1.600000e+01 : f32
    %96 = vector.broadcast %cst_44 : f32 to vector<8x1xf32>
    %97 = arith.divf %95, %96 : vector<8x1xf32>
    %98 = vector.broadcast %90 : vector<8x1xf32> to vector<8x16xf32>
    %99 = arith.subf %86, %98 : vector<8x16xf32>
    %cst_45 = arith.constant 9.99999974E-6 : f32
    %100 = vector.broadcast %cst_45 : f32 to vector<8x1xf32>
    %101 = arith.addf %97, %100 : vector<8x1xf32>
    %102 = math.rsqrt %101 : vector<8x1xf32>
    %103 = vector.broadcast %102 : vector<8x1xf32> to vector<8x16xf32>
    %104 = arith.mulf %99, %103 : vector<8x16xf32>
    %105 = vector.broadcast %15 : vector<8x1xf32> to vector<8x16xf32>
    %106 = arith.mulf %104, %105 : vector<8x16xf32>
    %107 = vector.broadcast %16 : vector<8x1xf32> to vector<8x16xf32>
    %108 = arith.addf %106, %107 : vector<8x16xf32>
    %109 = arith.negf %108 : vector<8x16xf32>
    %110 = math.exp %109 : vector<8x16xf32>
    %cst_46 = arith.constant 1.000000e+00 : f32
    %111 = vector.broadcast %cst_46 : f32 to vector<8x16xf32>
    %112 = arith.addf %111, %110 : vector<8x16xf32>
    %113 = arith.divf %111, %112 : vector<8x16xf32>
    %114 = arith.mulf %108, %113 : vector<8x16xf32>
    %115 = arith.addf %114, %1 : vector<8x16xf32>
    %c0_47 = arith.constant 0 : index
    %c0_48 = arith.constant 0 : index
    %c0_49 = arith.constant 0 : index
    %116 = vector.load %arg16[%c0_47, %c0_48, %c0_49] : memref<1x8x16xf32, #tpu.memory_space<vmem>>, vector<1x8x16xf32>
    %117 = vector.shape_cast %116 : vector<1x8x16xf32> to vector<8x16xf32>
    %118 = vector.shape_cast %115 : vector<8x16xf32> to vector<1x8x16xf32>
    tpu.vector_store %arg16[%c0_47, %c0_48, %c0_49], %118 {strides = array<i32>} : memref<1x8x16xf32, #tpu.memory_space<vmem>>, vector<1x8x16xf32>,
    %c0_50 = arith.constant 0 : index
    %c0_51 = arith.constant 0 : index
    %119 = vector.load %arg14[%c0_50, %c0_51] : memref<16x40xf32, #tpu.memory_space<vmem>>, vector<16x40xf32>
    %c0_52 = arith.constant 0 : index
    %c0_53 = arith.constant 0 : index
    %120 = vector.load %arg15[%c0_52, %c0_53] : memref<16x1xf32, #tpu.memory_space<vmem>>, vector<16x1xf32>
    %cst_54 = arith.constant 0.000000e+00 : f32
    %121 = vector.broadcast %cst_54 : f32 to vector<8x2xf32>
    %122 = tpu.concatenate %121, %115, %121 in 1 : vector<8x2xf32>, vector<8x16xf32>, vector<8x2xf32> -> vector<8x20xf32>
    %123 = vector.extract_strided_slice %122 {offsets = [0, 0], sizes = [8, 16], strides = [1, 1]} : vector<8x20xf32> to vector<8x16xf32>
    %124 = vector.extract_strided_slice %122 {offsets = [0, 1], sizes = [8, 16], strides = [1, 1]} : vector<8x20xf32> to vector<8x16xf32>
    %125 = vector.extract_strided_slice %122 {offsets = [0, 2], sizes = [8, 16], strides = [1, 1]} : vector<8x20xf32> to vector<8x16xf32>
    %126 = vector.extract_strided_slice %122 {offsets = [0, 3], sizes = [8, 16], strides = [1, 1]} : vector<8x20xf32> to vector<8x16xf32>
    %127 = vector.extract_strided_slice %122 {offsets = [0, 4], sizes = [8, 16], strides = [1, 1]} : vector<8x20xf32> to vector<8x16xf32>
    %128 = tpu.concatenate %123, %124, %125, %126, %127 in 0 : vector<8x16xf32>, vector<8x16xf32>, vector<8x16xf32>, vector<8x16xf32>, vector<8x16xf32> -> vector<40x16xf32>
    %cst_55 = arith.constant dense<0.000000e+00> : vector<16x16xf32>
    %129 = tpu.matmul %119, %128, %cst_55 {dimension_numbers = #tpu.dot_dimension_numbers<[1], [0], [0], [1], [0, 0, 1, 1], [], []>} : vector<16x40xf32>, vector<40x16xf32>, vector<16x16xf32> -> vector<16x16xf32>
    %130 = vector.broadcast %120 : vector<16x1xf32> to vector<16x16xf32>
    %131 = arith.addf %129, %130 : vector<16x16xf32>
    %132 = tpu.iota {dimensions = array<i32: 0>} : vector<16x8xi32>
    %133 = tpu.iota {dimensions = array<i32: 1>} : vector<16x8xi32>
    %c2_i32 = arith.constant 2 : i32
    %134 = vector.broadcast %c2_i32 : i32 to vector<16x8xi32>
    %135 = arith.muli %133, %134 : vector<16x8xi32>
    %136 = arith.cmpi eq, %132, %135 : vector<16x8xi32>
    %137 = arith.extui %136 : vector<16x8xi1> to vector<16x8xi32>
    %138 = arith.sitofp %137 : vector<16x8xi32> to vector<16x8xf32>
    %cst_56 = arith.constant dense<0.000000e+00> : vector<16x8xf32>
    %139 = tpu.matmul %131, %138, %cst_56 {dimension_numbers = #tpu.dot_dimension_numbers<[1], [0], [0], [1], [0, 0, 1, 1], [], []>} : vector<16x16xf32>, vector<16x8xf32>, vector<16x8xf32> -> vector<16x8xf32>
    %c0_57 = arith.constant 0 : index
    %c0_58 = arith.constant 0 : index
    %c0_59 = arith.constant 0 : index
    %140 = vector.load %arg17[%c0_57, %c0_58, %c0_59] : memref<1x16x8xf32, #tpu.memory_space<vmem>>, vector<1x16x8xf32>
    %141 = vector.shape_cast %140 : vector<1x16x8xf32> to vector<16x8xf32>
    %142 = vector.shape_cast %139 : vector<16x8xf32> to vector<1x16x8xf32>
    tpu.vector_store %arg17[%c0_57, %c0_58, %c0_59], %142 {strides = array<i32>} : memref<1x16x8xf32, #tpu.memory_space<vmem>>, vector<1x16x8xf32>,
    return
  }
  func.func @transform_0(%arg0: i32) -> (i32, i32, i32) {
    %c0_i32 = arith.constant 0 : i32
    %c0_i32_0 = arith.constant 0 : i32
    %c0_i32_1 = arith.constant 0 : i32
    return %arg0, %c0_i32, %c0_i32_0 : i32, i32, i32
  }
  func.func @transform_1(%arg0: i32) -> (i32, i32, i32) {
    %c0_i32 = arith.constant 0 : i32
    %c0_i32_0 = arith.constant 0 : i32
    %c0_i32_1 = arith.constant 0 : i32
    return %arg0, %c0_i32, %c0_i32_0 : i32, i32, i32
  }
  func.func @transform_2(%arg0: i32) -> (i32, i32) {
    %c0_i32 = arith.constant 0 : i32
    %c0_i32_0 = arith.constant 0 : i32
    %c0_i32_1 = arith.constant 0 : i32
    return %c0_i32, %c0_i32_0 : i32, i32
  }
  func.func @transform_3(%arg0: i32) -> (i32, i32) {
    %c0_i32 = arith.constant 0 : i32
    %c0_i32_0 = arith.constant 0 : i32
    %c0_i32_1 = arith.constant 0 : i32
    return %c0_i32, %c0_i32_0 : i32, i32
  }
  func.func @transform_4(%arg0: i32) -> (i32, i32) {
    %c0_i32 = arith.constant 0 : i32
    %c0_i32_0 = arith.constant 0 : i32
    %c0_i32_1 = arith.constant 0 : i32
    return %c0_i32, %c0_i32_0 : i32, i32
  }
  func.func @transform_5(%arg0: i32) -> (i32, i32) {
    %c0_i32 = arith.constant 0 : i32
    %c0_i32_0 = arith.constant 0 : i32
    %c0_i32_1 = arith.constant 0 : i32
    return %c0_i32, %c0_i32_0 : i32, i32
  }
  func.func @transform_6(%arg0: i32) -> (i32, i32) {
    %c0_i32 = arith.constant 0 : i32
    %c0_i32_0 = arith.constant 0 : i32
    %c0_i32_1 = arith.constant 0 : i32
    return %c0_i32, %c0_i32_0 : i32, i32
  }
  func.func @transform_7(%arg0: i32) -> (i32, i32, i32) {
    %c0_i32 = arith.constant 0 : i32
    %c0_i32_0 = arith.constant 0 : i32
    %c0_i32_1 = arith.constant 0 : i32
    return %arg0, %c0_i32, %c0_i32_0 : i32, i32, i32
  }
  func.func @transform_8(%arg0: i32) -> (i32, i32, i32) {
    %c0_i32 = arith.constant 0 : i32
    %c0_i32_0 = arith.constant 0 : i32
    %c0_i32_1 = arith.constant 0 : i32
    return %arg0, %c0_i32, %c0_i32_0 : i32, i32, i32
  }
  func.func @transform_9(%arg0: i32) -> (i32, i32) {
    %c0_i32 = arith.constant 0 : i32
    %c0_i32_0 = arith.constant 0 : i32
    %c0_i32_1 = arith.constant 0 : i32
    return %c0_i32, %c0_i32_0 : i32, i32
  }
  func.func @transform_10(%arg0: i32) -> (i32, i32) {
    %c0_i32 = arith.constant 0 : i32
    %c0_i32_0 = arith.constant 0 : i32
    %c0_i32_1 = arith.constant 0 : i32
    return %c0_i32, %c0_i32_0 : i32, i32
  }
  func.func @transform_11(%arg0: i32) -> (i32, i32) {
    %c0_i32 = arith.constant 0 : i32
    %c0_i32_0 = arith.constant 0 : i32
    %c0_i32_1 = arith.constant 0 : i32
    return %c0_i32, %c0_i32_0 : i32, i32
  }
  func.func @transform_12(%arg0: i32) -> (i32, i32) {
    %c0_i32 = arith.constant 0 : i32
    %c0_i32_0 = arith.constant 0 : i32
    %c0_i32_1 = arith.constant 0 : i32
    return %c0_i32, %c0_i32_0 : i32, i32
  }
  func.func @transform_13(%arg0: i32) -> (i32, i32) {
    %c0_i32 = arith.constant 0 : i32
    %c0_i32_0 = arith.constant 0 : i32
    %c0_i32_1 = arith.constant 0 : i32
    return %c0_i32, %c0_i32_0 : i32, i32
  }
  func.func @transform_14(%arg0: i32) -> (i32, i32) {
    %c0_i32 = arith.constant 0 : i32
    %c0_i32_0 = arith.constant 0 : i32
    %c0_i32_1 = arith.constant 0 : i32
    return %c0_i32, %c0_i32_0 : i32, i32
  }
  func.func @transform_15(%arg0: i32) -> (i32, i32, i32) {
    %c0_i32 = arith.constant 0 : i32
    %c0_i32_0 = arith.constant 0 : i32
    %c0_i32_1 = arith.constant 0 : i32
    return %arg0, %c0_i32, %c0_i32_0 : i32, i32, i32
  }
  func.func @transform_16(%arg0: i32) -> (i32, i32, i32) {
    %c0_i32 = arith.constant 0 : i32
    %c0_i32_0 = arith.constant 0 : i32
    %c0_i32_1 = arith.constant 0 : i32
    return %arg0, %c0_i32, %c0_i32_0 : i32, i32, i32
  }
}

module attributes {stable_mosaic.version = 11 : i64} {
  func.func @_cond_kernel(%arg0: i32, %arg1: memref<1x8x16xf32, #tpu.memory_space<vmem>>, %arg2: memref<8x40xf32, #tpu.memory_space<vmem>>, %arg3: memref<8x1xf32, #tpu.memory_space<vmem>>, %arg4: memref<1x8x8xf32, #tpu.memory_space<vmem>>) attributes {dimension_semantics = [#tpu.dimension_semantics<parallel>], iteration_bounds = array<i64: 2>, scalar_prefetch = 0 : i64, scratch_operands = 0 : i64, tpu.core_type = #tpu.core_type<tc>, window_params = [{transform_indices = @transform_0, window_bounds = array<i64: 1, 8, 16>}, {pipeline_mode = #tpu.pipeline_mode<synchronous>, transform_indices = @transform_1, window_bounds = array<i64: 8, 40>}, {pipeline_mode = #tpu.pipeline_mode<synchronous>, transform_indices = @transform_2, window_bounds = array<i64: 8, 1>}, {transform_indices = @transform_3, window_bounds = array<i64: 1, 8, 8>}]} {
    %c0 = arith.constant 0 : index
    %c0_0 = arith.constant 0 : index
    %c0_1 = arith.constant 0 : index
    %0 = vector.load %arg1[%c0, %c0_0, %c0_1] : memref<1x8x16xf32, #tpu.memory_space<vmem>>, vector<1x8x16xf32>
    %1 = vector.shape_cast %0 : vector<1x8x16xf32> to vector<8x16xf32>
    %c0_2 = arith.constant 0 : index
    %c0_3 = arith.constant 0 : index
    %2 = vector.load %arg2[%c0_2, %c0_3] : memref<8x40xf32, #tpu.memory_space<vmem>>, vector<8x40xf32>
    %c0_4 = arith.constant 0 : index
    %c0_5 = arith.constant 0 : index
    %3 = vector.load %arg3[%c0_4, %c0_5] : memref<8x1xf32, #tpu.memory_space<vmem>>, vector<8x1xf32>
    %cst = arith.constant 0.000000e+00 : f32
    %4 = vector.broadcast %cst : f32 to vector<8x2xf32>
    %5 = tpu.concatenate %4, %1, %4 in 1 : vector<8x2xf32>, vector<8x16xf32>, vector<8x2xf32> -> vector<8x20xf32>
    %6 = vector.extract_strided_slice %5 {offsets = [0, 0], sizes = [8, 16], strides = [1, 1]} : vector<8x20xf32> to vector<8x16xf32>
    %7 = vector.extract_strided_slice %5 {offsets = [0, 1], sizes = [8, 16], strides = [1, 1]} : vector<8x20xf32> to vector<8x16xf32>
    %8 = vector.extract_strided_slice %5 {offsets = [0, 2], sizes = [8, 16], strides = [1, 1]} : vector<8x20xf32> to vector<8x16xf32>
    %9 = vector.extract_strided_slice %5 {offsets = [0, 3], sizes = [8, 16], strides = [1, 1]} : vector<8x20xf32> to vector<8x16xf32>
    %10 = vector.extract_strided_slice %5 {offsets = [0, 4], sizes = [8, 16], strides = [1, 1]} : vector<8x20xf32> to vector<8x16xf32>
    %11 = tpu.concatenate %6, %7, %8, %9, %10 in 0 : vector<8x16xf32>, vector<8x16xf32>, vector<8x16xf32>, vector<8x16xf32>, vector<8x16xf32> -> vector<40x16xf32>
    %cst_6 = arith.constant dense<0.000000e+00> : vector<8x16xf32>
    %12 = tpu.matmul %2, %11, %cst_6 {dimension_numbers = #tpu.dot_dimension_numbers<[1], [0], [0], [1], [0, 0, 1, 1], [], []>} : vector<8x40xf32>, vector<40x16xf32>, vector<8x16xf32> -> vector<8x16xf32>
    %13 = vector.broadcast %3 : vector<8x1xf32> to vector<8x16xf32>
    %14 = arith.addf %12, %13 : vector<8x16xf32>
    %15 = tpu.iota {dimensions = array<i32: 0>} : vector<16x8xi32>
    %16 = tpu.iota {dimensions = array<i32: 1>} : vector<16x8xi32>
    %c2_i32 = arith.constant 2 : i32
    %17 = vector.broadcast %c2_i32 : i32 to vector<16x8xi32>
    %18 = arith.muli %16, %17 : vector<16x8xi32>
    %19 = arith.cmpi eq, %15, %18 : vector<16x8xi32>
    %20 = arith.extui %19 : vector<16x8xi1> to vector<16x8xi32>
    %21 = arith.sitofp %20 : vector<16x8xi32> to vector<16x8xf32>
    %cst_7 = arith.constant dense<0.000000e+00> : vector<8x8xf32>
    %22 = tpu.matmul %14, %21, %cst_7 {dimension_numbers = #tpu.dot_dimension_numbers<[1], [0], [0], [1], [0, 0, 1, 1], [], []>} : vector<8x16xf32>, vector<16x8xf32>, vector<8x8xf32> -> vector<8x8xf32>
    %23 = arith.negf %22 : vector<8x8xf32>
    %24 = math.exp %23 : vector<8x8xf32>
    %cst_8 = arith.constant 1.000000e+00 : f32
    %25 = vector.broadcast %cst_8 : f32 to vector<8x8xf32>
    %26 = arith.addf %25, %24 : vector<8x8xf32>
    %27 = arith.divf %25, %26 : vector<8x8xf32>
    %28 = arith.mulf %22, %27 : vector<8x8xf32>
    %c0_9 = arith.constant 0 : index
    %c0_10 = arith.constant 0 : index
    %c0_11 = arith.constant 0 : index
    %29 = vector.load %arg4[%c0_9, %c0_10, %c0_11] : memref<1x8x8xf32, #tpu.memory_space<vmem>>, vector<1x8x8xf32>
    %30 = vector.shape_cast %29 : vector<1x8x8xf32> to vector<8x8xf32>
    %31 = vector.shape_cast %28 : vector<8x8xf32> to vector<1x8x8xf32>
    tpu.vector_store %arg4[%c0_9, %c0_10, %c0_11], %31 {strides = array<i32>} : memref<1x8x8xf32, #tpu.memory_space<vmem>>, vector<1x8x8xf32>,
    return
  }
  func.func @transform_0(%arg0: i32) -> (i32, i32, i32) {
    %c0_i32 = arith.constant 0 : i32
    %c0_i32_0 = arith.constant 0 : i32
    %c0_i32_1 = arith.constant 0 : i32
    return %arg0, %c0_i32, %c0_i32_0 : i32, i32, i32
  }
  func.func @transform_1(%arg0: i32) -> (i32, i32) {
    %c0_i32 = arith.constant 0 : i32
    %c0_i32_0 = arith.constant 0 : i32
    %c0_i32_1 = arith.constant 0 : i32
    return %c0_i32, %c0_i32_0 : i32, i32
  }
  func.func @transform_2(%arg0: i32) -> (i32, i32) {
    %c0_i32 = arith.constant 0 : i32
    %c0_i32_0 = arith.constant 0 : i32
    %c0_i32_1 = arith.constant 0 : i32
    return %c0_i32, %c0_i32_0 : i32, i32
  }
  func.func @transform_3(%arg0: i32) -> (i32, i32, i32) {
    %c0_i32 = arith.constant 0 : i32
    %c0_i32_0 = arith.constant 0 : i32
    %c0_i32_1 = arith.constant 0 : i32
    return %arg0, %c0_i32, %c0_i32_0 : i32, i32, i32
  }
}

module attributes {stable_mosaic.version = 11 : i64} {
  func.func @_decoder_kernel(%arg0: i32, %arg1: memref<1x16x8xf32, #tpu.memory_space<vmem>>, %arg2: memref<1x8x16xf32, #tpu.memory_space<vmem>>, %arg3: memref<1x8x16xf32, #tpu.memory_space<vmem>>, %arg4: memref<8x48xf32, #tpu.memory_space<vmem>>, %arg5: memref<8x1xf32, #tpu.memory_space<vmem>>, %arg6: memref<8x40xf32, #tpu.memory_space<vmem>>, %arg7: memref<8x40xf32, #tpu.memory_space<vmem>>, %arg8: memref<8x40xf32, #tpu.memory_space<vmem>>, %arg9: memref<8x1xf32, #tpu.memory_space<vmem>>, %arg10: memref<8x1xf32, #tpu.memory_space<vmem>>, %arg11: memref<8x1xf32, #tpu.memory_space<vmem>>, %arg12: memref<1x8x1xf32, #tpu.memory_space<vmem>>, %arg13: memref<1x8x1xf32, #tpu.memory_space<vmem>>, %arg14: memref<8x40xf32, #tpu.memory_space<vmem>>, %arg15: memref<8x1xf32, #tpu.memory_space<vmem>>, %arg16: memref<8x1xf32, #tpu.memory_space<vmem>>, %arg17: memref<8x1xf32, #tpu.memory_space<vmem>>, %arg18: memref<8x8xf32, #tpu.memory_space<vmem>>, %arg19: memref<8x1xf32, #tpu.memory_space<vmem>>, %arg20: memref<1x8x16xf32, #tpu.memory_space<vmem>>) attributes {dimension_semantics = [#tpu.dimension_semantics<parallel>], iteration_bounds = array<i64: 2>, scalar_prefetch = 0 : i64, scratch_operands = 0 : i64, tpu.core_type = #tpu.core_type<tc>, window_params = [{transform_indices = @transform_0, window_bounds = array<i64: 1, 16, 8>}, {transform_indices = @transform_1, window_bounds = array<i64: 1, 8, 16>}, {transform_indices = @transform_2, window_bounds = array<i64: 1, 8, 16>}, {pipeline_mode = #tpu.pipeline_mode<synchronous>, transform_indices = @transform_3, window_bounds = array<i64: 8, 48>}, {pipeline_mode = #tpu.pipeline_mode<synchronous>, transform_indices = @transform_4, window_bounds = array<i64: 8, 1>}, {pipeline_mode = #tpu.pipeline_mode<synchronous>, transform_indices = @transform_5, window_bounds = array<i64: 8, 40>}, {pipeline_mode = #tpu.pipeline_mode<synchronous>, transform_indices = @transform_6, window_bounds = array<i64: 8, 40>}, {pipeline_mode = #tpu.pipeline_mode<synchronous>, transform_indices = @transform_7, window_bounds = array<i64: 8, 40>}, {pipeline_mode = #tpu.pipeline_mode<synchronous>, transform_indices = @transform_8, window_bounds = array<i64: 8, 1>}, {pipeline_mode = #tpu.pipeline_mode<synchronous>, transform_indices = @transform_9, window_bounds = array<i64: 8, 1>}, {pipeline_mode = #tpu.pipeline_mode<synchronous>, transform_indices = @transform_10, window_bounds = array<i64: 8, 1>}, {transform_indices = @transform_11, window_bounds = array<i64: 1, 8, 1>}, {transform_indices = @transform_12, window_bounds = array<i64: 1, 8, 1>}, {pipeline_mode = #tpu.pipeline_mode<synchronous>, transform_indices = @transform_13, window_bounds = array<i64: 8, 40>}, {pipeline_mode = #tpu.pipeline_mode<synchronous>, transform_indices = @transform_14, window_bounds = array<i64: 8, 1>}, {pipeline_mode = #tpu.pipeline_mode<synchronous>, transform_indices = @transform_15, window_bounds = array<i64: 8, 1>}, {pipeline_mode = #tpu.pipeline_mode<synchronous>, transform_indices = @transform_16, window_bounds = array<i64: 8, 1>}, {pipeline_mode = #tpu.pipeline_mode<synchronous>, transform_indices = @transform_17, window_bounds = array<i64: 8, 8>}, {pipeline_mode = #tpu.pipeline_mode<synchronous>, transform_indices = @transform_18, window_bounds = array<i64: 8, 1>}, {transform_indices = @transform_19, window_bounds = array<i64: 1, 8, 16>}]} {
    %c0 = arith.constant 0 : index
    %c0_0 = arith.constant 0 : index
    %c0_1 = arith.constant 0 : index
    %0 = vector.load %arg1[%c0, %c0_0, %c0_1] : memref<1x16x8xf32, #tpu.memory_space<vmem>>, vector<1x16x8xf32>
    %1 = vector.shape_cast %0 : vector<1x16x8xf32> to vector<16x8xf32>
    %2 = tpu.iota {dimensions = array<i32: 0>} : vector<8x16xi32>
    %3 = tpu.iota {dimensions = array<i32: 1>} : vector<8x16xi32>
    %c2_i32 = arith.constant 2 : i32
    %4 = vector.broadcast %c2_i32 : i32 to vector<8x16xi32>
    %5 = arith.muli %2, %4 : vector<8x16xi32>
    %6 = arith.cmpi sge, %3, %5 : vector<8x16xi32>
    %c1_i32 = arith.constant 1 : i32
    %7 = vector.broadcast %c1_i32 : i32 to vector<8x16xi32>
    %8 = arith.addi %2, %7 : vector<8x16xi32>
    %c2_i32_2 = arith.constant 2 : i32
    %9 = vector.broadcast %c2_i32_2 : i32 to vector<8x16xi32>
    %10 = arith.muli %8, %9 : vector<8x16xi32>
    %11 = arith.cmpi slt, %3, %10 : vector<8x16xi32>
    %12 = arith.andi %6, %11 : vector<8x16xi1>
    %13 = arith.extui %12 : vector<8x16xi1> to vector<8x16xi32>
    %14 = arith.sitofp %13 : vector<8x16xi32> to vector<8x16xf32>
    %cst = arith.constant dense<0.000000e+00> : vector<16x16xf32>
    %15 = tpu.matmul %1, %14, %cst {dimension_numbers = #tpu.dot_dimension_numbers<[1], [0], [0], [1], [0, 0, 1, 1], [], []>} : vector<16x8xf32>, vector<8x16xf32>, vector<16x16xf32> -> vector<16x16xf32>
    %c0_3 = arith.constant 0 : index
    %c0_4 = arith.constant 0 : index
    %16 = vector.load %arg4[%c0_3, %c0_4] : memref<8x48xf32, #tpu.memory_space<vmem>>, vector<8x48xf32>
    %c0_5 = arith.constant 0 : index
    %c0_6 = arith.constant 0 : index
    %17 = vector.load %arg5[%c0_5, %c0_6] : memref<8x1xf32, #tpu.memory_space<vmem>>, vector<8x1xf32>
    %cst_7 = arith.constant 0.000000e+00 : f32
    %18 = vector.broadcast %cst_7 : f32 to vector<16x1xf32>
    %19 = tpu.concatenate %18, %15, %18 in 1 : vector<16x1xf32>, vector<16x16xf32>, vector<16x1xf32> -> vector<16x18xf32>
    %20 = vector.extract_strided_slice %19 {offsets = [0, 0], sizes = [16, 16], strides = [1, 1]} : vector<16x18xf32> to vector<16x16xf32>
    %21 = vector.extract_strided_slice %19 {offsets = [0, 1], sizes = [16, 16], strides = [1, 1]} : vector<16x18xf32> to vector<16x16xf32>
    %22 = vector.extract_strided_slice %19 {offsets = [0, 2], sizes = [16, 16], strides = [1, 1]} : vector<16x18xf32> to vector<16x16xf32>
    %23 = tpu.concatenate %20, %21, %22 in 0 : vector<16x16xf32>, vector<16x16xf32>, vector<16x16xf32> -> vector<48x16xf32>
    %cst_8 = arith.constant dense<0.000000e+00> : vector<8x16xf32>
    %24 = tpu.matmul %16, %23, %cst_8 {dimension_numbers = #tpu.dot_dimension_numbers<[1], [0], [0], [1], [0, 0, 1, 1], [], []>} : vector<8x48xf32>, vector<48x16xf32>, vector<8x16xf32> -> vector<8x16xf32>
    %25 = vector.broadcast %17 : vector<8x1xf32> to vector<8x16xf32>
    %26 = arith.addf %24, %25 : vector<8x16xf32>
    %c0_9 = arith.constant 0 : index
    %c0_10 = arith.constant 0 : index
    %c0_11 = arith.constant 0 : index
    %27 = vector.load %arg2[%c0_9, %c0_10, %c0_11] : memref<1x8x16xf32, #tpu.memory_space<vmem>>, vector<1x8x16xf32>
    %28 = vector.shape_cast %27 : vector<1x8x16xf32> to vector<8x16xf32>
    %c0_12 = arith.constant 0 : index
    %c0_13 = arith.constant 0 : index
    %c0_14 = arith.constant 0 : index
    %29 = vector.load %arg3[%c0_12, %c0_13, %c0_14] : memref<1x8x16xf32, #tpu.memory_space<vmem>>, vector<1x8x16xf32>
    %30 = vector.shape_cast %29 : vector<1x8x16xf32> to vector<8x16xf32>
    %c0_15 = arith.constant 0 : index
    %c0_16 = arith.constant 0 : index
    %31 = vector.load %arg18[%c0_15, %c0_16] : memref<8x8xf32, #tpu.memory_space<vmem>>, vector<8x8xf32>
    %cst_17 = arith.constant dense<0.000000e+00> : vector<8x16xf32>
    %32 = tpu.matmul %31, %26, %cst_17 {dimension_numbers = #tpu.dot_dimension_numbers<[1], [0], [0], [1], [0, 0, 1, 1], [], []>} : vector<8x8xf32>, vector<8x16xf32>, vector<8x16xf32> -> vector<8x16xf32>
    %c0_18 = arith.constant 0 : index
    %c0_19 = arith.constant 0 : index
    %33 = vector.load %arg19[%c0_18, %c0_19] : memref<8x1xf32, #tpu.memory_space<vmem>>, vector<8x1xf32>
    %34 = vector.broadcast %33 : vector<8x1xf32> to vector<8x16xf32>
    %35 = arith.addf %32, %34 : vector<8x16xf32>
    %c0_20 = arith.constant 0 : index
    %c0_21 = arith.constant 0 : index
    %36 = vector.load %arg6[%c0_20, %c0_21] : memref<8x40xf32, #tpu.memory_space<vmem>>, vector<8x40xf32>
    %c0_22 = arith.constant 0 : index
    %c0_23 = arith.constant 0 : index
    %37 = vector.load %arg7[%c0_22, %c0_23] : memref<8x40xf32, #tpu.memory_space<vmem>>, vector<8x40xf32>
    %c0_24 = arith.constant 0 : index
    %c0_25 = arith.constant 0 : index
    %38 = vector.load %arg8[%c0_24, %c0_25] : memref<8x40xf32, #tpu.memory_space<vmem>>, vector<8x40xf32>
    %c0_26 = arith.constant 0 : index
    %c0_27 = arith.constant 0 : index
    %39 = vector.load %arg9[%c0_26, %c0_27] : memref<8x1xf32, #tpu.memory_space<vmem>>, vector<8x1xf32>
    %c0_28 = arith.constant 0 : index
    %c0_29 = arith.constant 0 : index
    %40 = vector.load %arg10[%c0_28, %c0_29] : memref<8x1xf32, #tpu.memory_space<vmem>>, vector<8x1xf32>
    %c0_30 = arith.constant 0 : index
    %c0_31 = arith.constant 0 : index
    %41 = vector.load %arg11[%c0_30, %c0_31] : memref<8x1xf32, #tpu.memory_space<vmem>>, vector<8x1xf32>
    %c0_32 = arith.constant 0 : index
    %c0_33 = arith.constant 0 : index
    %c0_34 = arith.constant 0 : index
    %42 = vector.load %arg12[%c0_32, %c0_33, %c0_34] : memref<1x8x1xf32, #tpu.memory_space<vmem>>, vector<1x8x1xf32>
    %43 = vector.shape_cast %42 : vector<1x8x1xf32> to vector<8x1xf32>
    %c0_35 = arith.constant 0 : index
    %c0_36 = arith.constant 0 : index
    %c0_37 = arith.constant 0 : index
    %44 = vector.load %arg13[%c0_35, %c0_36, %c0_37] : memref<1x8x1xf32, #tpu.memory_space<vmem>>, vector<1x8x1xf32>
    %45 = vector.shape_cast %44 : vector<1x8x1xf32> to vector<8x1xf32>
    %c0_38 = arith.constant 0 : index
    %c0_39 = arith.constant 0 : index
    %46 = vector.load %arg14[%c0_38, %c0_39] : memref<8x40xf32, #tpu.memory_space<vmem>>, vector<8x40xf32>
    %c0_40 = arith.constant 0 : index
    %c0_41 = arith.constant 0 : index
    %47 = vector.load %arg15[%c0_40, %c0_41] : memref<8x1xf32, #tpu.memory_space<vmem>>, vector<8x1xf32>
    %c0_42 = arith.constant 0 : index
    %c0_43 = arith.constant 0 : index
    %48 = vector.load %arg16[%c0_42, %c0_43] : memref<8x1xf32, #tpu.memory_space<vmem>>, vector<8x1xf32>
    %c0_44 = arith.constant 0 : index
    %c0_45 = arith.constant 0 : index
    %49 = vector.load %arg17[%c0_44, %c0_45] : memref<8x1xf32, #tpu.memory_space<vmem>>, vector<8x1xf32>
    %cst_46 = arith.constant 0.000000e+00 : f32
    %50 = vector.broadcast %cst_46 : f32 to vector<8x2xf32>
    %51 = tpu.concatenate %50, %26, %50 in 1 : vector<8x2xf32>, vector<8x16xf32>, vector<8x2xf32> -> vector<8x20xf32>
    %52 = vector.extract_strided_slice %51 {offsets = [0, 0], sizes = [8, 16], strides = [1, 1]} : vector<8x20xf32> to vector<8x16xf32>
    %53 = vector.extract_strided_slice %51 {offsets = [0, 1], sizes = [8, 16], strides = [1, 1]} : vector<8x20xf32> to vector<8x16xf32>
    %54 = vector.extract_strided_slice %51 {offsets = [0, 2], sizes = [8, 16], strides = [1, 1]} : vector<8x20xf32> to vector<8x16xf32>
    %55 = vector.extract_strided_slice %51 {offsets = [0, 3], sizes = [8, 16], strides = [1, 1]} : vector<8x20xf32> to vector<8x16xf32>
    %56 = vector.extract_strided_slice %51 {offsets = [0, 4], sizes = [8, 16], strides = [1, 1]} : vector<8x20xf32> to vector<8x16xf32>
    %57 = tpu.concatenate %52, %53, %54, %55, %56 in 0 : vector<8x16xf32>, vector<8x16xf32>, vector<8x16xf32>, vector<8x16xf32>, vector<8x16xf32> -> vector<40x16xf32>
    %cst_47 = arith.constant dense<0.000000e+00> : vector<8x16xf32>
    %58 = tpu.matmul %36, %57, %cst_47 {dimension_numbers = #tpu.dot_dimension_numbers<[1], [0], [0], [1], [0, 0, 1, 1], [], []>} : vector<8x40xf32>, vector<40x16xf32>, vector<8x16xf32> -> vector<8x16xf32>
    %cst_48 = arith.constant 0.000000e+00 : f32
    %59 = vector.broadcast %cst_48 : f32 to vector<8x2xf32>
    %60 = tpu.concatenate %59, %28, %59 in 1 : vector<8x2xf32>, vector<8x16xf32>, vector<8x2xf32> -> vector<8x20xf32>
    %61 = vector.extract_strided_slice %60 {offsets = [0, 0], sizes = [8, 16], strides = [1, 1]} : vector<8x20xf32> to vector<8x16xf32>
    %62 = vector.extract_strided_slice %60 {offsets = [0, 1], sizes = [8, 16], strides = [1, 1]} : vector<8x20xf32> to vector<8x16xf32>
    %63 = vector.extract_strided_slice %60 {offsets = [0, 2], sizes = [8, 16], strides = [1, 1]} : vector<8x20xf32> to vector<8x16xf32>
    %64 = vector.extract_strided_slice %60 {offsets = [0, 3], sizes = [8, 16], strides = [1, 1]} : vector<8x20xf32> to vector<8x16xf32>
    %65 = vector.extract_strided_slice %60 {offsets = [0, 4], sizes = [8, 16], strides = [1, 1]} : vector<8x20xf32> to vector<8x16xf32>
    %66 = tpu.concatenate %61, %62, %63, %64, %65 in 0 : vector<8x16xf32>, vector<8x16xf32>, vector<8x16xf32>, vector<8x16xf32>, vector<8x16xf32> -> vector<40x16xf32>
    %cst_49 = arith.constant dense<0.000000e+00> : vector<8x16xf32>
    %67 = tpu.matmul %37, %66, %cst_49 {dimension_numbers = #tpu.dot_dimension_numbers<[1], [0], [0], [1], [0, 0, 1, 1], [], []>} : vector<8x40xf32>, vector<40x16xf32>, vector<8x16xf32> -> vector<8x16xf32>
    %68 = arith.addf %58, %67 : vector<8x16xf32>
    %cst_50 = arith.constant 0.000000e+00 : f32
    %69 = vector.broadcast %cst_50 : f32 to vector<8x2xf32>
    %70 = tpu.concatenate %69, %30, %69 in 1 : vector<8x2xf32>, vector<8x16xf32>, vector<8x2xf32> -> vector<8x20xf32>
    %71 = vector.extract_strided_slice %70 {offsets = [0, 0], sizes = [8, 16], strides = [1, 1]} : vector<8x20xf32> to vector<8x16xf32>
    %72 = vector.extract_strided_slice %70 {offsets = [0, 1], sizes = [8, 16], strides = [1, 1]} : vector<8x20xf32> to vector<8x16xf32>
    %73 = vector.extract_strided_slice %70 {offsets = [0, 2], sizes = [8, 16], strides = [1, 1]} : vector<8x20xf32> to vector<8x16xf32>
    %74 = vector.extract_strided_slice %70 {offsets = [0, 3], sizes = [8, 16], strides = [1, 1]} : vector<8x20xf32> to vector<8x16xf32>
    %75 = vector.extract_strided_slice %70 {offsets = [0, 4], sizes = [8, 16], strides = [1, 1]} : vector<8x20xf32> to vector<8x16xf32>
    %76 = tpu.concatenate %71, %72, %73, %74, %75 in 0 : vector<8x16xf32>, vector<8x16xf32>, vector<8x16xf32>, vector<8x16xf32>, vector<8x16xf32> -> vector<40x16xf32>
    %cst_51 = arith.constant dense<0.000000e+00> : vector<8x16xf32>
    %77 = tpu.matmul %38, %76, %cst_51 {dimension_numbers = #tpu.dot_dimension_numbers<[1], [0], [0], [1], [0, 0, 1, 1], [], []>} : vector<8x40xf32>, vector<40x16xf32>, vector<8x16xf32> -> vector<8x16xf32>
    %78 = arith.addf %68, %77 : vector<8x16xf32>
    %79 = vector.broadcast %39 : vector<8x1xf32> to vector<8x16xf32>
    %80 = arith.addf %78, %79 : vector<8x16xf32>
    %cst_52 = arith.constant dense<0.000000e+00> : vector<8xf32>
    %81 = vector.multi_reduction <add>, %80, %cst_52 [1] : vector<8x16xf32> to vector<8xf32>
    %82 = vector.shape_cast %81 : vector<8xf32> to vector<8x1xf32>
    %cst_53 = arith.constant 1.600000e+01 : f32
    %83 = vector.broadcast %cst_53 : f32 to vector<8x1xf32>
    %84 = arith.divf %82, %83 : vector<8x1xf32>
    %85 = vector.broadcast %84 : vector<8x1xf32> to vector<8x16xf32>
    %86 = arith.subf %80, %85 : vector<8x16xf32>
    %87 = arith.mulf %86, %86 : vector<8x16xf32>
    %cst_54 = arith.constant dense<0.000000e+00> : vector<8xf32>
    %88 = vector.multi_reduction <add>, %87, %cst_54 [1] : vector<8x16xf32> to vector<8xf32>
    %89 = vector.shape_cast %88 : vector<8xf32> to vector<8x1xf32>
    %cst_55 = arith.constant 1.600000e+01 : f32
    %90 = vector.broadcast %cst_55 : f32 to vector<8x1xf32>
    %91 = arith.divf %89, %90 : vector<8x1xf32>
    %92 = vector.broadcast %84 : vector<8x1xf32> to vector<8x16xf32>
    %93 = arith.subf %80, %92 : vector<8x16xf32>
    %cst_56 = arith.constant 9.99999974E-6 : f32
    %94 = vector.broadcast %cst_56 : f32 to vector<8x1xf32>
    %95 = arith.addf %91, %94 : vector<8x1xf32>
    %96 = math.rsqrt %95 : vector<8x1xf32>
    %97 = vector.broadcast %96 : vector<8x1xf32> to vector<8x16xf32>
    %98 = arith.mulf %93, %97 : vector<8x16xf32>
    %99 = vector.broadcast %40 : vector<8x1xf32> to vector<8x16xf32>
    %100 = arith.mulf %98, %99 : vector<8x16xf32>
    %101 = vector.broadcast %41 : vector<8x1xf32> to vector<8x16xf32>
    %102 = arith.addf %100, %101 : vector<8x16xf32>
    %103 = arith.negf %102 : vector<8x16xf32>
    %104 = math.exp %103 : vector<8x16xf32>
    %cst_57 = arith.constant 1.000000e+00 : f32
    %105 = vector.broadcast %cst_57 : f32 to vector<8x16xf32>
    %106 = arith.addf %105, %104 : vector<8x16xf32>
    %107 = arith.divf %105, %106 : vector<8x16xf32>
    %108 = arith.mulf %102, %107 : vector<8x16xf32>
    %109 = vector.broadcast %43 : vector<8x1xf32> to vector<8x16xf32>
    %110 = arith.mulf %108, %109 : vector<8x16xf32>
    %111 = vector.broadcast %45 : vector<8x1xf32> to vector<8x16xf32>
    %112 = arith.addf %110, %111 : vector<8x16xf32>
    %113 = arith.negf %112 : vector<8x16xf32>
    %114 = math.exp %113 : vector<8x16xf32>
    %cst_58 = arith.constant 1.000000e+00 : f32
    %115 = vector.broadcast %cst_58 : f32 to vector<8x16xf32>
    %116 = arith.addf %115, %114 : vector<8x16xf32>
    %117 = arith.divf %115, %116 : vector<8x16xf32>
    %118 = arith.mulf %112, %117 : vector<8x16xf32>
    %cst_59 = arith.constant 0.000000e+00 : f32
    %119 = vector.broadcast %cst_59 : f32 to vector<8x2xf32>
    %120 = tpu.concatenate %119, %118, %119 in 1 : vector<8x2xf32>, vector<8x16xf32>, vector<8x2xf32> -> vector<8x20xf32>
    %121 = vector.extract_strided_slice %120 {offsets = [0, 0], sizes = [8, 16], strides = [1, 1]} : vector<8x20xf32> to vector<8x16xf32>
    %122 = vector.extract_strided_slice %120 {offsets = [0, 1], sizes = [8, 16], strides = [1, 1]} : vector<8x20xf32> to vector<8x16xf32>
    %123 = vector.extract_strided_slice %120 {offsets = [0, 2], sizes = [8, 16], strides = [1, 1]} : vector<8x20xf32> to vector<8x16xf32>
    %124 = vector.extract_strided_slice %120 {offsets = [0, 3], sizes = [8, 16], strides = [1, 1]} : vector<8x20xf32> to vector<8x16xf32>
    %125 = vector.extract_strided_slice %120 {offsets = [0, 4], sizes = [8, 16], strides = [1, 1]} : vector<8x20xf32> to vector<8x16xf32>
    %126 = tpu.concatenate %121, %122, %123, %124, %125 in 0 : vector<8x16xf32>, vector<8x16xf32>, vector<8x16xf32>, vector<8x16xf32>, vector<8x16xf32> -> vector<40x16xf32>
    %cst_60 = arith.constant dense<0.000000e+00> : vector<8x16xf32>
    %127 = tpu.matmul %46, %126, %cst_60 {dimension_numbers = #tpu.dot_dimension_numbers<[1], [0], [0], [1], [0, 0, 1, 1], [], []>} : vector<8x40xf32>, vector<40x16xf32>, vector<8x16xf32> -> vector<8x16xf32>
    %128 = vector.broadcast %47 : vector<8x1xf32> to vector<8x16xf32>
    %129 = arith.addf %127, %128 : vector<8x16xf32>
    %cst_61 = arith.constant dense<0.000000e+00> : vector<8xf32>
    %130 = vector.multi_reduction <add>, %129, %cst_61 [1] : vector<8x16xf32> to vector<8xf32>
    %131 = vector.shape_cast %130 : vector<8xf32> to vector<8x1xf32>
    %cst_62 = arith.constant 1.600000e+01 : f32
    %132 = vector.broadcast %cst_62 : f32 to vector<8x1xf32>
    %133 = arith.divf %131, %132 : vector<8x1xf32>
    %134 = vector.broadcast %133 : vector<8x1xf32> to vector<8x16xf32>
    %135 = arith.subf %129, %134 : vector<8x16xf32>
    %136 = arith.mulf %135, %135 : vector<8x16xf32>
    %cst_63 = arith.constant dense<0.000000e+00> : vector<8xf32>
    %137 = vector.multi_reduction <add>, %136, %cst_63 [1] : vector<8x16xf32> to vector<8xf32>
    %138 = vector.shape_cast %137 : vector<8xf32> to vector<8x1xf32>
    %cst_64 = arith.constant 1.600000e+01 : f32
    %139 = vector.broadcast %cst_64 : f32 to vector<8x1xf32>
    %140 = arith.divf %138, %139 : vector<8x1xf32>
    %141 = vector.broadcast %133 : vector<8x1xf32> to vector<8x16xf32>
    %142 = arith.subf %129, %141 : vector<8x16xf32>
    %cst_65 = arith.constant 9.99999974E-6 : f32
    %143 = vector.broadcast %cst_65 : f32 to vector<8x1xf32>
    %144 = arith.addf %140, %143 : vector<8x1xf32>
    %145 = math.rsqrt %144 : vector<8x1xf32>
    %146 = vector.broadcast %145 : vector<8x1xf32> to vector<8x16xf32>
    %147 = arith.mulf %142, %146 : vector<8x16xf32>
    %148 = vector.broadcast %48 : vector<8x1xf32> to vector<8x16xf32>
    %149 = arith.mulf %147, %148 : vector<8x16xf32>
    %150 = vector.broadcast %49 : vector<8x1xf32> to vector<8x16xf32>
    %151 = arith.addf %149, %150 : vector<8x16xf32>
    %152 = arith.negf %151 : vector<8x16xf32>
    %153 = math.exp %152 : vector<8x16xf32>
    %cst_66 = arith.constant 1.000000e+00 : f32
    %154 = vector.broadcast %cst_66 : f32 to vector<8x16xf32>
    %155 = arith.addf %154, %153 : vector<8x16xf32>
    %156 = arith.divf %154, %155 : vector<8x16xf32>
    %157 = arith.mulf %151, %156 : vector<8x16xf32>
    %158 = arith.addf %157, %35 : vector<8x16xf32>
    %c0_67 = arith.constant 0 : index
    %c0_68 = arith.constant 0 : index
    %c0_69 = arith.constant 0 : index
    %159 = vector.load %arg20[%c0_67, %c0_68, %c0_69] : memref<1x8x16xf32, #tpu.memory_space<vmem>>, vector<1x8x16xf32>
    %160 = vector.shape_cast %159 : vector<1x8x16xf32> to vector<8x16xf32>
    %161 = vector.shape_cast %158 : vector<8x16xf32> to vector<1x8x16xf32>
    tpu.vector_store %arg20[%c0_67, %c0_68, %c0_69], %161 {strides = array<i32>} : memref<1x8x16xf32, #tpu.memory_space<vmem>>, vector<1x8x16xf32>,
    return
  }
  func.func @transform_0(%arg0: i32) -> (i32, i32, i32) {
    %c0_i32 = arith.constant 0 : i32
    %c0_i32_0 = arith.constant 0 : i32
    %c0_i32_1 = arith.constant 0 : i32
    return %arg0, %c0_i32, %c0_i32_0 : i32, i32, i32
  }
  func.func @transform_1(%arg0: i32) -> (i32, i32, i32) {
    %c0_i32 = arith.constant 0 : i32
    %c0_i32_0 = arith.constant 0 : i32
    %c0_i32_1 = arith.constant 0 : i32
    return %arg0, %c0_i32, %c0_i32_0 : i32, i32, i32
  }
  func.func @transform_2(%arg0: i32) -> (i32, i32, i32) {
    %c0_i32 = arith.constant 0 : i32
    %c0_i32_0 = arith.constant 0 : i32
    %c0_i32_1 = arith.constant 0 : i32
    return %arg0, %c0_i32, %c0_i32_0 : i32, i32, i32
  }
  func.func @transform_3(%arg0: i32) -> (i32, i32) {
    %c0_i32 = arith.constant 0 : i32
    %c0_i32_0 = arith.constant 0 : i32
    %c0_i32_1 = arith.constant 0 : i32
    return %c0_i32, %c0_i32_0 : i32, i32
  }
  func.func @transform_4(%arg0: i32) -> (i32, i32) {
    %c0_i32 = arith.constant 0 : i32
    %c0_i32_0 = arith.constant 0 : i32
    %c0_i32_1 = arith.constant 0 : i32
    return %c0_i32, %c0_i32_0 : i32, i32
  }
  func.func @transform_5(%arg0: i32) -> (i32, i32) {
    %c0_i32 = arith.constant 0 : i32
    %c0_i32_0 = arith.constant 0 : i32
    %c0_i32_1 = arith.constant 0 : i32
    return %c0_i32, %c0_i32_0 : i32, i32
  }
  func.func @transform_6(%arg0: i32) -> (i32, i32) {
    %c0_i32 = arith.constant 0 : i32
    %c0_i32_0 = arith.constant 0 : i32
    %c0_i32_1 = arith.constant 0 : i32
    return %c0_i32, %c0_i32_0 : i32, i32
  }
  func.func @transform_7(%arg0: i32) -> (i32, i32) {
    %c0_i32 = arith.constant 0 : i32
    %c0_i32_0 = arith.constant 0 : i32
    %c0_i32_1 = arith.constant 0 : i32
    return %c0_i32, %c0_i32_0 : i32, i32
  }
  func.func @transform_8(%arg0: i32) -> (i32, i32) {
    %c0_i32 = arith.constant 0 : i32
    %c0_i32_0 = arith.constant 0 : i32
    %c0_i32_1 = arith.constant 0 : i32
    return %c0_i32, %c0_i32_0 : i32, i32
  }
  func.func @transform_9(%arg0: i32) -> (i32, i32) {
    %c0_i32 = arith.constant 0 : i32
    %c0_i32_0 = arith.constant 0 : i32
    %c0_i32_1 = arith.constant 0 : i32
    return %c0_i32, %c0_i32_0 : i32, i32
  }
  func.func @transform_10(%arg0: i32) -> (i32, i32) {
    %c0_i32 = arith.constant 0 : i32
    %c0_i32_0 = arith.constant 0 : i32
    %c0_i32_1 = arith.constant 0 : i32
    return %c0_i32, %c0_i32_0 : i32, i32
  }
  func.func @transform_11(%arg0: i32) -> (i32, i32, i32) {
    %c0_i32 = arith.constant 0 : i32
    %c0_i32_0 = arith.constant 0 : i32
    %c0_i32_1 = arith.constant 0 : i32
    return %arg0, %c0_i32, %c0_i32_0 : i32, i32, i32
  }
  func.func @transform_12(%arg0: i32) -> (i32, i32, i32) {
    %c0_i32 = arith.constant 0 : i32
    %c0_i32_0 = arith.constant 0 : i32
    %c0_i32_1 = arith.constant 0 : i32
    return %arg0, %c0_i32, %c0_i32_0 : i32, i32, i32
  }
  func.func @transform_13(%arg0: i32) -> (i32, i32) {
    %c0_i32 = arith.constant 0 : i32
    %c0_i32_0 = arith.constant 0 : i32
    %c0_i32_1 = arith.constant 0 : i32
    return %c0_i32, %c0_i32_0 : i32, i32
  }
  func.func @transform_14(%arg0: i32) -> (i32, i32) {
    %c0_i32 = arith.constant 0 : i32
    %c0_i32_0 = arith.constant 0 : i32
    %c0_i32_1 = arith.constant 0 : i32
    return %c0_i32, %c0_i32_0 : i32, i32
  }
  func.func @transform_15(%arg0: i32) -> (i32, i32) {
    %c0_i32 = arith.constant 0 : i32
    %c0_i32_0 = arith.constant 0 : i32
    %c0_i32_1 = arith.constant 0 : i32
    return %c0_i32, %c0_i32_0 : i32, i32
  }
  func.func @transform_16(%arg0: i32) -> (i32, i32) {
    %c0_i32 = arith.constant 0 : i32
    %c0_i32_0 = arith.constant 0 : i32
    %c0_i32_1 = arith.constant 0 : i32
    return %c0_i32, %c0_i32_0 : i32, i32
  }
  func.func @transform_17(%arg0: i32) -> (i32, i32) {
    %c0_i32 = arith.constant 0 : i32
    %c0_i32_0 = arith.constant 0 : i32
    %c0_i32_1 = arith.constant 0 : i32
    return %c0_i32, %c0_i32_0 : i32, i32
  }
  func.func @transform_18(%arg0: i32) -> (i32, i32) {
    %c0_i32 = arith.constant 0 : i32
    %c0_i32_0 = arith.constant 0 : i32
    %c0_i32_1 = arith.constant 0 : i32
    return %c0_i32, %c0_i32_0 : i32, i32
  }
  func.func @transform_19(%arg0: i32) -> (i32, i32, i32) {
    %c0_i32 = arith.constant 0 : i32
    %c0_i32_0 = arith.constant 0 : i32
    %c0_i32_1 = arith.constant 0 : i32
    return %arg0, %c0_i32, %c0_i32_0 : i32, i32, i32
  }
}

module attributes {stable_mosaic.version = 11 : i64} {
  func.func @_middle_kernel(%arg0: i32, %arg1: memref<1x16x8xf32, #tpu.memory_space<vmem>>, %arg2: memref<1x8x8xf32, #tpu.memory_space<vmem>>, %arg3: memref<16x80xf32, #tpu.memory_space<vmem>>, %arg4: memref<16x40xf32, #tpu.memory_space<vmem>>, %arg5: memref<16x1xf32, #tpu.memory_space<vmem>>, %arg6: memref<16x1xf32, #tpu.memory_space<vmem>>, %arg7: memref<16x1xf32, #tpu.memory_space<vmem>>, %arg8: memref<1x16x1xf32, #tpu.memory_space<vmem>>, %arg9: memref<1x16x1xf32, #tpu.memory_space<vmem>>, %arg10: memref<16x80xf32, #tpu.memory_space<vmem>>, %arg11: memref<16x1xf32, #tpu.memory_space<vmem>>, %arg12: memref<16x1xf32, #tpu.memory_space<vmem>>, %arg13: memref<16x1xf32, #tpu.memory_space<vmem>>, %arg14: memref<1x16x8xf32, #tpu.memory_space<vmem>>) attributes {dimension_semantics = [#tpu.dimension_semantics<parallel>], iteration_bounds = array<i64: 2>, scalar_prefetch = 0 : i64, scratch_operands = 0 : i64, tpu.core_type = #tpu.core_type<tc>, window_params = [{transform_indices = @transform_0, window_bounds = array<i64: 1, 16, 8>}, {transform_indices = @transform_1, window_bounds = array<i64: 1, 8, 8>}, {pipeline_mode = #tpu.pipeline_mode<synchronous>, transform_indices = @transform_2, window_bounds = array<i64: 16, 80>}, {pipeline_mode = #tpu.pipeline_mode<synchronous>, transform_indices = @transform_3, window_bounds = array<i64: 16, 40>}, {pipeline_mode = #tpu.pipeline_mode<synchronous>, transform_indices = @transform_4, window_bounds = array<i64: 16, 1>}, {pipeline_mode = #tpu.pipeline_mode<synchronous>, transform_indices = @transform_5, window_bounds = array<i64: 16, 1>}, {pipeline_mode = #tpu.pipeline_mode<synchronous>, transform_indices = @transform_6, window_bounds = array<i64: 16, 1>}, {transform_indices = @transform_7, window_bounds = array<i64: 1, 16, 1>}, {transform_indices = @transform_8, window_bounds = array<i64: 1, 16, 1>}, {pipeline_mode = #tpu.pipeline_mode<synchronous>, transform_indices = @transform_9, window_bounds = array<i64: 16, 80>}, {pipeline_mode = #tpu.pipeline_mode<synchronous>, transform_indices = @transform_10, window_bounds = array<i64: 16, 1>}, {pipeline_mode = #tpu.pipeline_mode<synchronous>, transform_indices = @transform_11, window_bounds = array<i64: 16, 1>}, {pipeline_mode = #tpu.pipeline_mode<synchronous>, transform_indices = @transform_12, window_bounds = array<i64: 16, 1>}, {transform_indices = @transform_13, window_bounds = array<i64: 1, 16, 8>}]} {
    %c0 = arith.constant 0 : index
    %c0_0 = arith.constant 0 : index
    %c0_1 = arith.constant 0 : index
    %0 = vector.load %arg1[%c0, %c0_0, %c0_1] : memref<1x16x8xf32, #tpu.memory_space<vmem>>, vector<1x16x8xf32>
    %1 = vector.shape_cast %0 : vector<1x16x8xf32> to vector<16x8xf32>
    %c0_2 = arith.constant 0 : index
    %c0_3 = arith.constant 0 : index
    %c0_4 = arith.constant 0 : index
    %2 = vector.load %arg2[%c0_2, %c0_3, %c0_4] : memref<1x8x8xf32, #tpu.memory_space<vmem>>, vector<1x8x8xf32>
    %3 = vector.shape_cast %2 : vector<1x8x8xf32> to vector<8x8xf32>
    %c0_5 = arith.constant 0 : index
    %c0_6 = arith.constant 0 : index
    %4 = vector.load %arg3[%c0_5, %c0_6] : memref<16x80xf32, #tpu.memory_space<vmem>>, vector<16x80xf32>
    %c0_7 = arith.constant 0 : index
    %c0_8 = arith.constant 0 : index
    %5 = vector.load %arg4[%c0_7, %c0_8] : memref<16x40xf32, #tpu.memory_space<vmem>>, vector<16x40xf32>
    %c0_9 = arith.constant 0 : index
    %c0_10 = arith.constant 0 : index
    %6 = vector.load %arg5[%c0_9, %c0_10] : memref<16x1xf32, #tpu.memory_space<vmem>>, vector<16x1xf32>
    %c0_11 = arith.constant 0 : index
    %c0_12 = arith.constant 0 : index
    %7 = vector.load %arg6[%c0_11, %c0_12] : memref<16x1xf32, #tpu.memory_space<vmem>>, vector<16x1xf32>
    %c0_13 = arith.constant 0 : index
    %c0_14 = arith.constant 0 : index
    %8 = vector.load %arg7[%c0_13, %c0_14] : memref<16x1xf32, #tpu.memory_space<vmem>>, vector<16x1xf32>
    %c0_15 = arith.constant 0 : index
    %c0_16 = arith.constant 0 : index
    %c0_17 = arith.constant 0 : index
    %9 = vector.load %arg8[%c0_15, %c0_16, %c0_17] : memref<1x16x1xf32, #tpu.memory_space<vmem>>, vector<1x16x1xf32>
    %10 = vector.shape_cast %9 : vector<1x16x1xf32> to vector<16x1xf32>
    %c0_18 = arith.constant 0 : index
    %c0_19 = arith.constant 0 : index
    %c0_20 = arith.constant 0 : index
    %11 = vector.load %arg9[%c0_18, %c0_19, %c0_20] : memref<1x16x1xf32, #tpu.memory_space<vmem>>, vector<1x16x1xf32>
    %12 = vector.shape_cast %11 : vector<1x16x1xf32> to vector<16x1xf32>
    %c0_21 = arith.constant 0 : index
    %c0_22 = arith.constant 0 : index
    %13 = vector.load %arg10[%c0_21, %c0_22] : memref<16x80xf32, #tpu.memory_space<vmem>>, vector<16x80xf32>
    %c0_23 = arith.constant 0 : index
    %c0_24 = arith.constant 0 : index
    %14 = vector.load %arg11[%c0_23, %c0_24] : memref<16x1xf32, #tpu.memory_space<vmem>>, vector<16x1xf32>
    %c0_25 = arith.constant 0 : index
    %c0_26 = arith.constant 0 : index
    %15 = vector.load %arg12[%c0_25, %c0_26] : memref<16x1xf32, #tpu.memory_space<vmem>>, vector<16x1xf32>
    %c0_27 = arith.constant 0 : index
    %c0_28 = arith.constant 0 : index
    %16 = vector.load %arg13[%c0_27, %c0_28] : memref<16x1xf32, #tpu.memory_space<vmem>>, vector<16x1xf32>
    %cst = arith.constant 0.000000e+00 : f32
    %17 = vector.broadcast %cst : f32 to vector<16x2xf32>
    %18 = tpu.concatenate %17, %1, %17 in 1 : vector<16x2xf32>, vector<16x8xf32>, vector<16x2xf32> -> vector<16x12xf32>
    %19 = vector.extract_strided_slice %18 {offsets = [0, 0], sizes = [16, 8], strides = [1, 1]} : vector<16x12xf32> to vector<16x8xf32>
    %20 = vector.extract_strided_slice %18 {offsets = [0, 1], sizes = [16, 8], strides = [1, 1]} : vector<16x12xf32> to vector<16x8xf32>
    %21 = vector.extract_strided_slice %18 {offsets = [0, 2], sizes = [16, 8], strides = [1, 1]} : vector<16x12xf32> to vector<16x8xf32>
    %22 = vector.extract_strided_slice %18 {offsets = [0, 3], sizes = [16, 8], strides = [1, 1]} : vector<16x12xf32> to vector<16x8xf32>
    %23 = vector.extract_strided_slice %18 {offsets = [0, 4], sizes = [16, 8], strides = [1, 1]} : vector<16x12xf32> to vector<16x8xf32>
    %24 = tpu.concatenate %19, %20, %21, %22, %23 in 0 : vector<16x8xf32>, vector<16x8xf32>, vector<16x8xf32>, vector<16x8xf32>, vector<16x8xf32> -> vector<80x8xf32>
    %cst_29 = arith.constant dense<0.000000e+00> : vector<16x8xf32>
    %25 = tpu.matmul %4, %24, %cst_29 {dimension_numbers = #tpu.dot_dimension_numbers<[1], [0], [0], [1], [0, 0, 1, 1], [], []>} : vector<16x80xf32>, vector<80x8xf32>, vector<16x8xf32> -> vector<16x8xf32>
    %cst_30 = arith.constant 0.000000e+00 : f32
    %26 = vector.broadcast %cst_30 : f32 to vector<8x2xf32>
    %27 = tpu.concatenate %26, %3, %26 in 1 : vector<8x2xf32>, vector<8x8xf32>, vector<8x2xf32> -> vector<8x12xf32>
    %28 = vector.extract_strided_slice %27 {offsets = [0, 0], sizes = [8, 8], strides = [1, 1]} : vector<8x12xf32> to vector<8x8xf32>
    %29 = vector.extract_strided_slice %27 {offsets = [0, 1], sizes = [8, 8], strides = [1, 1]} : vector<8x12xf32> to vector<8x8xf32>
    %30 = vector.extract_strided_slice %27 {offsets = [0, 2], sizes = [8, 8], strides = [1, 1]} : vector<8x12xf32> to vector<8x8xf32>
    %31 = vector.extract_strided_slice %27 {offsets = [0, 3], sizes = [8, 8], strides = [1, 1]} : vector<8x12xf32> to vector<8x8xf32>
    %32 = vector.extract_strided_slice %27 {offsets = [0, 4], sizes = [8, 8], strides = [1, 1]} : vector<8x12xf32> to vector<8x8xf32>
    %33 = tpu.concatenate %28, %29, %30, %31, %32 in 0 : vector<8x8xf32>, vector<8x8xf32>, vector<8x8xf32>, vector<8x8xf32>, vector<8x8xf32> -> vector<40x8xf32>
    %cst_31 = arith.constant dense<0.000000e+00> : vector<16x8xf32>
    %34 = tpu.matmul %5, %33, %cst_31 {dimension_numbers = #tpu.dot_dimension_numbers<[1], [0], [0], [1], [0, 0, 1, 1], [], []>} : vector<16x40xf32>, vector<40x8xf32>, vector<16x8xf32> -> vector<16x8xf32>
    %35 = arith.addf %25, %34 : vector<16x8xf32>
    %36 = vector.broadcast %6 : vector<16x1xf32> to vector<16x8xf32>
    %37 = arith.addf %35, %36 : vector<16x8xf32>
    %cst_32 = arith.constant dense<0.000000e+00> : vector<16xf32>
    %38 = vector.multi_reduction <add>, %37, %cst_32 [1] : vector<16x8xf32> to vector<16xf32>
    %39 = vector.shape_cast %38 : vector<16xf32> to vector<16x1xf32>
    %cst_33 = arith.constant 8.000000e+00 : f32
    %40 = vector.broadcast %cst_33 : f32 to vector<16x1xf32>
    %41 = arith.divf %39, %40 : vector<16x1xf32>
    %42 = vector.broadcast %41 : vector<16x1xf32> to vector<16x8xf32>
    %43 = arith.subf %37, %42 : vector<16x8xf32>
    %44 = arith.mulf %43, %43 : vector<16x8xf32>
    %cst_34 = arith.constant dense<0.000000e+00> : vector<16xf32>
    %45 = vector.multi_reduction <add>, %44, %cst_34 [1] : vector<16x8xf32> to vector<16xf32>
    %46 = vector.shape_cast %45 : vector<16xf32> to vector<16x1xf32>
    %cst_35 = arith.constant 8.000000e+00 : f32
    %47 = vector.broadcast %cst_35 : f32 to vector<16x1xf32>
    %48 = arith.divf %46, %47 : vector<16x1xf32>
    %49 = vector.broadcast %41 : vector<16x1xf32> to vector<16x8xf32>
    %50 = arith.subf %37, %49 : vector<16x8xf32>
    %cst_36 = arith.constant 9.99999974E-6 : f32
    %51 = vector.broadcast %cst_36 : f32 to vector<16x1xf32>
    %52 = arith.addf %48, %51 : vector<16x1xf32>
    %53 = math.rsqrt %52 : vector<16x1xf32>
    %54 = vector.broadcast %53 : vector<16x1xf32> to vector<16x8xf32>
    %55 = arith.mulf %50, %54 : vector<16x8xf32>
    %56 = vector.broadcast %7 : vector<16x1xf32> to vector<16x8xf32>
    %57 = arith.mulf %55, %56 : vector<16x8xf32>
    %58 = vector.broadcast %8 : vector<16x1xf32> to vector<16x8xf32>
    %59 = arith.addf %57, %58 : vector<16x8xf32>
    %60 = arith.negf %59 : vector<16x8xf32>
    %61 = math.exp %60 : vector<16x8xf32>
    %cst_37 = arith.constant 1.000000e+00 : f32
    %62 = vector.broadcast %cst_37 : f32 to vector<16x8xf32>
    %63 = arith.addf %62, %61 : vector<16x8xf32>
    %64 = arith.divf %62, %63 : vector<16x8xf32>
    %65 = arith.mulf %59, %64 : vector<16x8xf32>
    %66 = vector.broadcast %10 : vector<16x1xf32> to vector<16x8xf32>
    %67 = arith.mulf %65, %66 : vector<16x8xf32>
    %68 = vector.broadcast %12 : vector<16x1xf32> to vector<16x8xf32>
    %69 = arith.addf %67, %68 : vector<16x8xf32>
    %70 = arith.negf %69 : vector<16x8xf32>
    %71 = math.exp %70 : vector<16x8xf32>
    %cst_38 = arith.constant 1.000000e+00 : f32
    %72 = vector.broadcast %cst_38 : f32 to vector<16x8xf32>
    %73 = arith.addf %72, %71 : vector<16x8xf32>
    %74 = arith.divf %72, %73 : vector<16x8xf32>
    %75 = arith.mulf %69, %74 : vector<16x8xf32>
    %cst_39 = arith.constant 0.000000e+00 : f32
    %76 = vector.broadcast %cst_39 : f32 to vector<16x2xf32>
    %77 = tpu.concatenate %76, %75, %76 in 1 : vector<16x2xf32>, vector<16x8xf32>, vector<16x2xf32> -> vector<16x12xf32>
    %78 = vector.extract_strided_slice %77 {offsets = [0, 0], sizes = [16, 8], strides = [1, 1]} : vector<16x12xf32> to vector<16x8xf32>
    %79 = vector.extract_strided_slice %77 {offsets = [0, 1], sizes = [16, 8], strides = [1, 1]} : vector<16x12xf32> to vector<16x8xf32>
    %80 = vector.extract_strided_slice %77 {offsets = [0, 2], sizes = [16, 8], strides = [1, 1]} : vector<16x12xf32> to vector<16x8xf32>
    %81 = vector.extract_strided_slice %77 {offsets = [0, 3], sizes = [16, 8], strides = [1, 1]} : vector<16x12xf32> to vector<16x8xf32>
    %82 = vector.extract_strided_slice %77 {offsets = [0, 4], sizes = [16, 8], strides = [1, 1]} : vector<16x12xf32> to vector<16x8xf32>
    %83 = tpu.concatenate %78, %79, %80, %81, %82 in 0 : vector<16x8xf32>, vector<16x8xf32>, vector<16x8xf32>, vector<16x8xf32>, vector<16x8xf32> -> vector<80x8xf32>
    %cst_40 = arith.constant dense<0.000000e+00> : vector<16x8xf32>
    %84 = tpu.matmul %13, %83, %cst_40 {dimension_numbers = #tpu.dot_dimension_numbers<[1], [0], [0], [1], [0, 0, 1, 1], [], []>} : vector<16x80xf32>, vector<80x8xf32>, vector<16x8xf32> -> vector<16x8xf32>
    %85 = vector.broadcast %14 : vector<16x1xf32> to vector<16x8xf32>
    %86 = arith.addf %84, %85 : vector<16x8xf32>
    %cst_41 = arith.constant dense<0.000000e+00> : vector<16xf32>
    %87 = vector.multi_reduction <add>, %86, %cst_41 [1] : vector<16x8xf32> to vector<16xf32>
    %88 = vector.shape_cast %87 : vector<16xf32> to vector<16x1xf32>
    %cst_42 = arith.constant 8.000000e+00 : f32
    %89 = vector.broadcast %cst_42 : f32 to vector<16x1xf32>
    %90 = arith.divf %88, %89 : vector<16x1xf32>
    %91 = vector.broadcast %90 : vector<16x1xf32> to vector<16x8xf32>
    %92 = arith.subf %86, %91 : vector<16x8xf32>
    %93 = arith.mulf %92, %92 : vector<16x8xf32>
    %cst_43 = arith.constant dense<0.000000e+00> : vector<16xf32>
    %94 = vector.multi_reduction <add>, %93, %cst_43 [1] : vector<16x8xf32> to vector<16xf32>
    %95 = vector.shape_cast %94 : vector<16xf32> to vector<16x1xf32>
    %cst_44 = arith.constant 8.000000e+00 : f32
    %96 = vector.broadcast %cst_44 : f32 to vector<16x1xf32>
    %97 = arith.divf %95, %96 : vector<16x1xf32>
    %98 = vector.broadcast %90 : vector<16x1xf32> to vector<16x8xf32>
    %99 = arith.subf %86, %98 : vector<16x8xf32>
    %cst_45 = arith.constant 9.99999974E-6 : f32
    %100 = vector.broadcast %cst_45 : f32 to vector<16x1xf32>
    %101 = arith.addf %97, %100 : vector<16x1xf32>
    %102 = math.rsqrt %101 : vector<16x1xf32>
    %103 = vector.broadcast %102 : vector<16x1xf32> to vector<16x8xf32>
    %104 = arith.mulf %99, %103 : vector<16x8xf32>
    %105 = vector.broadcast %15 : vector<16x1xf32> to vector<16x8xf32>
    %106 = arith.mulf %104, %105 : vector<16x8xf32>
    %107 = vector.broadcast %16 : vector<16x1xf32> to vector<16x8xf32>
    %108 = arith.addf %106, %107 : vector<16x8xf32>
    %109 = arith.negf %108 : vector<16x8xf32>
    %110 = math.exp %109 : vector<16x8xf32>
    %cst_46 = arith.constant 1.000000e+00 : f32
    %111 = vector.broadcast %cst_46 : f32 to vector<16x8xf32>
    %112 = arith.addf %111, %110 : vector<16x8xf32>
    %113 = arith.divf %111, %112 : vector<16x8xf32>
    %114 = arith.mulf %108, %113 : vector<16x8xf32>
    %115 = arith.addf %114, %1 : vector<16x8xf32>
    %c0_47 = arith.constant 0 : index
    %c0_48 = arith.constant 0 : index
    %c0_49 = arith.constant 0 : index
    %116 = vector.load %arg14[%c0_47, %c0_48, %c0_49] : memref<1x16x8xf32, #tpu.memory_space<vmem>>, vector<1x16x8xf32>
    %117 = vector.shape_cast %116 : vector<1x16x8xf32> to vector<16x8xf32>
    %118 = vector.shape_cast %115 : vector<16x8xf32> to vector<1x16x8xf32>
    tpu.vector_store %arg14[%c0_47, %c0_48, %c0_49], %118 {strides = array<i32>} : memref<1x16x8xf32, #tpu.memory_space<vmem>>, vector<1x16x8xf32>,
    return
  }
  func.func @transform_0(%arg0: i32) -> (i32, i32, i32) {
    %c0_i32 = arith.constant 0 : i32
    %c0_i32_0 = arith.constant 0 : i32
    %c0_i32_1 = arith.constant 0 : i32
    return %arg0, %c0_i32, %c0_i32_0 : i32, i32, i32
  }
  func.func @transform_1(%arg0: i32) -> (i32, i32, i32) {
    %c0_i32 = arith.constant 0 : i32
    %c0_i32_0 = arith.constant 0 : i32
    %c0_i32_1 = arith.constant 0 : i32
    return %arg0, %c0_i32, %c0_i32_0 : i32, i32, i32
  }
  func.func @transform_2(%arg0: i32) -> (i32, i32) {
    %c0_i32 = arith.constant 0 : i32
    %c0_i32_0 = arith.constant 0 : i32
    %c0_i32_1 = arith.constant 0 : i32
    return %c0_i32, %c0_i32_0 : i32, i32
  }
  func.func @transform_3(%arg0: i32) -> (i32, i32) {
    %c0_i32 = arith.constant 0 : i32
    %c0_i32_0 = arith.constant 0 : i32
    %c0_i32_1 = arith.constant 0 : i32
    return %c0_i32, %c0_i32_0 : i32, i32
  }
  func.func @transform_4(%arg0: i32) -> (i32, i32) {
    %c0_i32 = arith.constant 0 : i32
    %c0_i32_0 = arith.constant 0 : i32
    %c0_i32_1 = arith.constant 0 : i32
    return %c0_i32, %c0_i32_0 : i32, i32
  }
  func.func @transform_5(%arg0: i32) -> (i32, i32) {
    %c0_i32 = arith.constant 0 : i32
    %c0_i32_0 = arith.constant 0 : i32
    %c0_i32_1 = arith.constant 0 : i32
    return %c0_i32, %c0_i32_0 : i32, i32
  }
  func.func @transform_6(%arg0: i32) -> (i32, i32) {
    %c0_i32 = arith.constant 0 : i32
    %c0_i32_0 = arith.constant 0 : i32
    %c0_i32_1 = arith.constant 0 : i32
    return %c0_i32, %c0_i32_0 : i32, i32
  }
  func.func @transform_7(%arg0: i32) -> (i32, i32, i32) {
    %c0_i32 = arith.constant 0 : i32
    %c0_i32_0 = arith.constant 0 : i32
    %c0_i32_1 = arith.constant 0 : i32
    return %arg0, %c0_i32, %c0_i32_0 : i32, i32, i32
  }
  func.func @transform_8(%arg0: i32) -> (i32, i32, i32) {
    %c0_i32 = arith.constant 0 : i32
    %c0_i32_0 = arith.constant 0 : i32
    %c0_i32_1 = arith.constant 0 : i32
    return %arg0, %c0_i32, %c0_i32_0 : i32, i32, i32
  }
  func.func @transform_9(%arg0: i32) -> (i32, i32) {
    %c0_i32 = arith.constant 0 : i32
    %c0_i32_0 = arith.constant 0 : i32
    %c0_i32_1 = arith.constant 0 : i32
    return %c0_i32, %c0_i32_0 : i32, i32
  }
  func.func @transform_10(%arg0: i32) -> (i32, i32) {
    %c0_i32 = arith.constant 0 : i32
    %c0_i32_0 = arith.constant 0 : i32
    %c0_i32_1 = arith.constant 0 : i32
    return %c0_i32, %c0_i32_0 : i32, i32
  }
  func.func @transform_11(%arg0: i32) -> (i32, i32) {
    %c0_i32 = arith.constant 0 : i32
    %c0_i32_0 = arith.constant 0 : i32
    %c0_i32_1 = arith.constant 0 : i32
    return %c0_i32, %c0_i32_0 : i32, i32
  }
  func.func @transform_12(%arg0: i32) -> (i32, i32) {
    %c0_i32 = arith.constant 0 : i32
    %c0_i32_0 = arith.constant 0 : i32
    %c0_i32_1 = arith.constant 0 : i32
    return %c0_i32, %c0_i32_0 : i32, i32
  }
  func.func @transform_13(%arg0: i32) -> (i32, i32, i32) {
    %c0_i32 = arith.constant 0 : i32
    %c0_i32_0 = arith.constant 0 : i32
    %c0_i32_1 = arith.constant 0 : i32
    return %arg0, %c0_i32, %c0_i32_0 : i32, i32, i32
  }
}

module attributes {stable_mosaic.version = 11 : i64} {
  func.func @_decoder_kernel(%arg0: i32, %arg1: memref<1x8x16xf32, #tpu.memory_space<vmem>>, %arg2: memref<1x4x16xf32, #tpu.memory_space<vmem>>, %arg3: memref<1x8x16xf32, #tpu.memory_space<vmem>>, %arg4: memref<4x24xf32, #tpu.memory_space<vmem>>, %arg5: memref<4x1xf32, #tpu.memory_space<vmem>>, %arg6: memref<4x20xf32, #tpu.memory_space<vmem>>, %arg7: memref<4x20xf32, #tpu.memory_space<vmem>>, %arg8: memref<4x40xf32, #tpu.memory_space<vmem>>, %arg9: memref<4x1xf32, #tpu.memory_space<vmem>>, %arg10: memref<4x1xf32, #tpu.memory_space<vmem>>, %arg11: memref<4x1xf32, #tpu.memory_space<vmem>>, %arg12: memref<1x4x1xf32, #tpu.memory_space<vmem>>, %arg13: memref<1x4x1xf32, #tpu.memory_space<vmem>>, %arg14: memref<4x20xf32, #tpu.memory_space<vmem>>, %arg15: memref<4x1xf32, #tpu.memory_space<vmem>>, %arg16: memref<4x1xf32, #tpu.memory_space<vmem>>, %arg17: memref<4x1xf32, #tpu.memory_space<vmem>>, %arg18: memref<4x4xf32, #tpu.memory_space<vmem>>, %arg19: memref<4x1xf32, #tpu.memory_space<vmem>>, %arg20: memref<1x4x16xf32, #tpu.memory_space<vmem>>) attributes {dimension_semantics = [#tpu.dimension_semantics<parallel>], iteration_bounds = array<i64: 2>, scalar_prefetch = 0 : i64, scratch_operands = 0 : i64, tpu.core_type = #tpu.core_type<tc>, window_params = [{transform_indices = @transform_0, window_bounds = array<i64: 1, 8, 16>}, {transform_indices = @transform_1, window_bounds = array<i64: 1, 4, 16>}, {transform_indices = @transform_2, window_bounds = array<i64: 1, 8, 16>}, {pipeline_mode = #tpu.pipeline_mode<synchronous>, transform_indices = @transform_3, window_bounds = array<i64: 4, 24>}, {pipeline_mode = #tpu.pipeline_mode<synchronous>, transform_indices = @transform_4, window_bounds = array<i64: 4, 1>}, {pipeline_mode = #tpu.pipeline_mode<synchronous>, transform_indices = @transform_5, window_bounds = array<i64: 4, 20>}, {pipeline_mode = #tpu.pipeline_mode<synchronous>, transform_indices = @transform_6, window_bounds = array<i64: 4, 20>}, {pipeline_mode = #tpu.pipeline_mode<synchronous>, transform_indices = @transform_7, window_bounds = array<i64: 4, 40>}, {pipeline_mode = #tpu.pipeline_mode<synchronous>, transform_indices = @transform_8, window_bounds = array<i64: 4, 1>}, {pipeline_mode = #tpu.pipeline_mode<synchronous>, transform_indices = @transform_9, window_bounds = array<i64: 4, 1>}, {pipeline_mode = #tpu.pipeline_mode<synchronous>, transform_indices = @transform_10, window_bounds = array<i64: 4, 1>}, {transform_indices = @transform_11, window_bounds = array<i64: 1, 4, 1>}, {transform_indices = @transform_12, window_bounds = array<i64: 1, 4, 1>}, {pipeline_mode = #tpu.pipeline_mode<synchronous>, transform_indices = @transform_13, window_bounds = array<i64: 4, 20>}, {pipeline_mode = #tpu.pipeline_mode<synchronous>, transform_indices = @transform_14, window_bounds = array<i64: 4, 1>}, {pipeline_mode = #tpu.pipeline_mode<synchronous>, transform_indices = @transform_15, window_bounds = array<i64: 4, 1>}, {pipeline_mode = #tpu.pipeline_mode<synchronous>, transform_indices = @transform_16, window_bounds = array<i64: 4, 1>}, {pipeline_mode = #tpu.pipeline_mode<synchronous>, transform_indices = @transform_17, window_bounds = array<i64: 4, 4>}, {pipeline_mode = #tpu.pipeline_mode<synchronous>, transform_indices = @transform_18, window_bounds = array<i64: 4, 1>}, {transform_indices = @transform_19, window_bounds = array<i64: 1, 4, 16>}]} {
    %c0 = arith.constant 0 : index
    %c0_0 = arith.constant 0 : index
    %c0_1 = arith.constant 0 : index
    %0 = vector.load %arg1[%c0, %c0_0, %c0_1] : memref<1x8x16xf32, #tpu.memory_space<vmem>>, vector<1x8x16xf32>
    %1 = vector.shape_cast %0 : vector<1x8x16xf32> to vector<8x16xf32>
    %c0_2 = arith.constant 0 : index
    %c0_3 = arith.constant 0 : index
    %2 = vector.load %arg4[%c0_2, %c0_3] : memref<4x24xf32, #tpu.memory_space<vmem>>, vector<4x24xf32>
    %c0_4 = arith.constant 0 : index
    %c0_5 = arith.constant 0 : index
    %3 = vector.load %arg5[%c0_4, %c0_5] : memref<4x1xf32, #tpu.memory_space<vmem>>, vector<4x1xf32>
    %cst = arith.constant 0.000000e+00 : f32
    %4 = vector.broadcast %cst : f32 to vector<8x1xf32>
    %5 = tpu.concatenate %4, %1, %4 in 1 : vector<8x1xf32>, vector<8x16xf32>, vector<8x1xf32> -> vector<8x18xf32>
    %6 = vector.extract_strided_slice %5 {offsets = [0, 0], sizes = [8, 16], strides = [1, 1]} : vector<8x18xf32> to vector<8x16xf32>
    %7 = vector.extract_strided_slice %5 {offsets = [0, 1], sizes = [8, 16], strides = [1, 1]} : vector<8x18xf32> to vector<8x16xf32>
    %8 = vector.extract_strided_slice %5 {offsets = [0, 2], sizes = [8, 16], strides = [1, 1]} : vector<8x18xf32> to vector<8x16xf32>
    %9 = tpu.concatenate %6, %7, %8 in 0 : vector<8x16xf32>, vector<8x16xf32>, vector<8x16xf32> -> vector<24x16xf32>
    %cst_6 = arith.constant dense<0.000000e+00> : vector<4x16xf32>
    %10 = tpu.matmul %2, %9, %cst_6 {dimension_numbers = #tpu.dot_dimension_numbers<[1], [0], [0], [1], [0, 0, 1, 1], [], []>} : vector<4x24xf32>, vector<24x16xf32>, vector<4x16xf32> -> vector<4x16xf32>
    %11 = vector.broadcast %3 : vector<4x1xf32> to vector<4x16xf32>
    %12 = arith.addf %10, %11 : vector<4x16xf32>
    %c0_7 = arith.constant 0 : index
    %c0_8 = arith.constant 0 : index
    %c0_9 = arith.constant 0 : index
    %13 = vector.load %arg2[%c0_7, %c0_8, %c0_9] : memref<1x4x16xf32, #tpu.memory_space<vmem>>, vector<1x4x16xf32>
    %14 = vector.shape_cast %13 : vector<1x4x16xf32> to vector<4x16xf32>
    %c0_10 = arith.constant 0 : index
    %c0_11 = arith.constant 0 : index
    %c0_12 = arith.constant 0 : index
    %15 = vector.load %arg3[%c0_10, %c0_11, %c0_12] : memref<1x8x16xf32, #tpu.memory_space<vmem>>, vector<1x8x16xf32>
    %16 = vector.shape_cast %15 : vector<1x8x16xf32> to vector<8x16xf32>
    %c0_13 = arith.constant 0 : index
    %c0_14 = arith.constant 0 : index
    %17 = vector.load %arg18[%c0_13, %c0_14] : memref<4x4xf32, #tpu.memory_space<vmem>>, vector<4x4xf32>
    %cst_15 = arith.constant dense<0.000000e+00> : vector<4x16xf32>
    %18 = tpu.matmul %17, %12, %cst_15 {dimension_numbers = #tpu.dot_dimension_numbers<[1], [0], [0], [1], [0, 0, 1, 1], [], []>} : vector<4x4xf32>, vector<4x16xf32>, vector<4x16xf32> -> vector<4x16xf32>
    %c0_16 = arith.constant 0 : index
    %c0_17 = arith.constant 0 : index
    %19 = vector.load %arg19[%c0_16, %c0_17] : memref<4x1xf32, #tpu.memory_space<vmem>>, vector<4x1xf32>
    %20 = vector.broadcast %19 : vector<4x1xf32> to vector<4x16xf32>
    %21 = arith.addf %18, %20 : vector<4x16xf32>
    %c0_18 = arith.constant 0 : index
    %c0_19 = arith.constant 0 : index
    %22 = vector.load %arg6[%c0_18, %c0_19] : memref<4x20xf32, #tpu.memory_space<vmem>>, vector<4x20xf32>
    %c0_20 = arith.constant 0 : index
    %c0_21 = arith.constant 0 : index
    %23 = vector.load %arg7[%c0_20, %c0_21] : memref<4x20xf32, #tpu.memory_space<vmem>>, vector<4x20xf32>
    %c0_22 = arith.constant 0 : index
    %c0_23 = arith.constant 0 : index
    %24 = vector.load %arg8[%c0_22, %c0_23] : memref<4x40xf32, #tpu.memory_space<vmem>>, vector<4x40xf32>
    %c0_24 = arith.constant 0 : index
    %c0_25 = arith.constant 0 : index
    %25 = vector.load %arg9[%c0_24, %c0_25] : memref<4x1xf32, #tpu.memory_space<vmem>>, vector<4x1xf32>
    %c0_26 = arith.constant 0 : index
    %c0_27 = arith.constant 0 : index
    %26 = vector.load %arg10[%c0_26, %c0_27] : memref<4x1xf32, #tpu.memory_space<vmem>>, vector<4x1xf32>
    %c0_28 = arith.constant 0 : index
    %c0_29 = arith.constant 0 : index
    %27 = vector.load %arg11[%c0_28, %c0_29] : memref<4x1xf32, #tpu.memory_space<vmem>>, vector<4x1xf32>
    %c0_30 = arith.constant 0 : index
    %c0_31 = arith.constant 0 : index
    %c0_32 = arith.constant 0 : index
    %28 = vector.load %arg12[%c0_30, %c0_31, %c0_32] : memref<1x4x1xf32, #tpu.memory_space<vmem>>, vector<1x4x1xf32>
    %29 = vector.shape_cast %28 : vector<1x4x1xf32> to vector<4x1xf32>
    %c0_33 = arith.constant 0 : index
    %c0_34 = arith.constant 0 : index
    %c0_35 = arith.constant 0 : index
    %30 = vector.load %arg13[%c0_33, %c0_34, %c0_35] : memref<1x4x1xf32, #tpu.memory_space<vmem>>, vector<1x4x1xf32>
    %31 = vector.shape_cast %30 : vector<1x4x1xf32> to vector<4x1xf32>
    %c0_36 = arith.constant 0 : index
    %c0_37 = arith.constant 0 : index
    %32 = vector.load %arg14[%c0_36, %c0_37] : memref<4x20xf32, #tpu.memory_space<vmem>>, vector<4x20xf32>
    %c0_38 = arith.constant 0 : index
    %c0_39 = arith.constant 0 : index
    %33 = vector.load %arg15[%c0_38, %c0_39] : memref<4x1xf32, #tpu.memory_space<vmem>>, vector<4x1xf32>
    %c0_40 = arith.constant 0 : index
    %c0_41 = arith.constant 0 : index
    %34 = vector.load %arg16[%c0_40, %c0_41] : memref<4x1xf32, #tpu.memory_space<vmem>>, vector<4x1xf32>
    %c0_42 = arith.constant 0 : index
    %c0_43 = arith.constant 0 : index
    %35 = vector.load %arg17[%c0_42, %c0_43] : memref<4x1xf32, #tpu.memory_space<vmem>>, vector<4x1xf32>
    %cst_44 = arith.constant 0.000000e+00 : f32
    %36 = vector.broadcast %cst_44 : f32 to vector<4x2xf32>
    %37 = tpu.concatenate %36, %12, %36 in 1 : vector<4x2xf32>, vector<4x16xf32>, vector<4x2xf32> -> vector<4x20xf32>
    %38 = vector.extract_strided_slice %37 {offsets = [0, 0], sizes = [4, 16], strides = [1, 1]} : vector<4x20xf32> to vector<4x16xf32>
    %39 = vector.extract_strided_slice %37 {offsets = [0, 1], sizes = [4, 16], strides = [1, 1]} : vector<4x20xf32> to vector<4x16xf32>
    %40 = vector.extract_strided_slice %37 {offsets = [0, 2], sizes = [4, 16], strides = [1, 1]} : vector<4x20xf32> to vector<4x16xf32>
    %41 = vector.extract_strided_slice %37 {offsets = [0, 3], sizes = [4, 16], strides = [1, 1]} : vector<4x20xf32> to vector<4x16xf32>
    %42 = vector.extract_strided_slice %37 {offsets = [0, 4], sizes = [4, 16], strides = [1, 1]} : vector<4x20xf32> to vector<4x16xf32>
    %43 = tpu.concatenate %38, %39, %40, %41, %42 in 0 : vector<4x16xf32>, vector<4x16xf32>, vector<4x16xf32>, vector<4x16xf32>, vector<4x16xf32> -> vector<20x16xf32>
    %cst_45 = arith.constant dense<0.000000e+00> : vector<4x16xf32>
    %44 = tpu.matmul %22, %43, %cst_45 {dimension_numbers = #tpu.dot_dimension_numbers<[1], [0], [0], [1], [0, 0, 1, 1], [], []>} : vector<4x20xf32>, vector<20x16xf32>, vector<4x16xf32> -> vector<4x16xf32>
    %cst_46 = arith.constant 0.000000e+00 : f32
    %45 = vector.broadcast %cst_46 : f32 to vector<4x2xf32>
    %46 = tpu.concatenate %45, %14, %45 in 1 : vector<4x2xf32>, vector<4x16xf32>, vector<4x2xf32> -> vector<4x20xf32>
    %47 = vector.extract_strided_slice %46 {offsets = [0, 0], sizes = [4, 16], strides = [1, 1]} : vector<4x20xf32> to vector<4x16xf32>
    %48 = vector.extract_strided_slice %46 {offsets = [0, 1], sizes = [4, 16], strides = [1, 1]} : vector<4x20xf32> to vector<4x16xf32>
    %49 = vector.extract_strided_slice %46 {offsets = [0, 2], sizes = [4, 16], strides = [1, 1]} : vector<4x20xf32> to vector<4x16xf32>
    %50 = vector.extract_strided_slice %46 {offsets = [0, 3], sizes = [4, 16], strides = [1, 1]} : vector<4x20xf32> to vector<4x16xf32>
    %51 = vector.extract_strided_slice %46 {offsets = [0, 4], sizes = [4, 16], strides = [1, 1]} : vector<4x20xf32> to vector<4x16xf32>
    %52 = tpu.concatenate %47, %48, %49, %50, %51 in 0 : vector<4x16xf32>, vector<4x16xf32>, vector<4x16xf32>, vector<4x16xf32>, vector<4x16xf32> -> vector<20x16xf32>
    %cst_47 = arith.constant dense<0.000000e+00> : vector<4x16xf32>
    %53 = tpu.matmul %23, %52, %cst_47 {dimension_numbers = #tpu.dot_dimension_numbers<[1], [0], [0], [1], [0, 0, 1, 1], [], []>} : vector<4x20xf32>, vector<20x16xf32>, vector<4x16xf32> -> vector<4x16xf32>
    %54 = arith.addf %44, %53 : vector<4x16xf32>
    %cst_48 = arith.constant 0.000000e+00 : f32
    %55 = vector.broadcast %cst_48 : f32 to vector<8x2xf32>
    %56 = tpu.concatenate %55, %16, %55 in 1 : vector<8x2xf32>, vector<8x16xf32>, vector<8x2xf32> -> vector<8x20xf32>
    %57 = vector.extract_strided_slice %56 {offsets = [0, 0], sizes = [8, 16], strides = [1, 1]} : vector<8x20xf32> to vector<8x16xf32>
    %58 = vector.extract_strided_slice %56 {offsets = [0, 1], sizes = [8, 16], strides = [1, 1]} : vector<8x20xf32> to vector<8x16xf32>
    %59 = vector.extract_strided_slice %56 {offsets = [0, 2], sizes = [8, 16], strides = [1, 1]} : vector<8x20xf32> to vector<8x16xf32>
    %60 = vector.extract_strided_slice %56 {offsets = [0, 3], sizes = [8, 16], strides = [1, 1]} : vector<8x20xf32> to vector<8x16xf32>
    %61 = vector.extract_strided_slice %56 {offsets = [0, 4], sizes = [8, 16], strides = [1, 1]} : vector<8x20xf32> to vector<8x16xf32>
    %62 = tpu.concatenate %57, %58, %59, %60, %61 in 0 : vector<8x16xf32>, vector<8x16xf32>, vector<8x16xf32>, vector<8x16xf32>, vector<8x16xf32> -> vector<40x16xf32>
    %cst_49 = arith.constant dense<0.000000e+00> : vector<4x16xf32>
    %63 = tpu.matmul %24, %62, %cst_49 {dimension_numbers = #tpu.dot_dimension_numbers<[1], [0], [0], [1], [0, 0, 1, 1], [], []>} : vector<4x40xf32>, vector<40x16xf32>, vector<4x16xf32> -> vector<4x16xf32>
    %64 = arith.addf %54, %63 : vector<4x16xf32>
    %65 = vector.broadcast %25 : vector<4x1xf32> to vector<4x16xf32>
    %66 = arith.addf %64, %65 : vector<4x16xf32>
    %cst_50 = arith.constant dense<0.000000e+00> : vector<4xf32>
    %67 = vector.multi_reduction <add>, %66, %cst_50 [1] : vector<4x16xf32> to vector<4xf32>
    %68 = vector.shape_cast %67 : vector<4xf32> to vector<4x1xf32>
    %cst_51 = arith.constant 1.600000e+01 : f32
    %69 = vector.broadcast %cst_51 : f32 to vector<4x1xf32>
    %70 = arith.divf %68, %69 : vector<4x1xf32>
    %71 = vector.broadcast %70 : vector<4x1xf32> to vector<4x16xf32>
    %72 = arith.subf %66, %71 : vector<4x16xf32>
    %73 = arith.mulf %72, %72 : vector<4x16xf32>
    %cst_52 = arith.constant dense<0.000000e+00> : vector<4xf32>
    %74 = vector.multi_reduction <add>, %73, %cst_52 [1] : vector<4x16xf32> to vector<4xf32>
    %75 = vector.shape_cast %74 : vector<4xf32> to vector<4x1xf32>
    %cst_53 = arith.constant 1.600000e+01 : f32
    %76 = vector.broadcast %cst_53 : f32 to vector<4x1xf32>
    %77 = arith.divf %75, %76 : vector<4x1xf32>
    %78 = vector.broadcast %70 : vector<4x1xf32> to vector<4x16xf32>
    %79 = arith.subf %66, %78 : vector<4x16xf32>
    %cst_54 = arith.constant 9.99999974E-6 : f32
    %80 = vector.broadcast %cst_54 : f32 to vector<4x1xf32>
    %81 = arith.addf %77, %80 : vector<4x1xf32>
    %82 = math.rsqrt %81 : vector<4x1xf32>
    %83 = vector.broadcast %82 : vector<4x1xf32> to vector<4x16xf32>
    %84 = arith.mulf %79, %83 : vector<4x16xf32>
    %85 = vector.broadcast %26 : vector<4x1xf32> to vector<4x16xf32>
    %86 = arith.mulf %84, %85 : vector<4x16xf32>
    %87 = vector.broadcast %27 : vector<4x1xf32> to vector<4x16xf32>
    %88 = arith.addf %86, %87 : vector<4x16xf32>
    %89 = arith.negf %88 : vector<4x16xf32>
    %90 = math.exp %89 : vector<4x16xf32>
    %cst_55 = arith.constant 1.000000e+00 : f32
    %91 = vector.broadcast %cst_55 : f32 to vector<4x16xf32>
    %92 = arith.addf %91, %90 : vector<4x16xf32>
    %93 = arith.divf %91, %92 : vector<4x16xf32>
    %94 = arith.mulf %88, %93 : vector<4x16xf32>
    %95 = vector.broadcast %29 : vector<4x1xf32> to vector<4x16xf32>
    %96 = arith.mulf %94, %95 : vector<4x16xf32>
    %97 = vector.broadcast %31 : vector<4x1xf32> to vector<4x16xf32>
    %98 = arith.addf %96, %97 : vector<4x16xf32>
    %99 = arith.negf %98 : vector<4x16xf32>
    %100 = math.exp %99 : vector<4x16xf32>
    %cst_56 = arith.constant 1.000000e+00 : f32
    %101 = vector.broadcast %cst_56 : f32 to vector<4x16xf32>
    %102 = arith.addf %101, %100 : vector<4x16xf32>
    %103 = arith.divf %101, %102 : vector<4x16xf32>
    %104 = arith.mulf %98, %103 : vector<4x16xf32>
    %cst_57 = arith.constant 0.000000e+00 : f32
    %105 = vector.broadcast %cst_57 : f32 to vector<4x2xf32>
    %106 = tpu.concatenate %105, %104, %105 in 1 : vector<4x2xf32>, vector<4x16xf32>, vector<4x2xf32> -> vector<4x20xf32>
    %107 = vector.extract_strided_slice %106 {offsets = [0, 0], sizes = [4, 16], strides = [1, 1]} : vector<4x20xf32> to vector<4x16xf32>
    %108 = vector.extract_strided_slice %106 {offsets = [0, 1], sizes = [4, 16], strides = [1, 1]} : vector<4x20xf32> to vector<4x16xf32>
    %109 = vector.extract_strided_slice %106 {offsets = [0, 2], sizes = [4, 16], strides = [1, 1]} : vector<4x20xf32> to vector<4x16xf32>
    %110 = vector.extract_strided_slice %106 {offsets = [0, 3], sizes = [4, 16], strides = [1, 1]} : vector<4x20xf32> to vector<4x16xf32>
    %111 = vector.extract_strided_slice %106 {offsets = [0, 4], sizes = [4, 16], strides = [1, 1]} : vector<4x20xf32> to vector<4x16xf32>
    %112 = tpu.concatenate %107, %108, %109, %110, %111 in 0 : vector<4x16xf32>, vector<4x16xf32>, vector<4x16xf32>, vector<4x16xf32>, vector<4x16xf32> -> vector<20x16xf32>
    %cst_58 = arith.constant dense<0.000000e+00> : vector<4x16xf32>
    %113 = tpu.matmul %32, %112, %cst_58 {dimension_numbers = #tpu.dot_dimension_numbers<[1], [0], [0], [1], [0, 0, 1, 1], [], []>} : vector<4x20xf32>, vector<20x16xf32>, vector<4x16xf32> -> vector<4x16xf32>
    %114 = vector.broadcast %33 : vector<4x1xf32> to vector<4x16xf32>
    %115 = arith.addf %113, %114 : vector<4x16xf32>
    %cst_59 = arith.constant dense<0.000000e+00> : vector<4xf32>
    %116 = vector.multi_reduction <add>, %115, %cst_59 [1] : vector<4x16xf32> to vector<4xf32>
    %117 = vector.shape_cast %116 : vector<4xf32> to vector<4x1xf32>
    %cst_60 = arith.constant 1.600000e+01 : f32
    %118 = vector.broadcast %cst_60 : f32 to vector<4x1xf32>
    %119 = arith.divf %117, %118 : vector<4x1xf32>
    %120 = vector.broadcast %119 : vector<4x1xf32> to vector<4x16xf32>
    %121 = arith.subf %115, %120 : vector<4x16xf32>
    %122 = arith.mulf %121, %121 : vector<4x16xf32>
    %cst_61 = arith.constant dense<0.000000e+00> : vector<4xf32>
    %123 = vector.multi_reduction <add>, %122, %cst_61 [1] : vector<4x16xf32> to vector<4xf32>
    %124 = vector.shape_cast %123 : vector<4xf32> to vector<4x1xf32>
    %cst_62 = arith.constant 1.600000e+01 : f32
    %125 = vector.broadcast %cst_62 : f32 to vector<4x1xf32>
    %126 = arith.divf %124, %125 : vector<4x1xf32>
    %127 = vector.broadcast %119 : vector<4x1xf32> to vector<4x16xf32>
    %128 = arith.subf %115, %127 : vector<4x16xf32>
    %cst_63 = arith.constant 9.99999974E-6 : f32
    %129 = vector.broadcast %cst_63 : f32 to vector<4x1xf32>
    %130 = arith.addf %126, %129 : vector<4x1xf32>
    %131 = math.rsqrt %130 : vector<4x1xf32>
    %132 = vector.broadcast %131 : vector<4x1xf32> to vector<4x16xf32>
    %133 = arith.mulf %128, %132 : vector<4x16xf32>
    %134 = vector.broadcast %34 : vector<4x1xf32> to vector<4x16xf32>
    %135 = arith.mulf %133, %134 : vector<4x16xf32>
    %136 = vector.broadcast %35 : vector<4x1xf32> to vector<4x16xf32>
    %137 = arith.addf %135, %136 : vector<4x16xf32>
    %138 = arith.negf %137 : vector<4x16xf32>
    %139 = math.exp %138 : vector<4x16xf32>
    %cst_64 = arith.constant 1.000000e+00 : f32
    %140 = vector.broadcast %cst_64 : f32 to vector<4x16xf32>
    %141 = arith.addf %140, %139 : vector<4x16xf32>
    %142 = arith.divf %140, %141 : vector<4x16xf32>
    %143 = arith.mulf %137, %142 : vector<4x16xf32>
    %144 = arith.addf %143, %21 : vector<4x16xf32>
    %c0_65 = arith.constant 0 : index
    %c0_66 = arith.constant 0 : index
    %c0_67 = arith.constant 0 : index
    %145 = vector.load %arg20[%c0_65, %c0_66, %c0_67] : memref<1x4x16xf32, #tpu.memory_space<vmem>>, vector<1x4x16xf32>
    %146 = vector.shape_cast %145 : vector<1x4x16xf32> to vector<4x16xf32>
    %147 = vector.shape_cast %144 : vector<4x16xf32> to vector<1x4x16xf32>
    tpu.vector_store %arg20[%c0_65, %c0_66, %c0_67], %147 {strides = array<i32>} : memref<1x4x16xf32, #tpu.memory_space<vmem>>, vector<1x4x16xf32>,
    return
  }
  func.func @transform_0(%arg0: i32) -> (i32, i32, i32) {
    %c0_i32 = arith.constant 0 : i32
    %c0_i32_0 = arith.constant 0 : i32
    %c0_i32_1 = arith.constant 0 : i32
    return %arg0, %c0_i32, %c0_i32_0 : i32, i32, i32
  }
  func.func @transform_1(%arg0: i32) -> (i32, i32, i32) {
    %c0_i32 = arith.constant 0 : i32
    %c0_i32_0 = arith.constant 0 : i32
    %c0_i32_1 = arith.constant 0 : i32
    return %arg0, %c0_i32, %c0_i32_0 : i32, i32, i32
  }
  func.func @transform_2(%arg0: i32) -> (i32, i32, i32) {
    %c0_i32 = arith.constant 0 : i32
    %c0_i32_0 = arith.constant 0 : i32
    %c0_i32_1 = arith.constant 0 : i32
    return %arg0, %c0_i32, %c0_i32_0 : i32, i32, i32
  }
  func.func @transform_3(%arg0: i32) -> (i32, i32) {
    %c0_i32 = arith.constant 0 : i32
    %c0_i32_0 = arith.constant 0 : i32
    %c0_i32_1 = arith.constant 0 : i32
    return %c0_i32, %c0_i32_0 : i32, i32
  }
  func.func @transform_4(%arg0: i32) -> (i32, i32) {
    %c0_i32 = arith.constant 0 : i32
    %c0_i32_0 = arith.constant 0 : i32
    %c0_i32_1 = arith.constant 0 : i32
    return %c0_i32, %c0_i32_0 : i32, i32
  }
  func.func @transform_5(%arg0: i32) -> (i32, i32) {
    %c0_i32 = arith.constant 0 : i32
    %c0_i32_0 = arith.constant 0 : i32
    %c0_i32_1 = arith.constant 0 : i32
    return %c0_i32, %c0_i32_0 : i32, i32
  }
  func.func @transform_6(%arg0: i32) -> (i32, i32) {
    %c0_i32 = arith.constant 0 : i32
    %c0_i32_0 = arith.constant 0 : i32
    %c0_i32_1 = arith.constant 0 : i32
    return %c0_i32, %c0_i32_0 : i32, i32
  }
  func.func @transform_7(%arg0: i32) -> (i32, i32) {
    %c0_i32 = arith.constant 0 : i32
    %c0_i32_0 = arith.constant 0 : i32
    %c0_i32_1 = arith.constant 0 : i32
    return %c0_i32, %c0_i32_0 : i32, i32
  }
  func.func @transform_8(%arg0: i32) -> (i32, i32) {
    %c0_i32 = arith.constant 0 : i32
    %c0_i32_0 = arith.constant 0 : i32
    %c0_i32_1 = arith.constant 0 : i32
    return %c0_i32, %c0_i32_0 : i32, i32
  }
  func.func @transform_9(%arg0: i32) -> (i32, i32) {
    %c0_i32 = arith.constant 0 : i32
    %c0_i32_0 = arith.constant 0 : i32
    %c0_i32_1 = arith.constant 0 : i32
    return %c0_i32, %c0_i32_0 : i32, i32
  }
  func.func @transform_10(%arg0: i32) -> (i32, i32) {
    %c0_i32 = arith.constant 0 : i32
    %c0_i32_0 = arith.constant 0 : i32
    %c0_i32_1 = arith.constant 0 : i32
    return %c0_i32, %c0_i32_0 : i32, i32
  }
  func.func @transform_11(%arg0: i32) -> (i32, i32, i32) {
    %c0_i32 = arith.constant 0 : i32
    %c0_i32_0 = arith.constant 0 : i32
    %c0_i32_1 = arith.constant 0 : i32
    return %arg0, %c0_i32, %c0_i32_0 : i32, i32, i32
  }
  func.func @transform_12(%arg0: i32) -> (i32, i32, i32) {
    %c0_i32 = arith.constant 0 : i32
    %c0_i32_0 = arith.constant 0 : i32
    %c0_i32_1 = arith.constant 0 : i32
    return %arg0, %c0_i32, %c0_i32_0 : i32, i32, i32
  }
  func.func @transform_13(%arg0: i32) -> (i32, i32) {
    %c0_i32 = arith.constant 0 : i32
    %c0_i32_0 = arith.constant 0 : i32
    %c0_i32_1 = arith.constant 0 : i32
    return %c0_i32, %c0_i32_0 : i32, i32
  }
  func.func @transform_14(%arg0: i32) -> (i32, i32) {
    %c0_i32 = arith.constant 0 : i32
    %c0_i32_0 = arith.constant 0 : i32
    %c0_i32_1 = arith.constant 0 : i32
    return %c0_i32, %c0_i32_0 : i32, i32
  }
  func.func @transform_15(%arg0: i32) -> (i32, i32) {
    %c0_i32 = arith.constant 0 : i32
    %c0_i32_0 = arith.constant 0 : i32
    %c0_i32_1 = arith.constant 0 : i32
    return %c0_i32, %c0_i32_0 : i32, i32
  }
  func.func @transform_16(%arg0: i32) -> (i32, i32) {
    %c0_i32 = arith.constant 0 : i32
    %c0_i32_0 = arith.constant 0 : i32
    %c0_i32_1 = arith.constant 0 : i32
    return %c0_i32, %c0_i32_0 : i32, i32
  }
  func.func @transform_17(%arg0: i32) -> (i32, i32) {
    %c0_i32 = arith.constant 0 : i32
    %c0_i32_0 = arith.constant 0 : i32
    %c0_i32_1 = arith.constant 0 : i32
    return %c0_i32, %c0_i32_0 : i32, i32
  }
  func.func @transform_18(%arg0: i32) -> (i32, i32) {
    %c0_i32 = arith.constant 0 : i32
    %c0_i32_0 = arith.constant 0 : i32
    %c0_i32_1 = arith.constant 0 : i32
    return %c0_i32, %c0_i32_0 : i32, i32
  }
  func.func @transform_19(%arg0: i32) -> (i32, i32, i32) {
    %c0_i32 = arith.constant 0 : i32
    %c0_i32_0 = arith.constant 0 : i32
    %c0_i32_1 = arith.constant 0 : i32
    return %arg0, %c0_i32, %c0_i32_0 : i32, i32, i32
  }
}

</mosaic_0001>

<bundles_post_ra>
// kernel: unet1d_forward.8
= control target key start
LH: loop header
LB: loop body
LE: loop exit
PB: predicated region body
PF: predicated region fallthrough
CT: control target
= control target key end

     0   :  { %s422_s12 = smov 0   ;;  %s449_s0 = inlined_call_operand.vmem [shape: f32[2,1,16], index: 0, kind: input, shape index: {}]   ;;  %s450_s1 = inlined_call_operand.vmem [shape: f32[8,5], index: 1, kind: input, shape index: {}]   ;;  %s451_s2 = inlined_call_operand.vmem [shape: f32[8,1], index: 2, kind: input, shape index: {}]   ;;  %s452_s3 = inlined_call_operand.vmem [shape: f32[2,8,16], index: 3, kind: output, shape index: {}]  }
   0x1 LB: > { %s345_s13 = sadd.s32 4294967295, %s392_s12   ;;  %p349_p0 = scmp.ge.s32.totalorder %s392_s12, 1  ;;  %s392_s12 = sphi %s422_s12, %s13_s12  }
   0x2   : > { %p135_p1 = scmp.lt.s32.totalorder %s392_s12, 3 }
   0x4   : > { %p136_p2 = pnand %p349_p0, %p135_p1 }
   0x5   : > { %p156_p3 = scmp.lt.s32.totalorder (!%p136_p2), %s345_s13, 1  ;;  %s394_s17 = smov (!%p136_p2), 2  }
   0x6   : > { %139 = sbr.rel (%p136_p2) target bundleno = 485 (0x1e5), region = 32  ;;  %s398_s18 = smov (!%p136_p2), 126  }
   0x7   : > { %s399_s19 = smov (!%p136_p2), 127   ;;  %s400_s20 = smov (!%p136_p2), 125  }
   0x8   : > { %s401_s21 = smov (!%p136_p2), 124  }
   0xb   : > { %s454_s13 = smov (!%p156_p3, %s345_s13), 1  ;;  %v395_v1 = vmov 0.0   ;;  %vm174_vm0 = vcmask 15360   ;;  %vm396_vm1 = vmmov 0   ;;  %vm176_vm2 = vcmask 146432   ;;  %v165_v10 = vld [vmem:[%s451_s2] sm:$0xff] }
   0xc   : > { %s158_s16 = scalar_lea.vmem %s449_s0, %s454_s13  ;;  %359 = vmatprep.subr.mxu0 %v395_v1  ;;  %361 = vmatprep.mubr.msk.f32.mxu0 %vm396_vm1, %v395_v1  ;;  %v397_v3 = vmov 0   ;;  %vm195_vm3 = vcmask 1040384   ;;  %vm197_vm4 = vcmask 1041408   ;;  %vm199_vm5 = vcmask 1042432   ;;  %v164_v18 = vld [vmem:[%s450_s1] sm:$0xff]  ;;  %s350_s26 = sshll.u32 %s454_s13, 3 }
   0xd   : > { %v351_v0 = vld [vmem:[%s158_s16] ss:$0 sm:$0xff]  ;;  %380 = vset.pattern.permute.xlu1 %v397_v3  ;;  %381 = vset.pattern.permute.xlu0 %v397_v3  ;;  %vm201_vm6 = vcmask 1043456   ;;  %vm212_vm7 = vcmask 1044480   ;;  %vm208_vm8 = vcmask 39936   ;;  %s162_s29 = scalar_lea.vmem %s452_s3, %s350_s26  ;;  %vm293_vm9 = vcmask 130048  }
   0xe   : > { %171 = vrot.lane.b32.xlu0 %v351_v0, %s394_s17 }
  0x80   : > { %v172_v2 = vpop.permute.xlu0 %171 }
  0x81   : > { %v175_v4 = vsel %vm174_vm0, 0.0, %v172_v2 }
  0x82   : > { %v177_v5 = vsel %vm176_vm2, %v175_v4, 0.0 }
  0x83   : > { %v183_v6 = vrot.slane %v177_v5, 6  ;;  %v179_v7 = vrot.slane %v177_v5, 7  ;;  %v187_v8 = vrot.slane %v177_v5, 5  ;;  %v191_v9 = vrot.slane %v177_v5, 4 }
  0x85   : > { %184 = vrot.lane.b32.xlu1 %v183_v6, %s398_s18  ;;  %180 = vrot.lane.b32.xlu0 %v179_v7, %s399_s19 }
  0x89   : > { %188 = vrot.lane.b32.xlu1 %v187_v8, %s400_s20  ;;  %192 = vrot.lane.b32.xlu0 %v191_v9, %s401_s21 }
  0x8d   : > { %205 = vperm.xlu1 %380, %v165_v10  }
  0xf7   : > { %v185_v11 = vpop.permute.xlu1 %184  ;;  %v181_v12 = vpop.permute.xlu0 %180 }
  0xf8   : > { %v196_v13 = vsel %vm195_vm3, %v177_v5, %v181_v12 }
  0xf9   : > { %v198_v15 = vsel %vm197_vm4, %v196_v13, %v185_v11 }
  0xfb   : > { %v189_v14 = vpop.permute.xlu1 %188  ;;  %v193_v16 = vpop.permute.xlu0 %192 }
  0xfc   : > { %v200_v17 = vsel %vm199_vm5, %v198_v15, %v189_v14 }
  0xfd   : > { %v202_v19 = vsel %vm201_vm6, %v200_v17, %v193_v16 }
  0xfe   : > { %360 = vmatpush3.msk.msra.mxu0 %vm212_vm7, %v202_v19 }
  0xff   : > { %362 = vmatmul.mubr.msk.f32.vlgmr.msra.gmra.mxu0 %vm208_vm8, %v164_v18 }
 0x108   : > { %v206_v20 = vpop.permute.xlu1 %205 }
 0x1bf   : > { %v282_v21 = vpop.f32.mrf.mxu0 }
 0x1c0   : > { %v283_v22 = vadd.f32 %v282_v21, %v206_v20 }
 0x1c1   : > { %v363_v23 = vpop.f32.mrf.mxu0 }
 0x1c2   : > { %v354_v24 = vmul.f32 -1.442695, %v283_v22 }
 0x1c4   : > { %382 = vpow2.f32 %v354_v24 }
 0x1d1   : > { %v383_v25 = vpop.eup %382 }
 0x1d2   : > { %v289_v26 = vadd.f32 1.0, %v383_v25 }
 0x1d4   : > { %384 = vrcp.f32 %v289_v26 }
 0x1e1   : > { %v385_v27 = vpop.eup %384 }
 0x1e2   : > { %v292_v28 = vmul.f32 %v385_v27, %v283_v22 }
 0x1e4   : > { %294 = vst.msk [vmem:[%s162_s29] sm:$0xff] %vm293_vm9, %v292_v28 }
 0x1e5 PF: > { %s13_s12 = sadd.s32 1, %s392_s12  }
 0x1e6   : > { %p10_p4 = scmp.ge.s32.totalorder %s13_s12, 4  }
 0x1e8   :  { %12 = sbr.rel (!%p10_p4) target bundleno = 1 (0x1), region = 62 }

// kernel: unet1d_forward.10
= control target key start
LH: loop header
LB: loop body
LE: loop exit
PB: predicated region body
PF: predicated region fallthrough
CT: control target
= control target key end

     0   :  { %s420_s12 = smov 0   ;;  %s452_s0 = inlined_call_operand.vmem [shape: f32[2,8,16], index: 0, kind: input, shape index: {}]   ;;  %s453_s1 = inlined_call_operand.vmem [shape: f32[8,40], index: 1, kind: input, shape index: {}]   ;;  %s454_s2 = inlined_call_operand.vmem [shape: f32[8,1], index: 2, kind: input, shape index: {}]   ;;  %s455_s3 = inlined_call_operand.vmem [shape: f32[2,8,16], index: 3, kind: output, shape index: {}]  }
   0x1 LB: > { %s331_s13 = sadd.s32 4294967295, %s390_s12   ;;  %p335_p0 = scmp.ge.s32.totalorder %s390_s12, 1  ;;  %s390_s12 = sphi %s420_s12, %s13_s12  }
   0x2   : > { %p136_p1 = scmp.lt.s32.totalorder %s390_s12, 3 }
   0x4   : > { %p137_p2 = pnand %p335_p0, %p136_p1 }
   0x5   : > { %p158_p3 = scmp.lt.s32.totalorder (!%p137_p2), %s331_s13, 1  ;;  %s393_s18 = smov (!%p137_p2), 2  }
   0x6   : > { %140 = sbr.rel (%p137_p2) target bundleno = 486 (0x1e6), region = 32  ;;  %s396_s19 = smov (!%p137_p2), 125  }
   0x7   : > { %s397_s20 = smov (!%p137_p2), 124   ;;  %s398_s21 = smov (!%p137_p2), 126  }
   0x8   : > { %s399_s22 = smov (!%p137_p2), 127  }
   0xb   : > { %v392_v0 = vmov 0.0   ;;  %s457_s13 = smov (!%p158_p3, %s331_s13), 1  ;;  %vm173_vm0 = vcmask 15360   ;;  %vm394_vm1 = vmmov 0   ;;  %vm175_vm2 = vcmask 146432   ;;  %v168_v6 = vld [vmem:[%s454_s2] sm:$0xff] }
   0xc   : > { %349 = vmatprep.subr.mxu0 %v392_v0  ;;  %s336_s14 = sshll.u32 %s457_s13, 3  ;;  %359 = vmatprep.mubr.msk.f32.mxu0 %vm394_vm1, %v392_v0  ;;  %v395_v3 = vmov 0   ;;  %v167_v11 = vld [vmem:[%s453_s1] sm:$0xff]  ;;  %vm195_vm3 = vcmask 326656   ;;  %vm276_vm4 = vcmask 130048  }
   0xd   : > { %s161_s17 = scalar_lea.vmem %s452_s0, %s336_s14  ;;  %378 = vset.pattern.permute.xlu1 %v395_v3  ;;  %379 = vset.pattern.permute.xlu0 %v395_v3  ;;  %s165_s29 = scalar_lea.vmem %s455_s3, %s336_s14 }
   0xe   : > { %v166_v1 = vld [vmem:[%s161_s17] sm:$0xff] }
   0xf   : > { %170 = vrot.lane.b32.xlu0 %v166_v1, %s393_s18 }
  0x81   : > { %v171_v2 = vpop.permute.xlu0 %170 }
  0x82   : > { %v174_v4 = vsel %vm173_vm0, 0.0, %v171_v2 }
  0x83   : > { %v176_v5 = vsel %vm175_vm2, %v174_v4, 0.0 }
  0x84   : > { %184 = vrot.lane.b32.xlu1 %v176_v5, %s396_s19  ;;  %187 = vrot.lane.b32.xlu0 %v176_v5, %s397_s20 }
  0x88   : > { %181 = vrot.lane.b32.xlu1 %v176_v5, %s398_s21  ;;  %178 = vrot.lane.b32.xlu0 %v176_v5, %s399_s22 }
  0x8c   : > { %192 = vperm.xlu1 %378, %v168_v6  }
  0xf6   : > { %v185_v7 = vpop.permute.xlu1 %184  ;;  %v188_v8 = vpop.permute.xlu0 %187 }
  0xf7   : > { %350 = vmatpush3.msra.mxu0 %v188_v8 }
  0xf8   : > { %351 = vmatprep.subr.mxu0 %v392_v0 }
  0xf9   : > { %352 = vmatpush3.msra.mxu0 %v185_v7 }
  0xfa   : > { %v182_v9 = vpop.permute.xlu1 %181  ;;  %353 = vmatprep.subr.mxu0 %v392_v0  ;;  %v179_v10 = vpop.permute.xlu0 %178 }
  0xfb   : > { %354 = vmatpush3.msra.mxu0 %v182_v9 }
  0xfc   : > { %355 = vmatprep.subr.mxu0 %v392_v0 }
  0xfd   : > { %356 = vmatpush3.msra.mxu0 %v179_v10 }
  0xfe   : > { %357 = vmatprep.subr.mxu0 %v392_v0 }
  0xff   : > { %358 = vmatpush3.msk.msra.mxu0 %vm175_vm2, %v174_v4 }
 0x100   : > { %360 = vmatmul.mubr.msk.f32.vlgmr.msra.gmra.mxu0 %vm195_vm3, %v167_v11 }
 0x107   : > { %v193_v12 = vpop.permute.xlu1 %192 }
 0x1c0   : > { %v265_v13 = vpop.f32.mrf.mxu0 }
 0x1c1   : > { %v266_v14 = vadd.f32 %v265_v13, %v193_v12 }
 0x1c2   : > { %v361_v15 = vpop.f32.mrf.mxu0 }
 0x1c3   : > { %v340_v16 = vmul.f32 -1.442695, %v266_v14 }
 0x1c5   : > { %380 = vpow2.f32 %v340_v16 }
 0x1d2   : > { %v381_v17 = vpop.eup %380 }
 0x1d3   : > { %v272_v18 = vadd.f32 1.0, %v381_v17 }
 0x1d5   : > { %382 = vrcp.f32 %v272_v18 }
 0x1e2   : > { %v383_v19 = vpop.eup %382 }
 0x1e3   : > { %v275_v20 = vmul.f32 %v383_v19, %v266_v14 }
 0x1e5   : > { %277 = vst.msk [vmem:[%s165_s29] sm:$0xff] %vm276_vm4, %v275_v20 }
 0x1e6 PF: > { %s13_s12 = sadd.s32 1, %s390_s12  }
 0x1e7   : > { %p10_p4 = scmp.ge.s32.totalorder %s13_s12, 4  }
 0x1e9   :  { %12 = sbr.rel (!%p10_p4) target bundleno = 1 (0x1), region = 62 }

// kernel: unet1d_forward.9
= control target key start
LH: loop header
LB: loop body
LE: loop exit
PB: predicated region body
PF: predicated region fallthrough
CT: control target
= control target key end

     0   :  { %s1421_s21 = smov 0   ;;  %s1569_s0 = inlined_call_operand.vmem [shape: f32[2,4,16], index: 0, kind: input, shape index: {}]   ;;  %s1570_s1 = inlined_call_operand.vmem [shape: f32[2,8,16], index: 1, kind: input, shape index: {}]   ;;  %s1571_s2 = inlined_call_operand.vmem [shape: f32[4,20], index: 2, kind: input, shape index: {}]   ;;  %s1572_s3 = inlined_call_operand.vmem [shape: f32[4,40], index: 3, kind: input, shape index: {}]   ;;  %s1573_s4 = inlined_call_operand.vmem [shape: f32[4,1], index: 4, kind: input, shape index: {}, may-alias: {4,6,10,12}]   ;;  %s1574_s5 = inlined_call_operand.vmem [shape: f32[4,1], index: 5, kind: input, shape index: {}, may-alias: {5,11}]   ;;  %s1575_s6 = inlined_call_operand.vmem [shape: f32[4,1], index: 6, kind: input, shape index: {}, may-alias: {4,6,10,12}]   ;;  %s1576_s7 = inlined_call_operand.vmem [shape: f32[2,4,1], index: 7, kind: input, shape index: {}]   ;;  %s1577_s8 = inlined_call_operand.vmem [shape: f32[2,4,1], index: 8, kind: input, shape index: {}]   ;;  %s1578_s9 = inlined_call_operand.vmem [shape: f32[4,20], index: 9, kind: input, shape index: {}]   ;;  %s1579_s10 = inlined_call_operand.vmem [shape: f32[4,1], index: 10, kind: input, shape index: {}, may-alias: {4,6,10,12}]   ;;  %s1580_s11 = inlined_call_operand.vmem [shape: f32[4,1], index: 11, kind: input, shape index: {}, may-alias: {5,11}]   ;;  %s1581_s12 = inlined_call_operand.vmem [shape: f32[4,1], index: 12, kind: input, shape index: {}, may-alias: {4,6,10,12}]   ;;  %s1582_s13 = inlined_call_operand.vmem [shape: f32[8,20], index: 13, kind: input, shape index: {}]   ;;  %s1583_s14 = inlined_call_operand.vmem [shape: f32[8,1], index: 14, kind: input, shape index: {}]   ;;  %s1584_s15 = inlined_call_operand.vmem [shape: f32[2,4,16], index: 15, kind: output, shape index: {0}]   ;;  %s1585_s16 = inlined_call_operand.vmem [shape: f32[2,8,16], index: 16, kind: output, shape index: {1}]  }
   0x1   :  { %1589 = sst [smem:[#allocation2_spill]] %s1569_s0 }
   0x2 LB: > { %s1204_s22 = sadd.s32 4294967295, %s1326_s21   ;;  %p1208_p0 = scmp.ge.s32.totalorder %s1326_s21, 1  ;;  %s1326_s21 = sphi %s1421_s21, %s27_s21  }
   0x3   : > { %p491_p1 = scmp.lt.s32.totalorder %s1326_s21, 3 }
   0x5   : > { %p492_p2 = pnand %p1208_p0, %p491_p1 }
   0x6   : > { %p555_p3 = scmp.lt.s32.totalorder (!%p492_p2), %s1204_s22, 1  ;;  %s1590_s30 = sld [smem:[#allocation2_spill]] (!%p492_p2) }
   0x7   : > { %495 = sbr.rel (%p492_p2) target bundleno = 2058 (0x80a), region = 80  ;;  %s1328_s17 = smov (!%p492_p2), 2  }
   0x8   : > { %s1330_s18 = smov (!%p492_p2), 124   ;;  %s1587_s19 = smov (!%p492_p2), 125  }
   0x9   : > { %s1334_s20 = smov (!%p492_p2), 126   ;;  %s1335_s25 = smov (!%p492_p2), 127  }
   0xc   : > { %s1594_s22 = smov (!%p555_p3, %s1204_s22), 1  ;;  %v1329_v2 = vmov 0.0   ;;  %vm596_vm0 = vcmask 15360   ;;  %vm598_vm1 = vcmask 146432   ;;  %vm1331_vm2 = vmmov 0  }
   0xd   : > { %s1586_s23 = sshll.u32 %s1594_s22, 3  ;;  %s1433_s24 = sshll.u32 %s1594_s22, 2  ;;  %1246 = vmatprep.subr.mxu0 %v1329_v2  ;;  %1259 = vmatprep.subr.mxu1 %v1329_v2  ;;  %v1333_v9 = vmov 0   ;;  %v583_v11 = vld [vmem:[%s1573_s4] sm:$0xf]  ;;  %vm613_vm3 = vcmask 1043456  }
   0xe   : > { %s562_s27 = scalar_lea.vmem %s1570_s1, %s1586_s23  ;;  %s558_s0 = scalar_lea.vmem %s1590_s30, %s1433_s24  ;;  %1256 = vmatprep.mubr.msk.f32.mxu0 %vm1331_vm2, %v1329_v2  ;;  %1265 = vmatprep.mubr.msk.f32.mxu1 %vm1331_vm2, %v1329_v2  ;;  %v582_v20 = vld [vmem:[%s1572_s3] sm:$0xf]  ;;  %vm635_vm4 = vcmask 326656   ;;  %vm709_vm5 = vcmask 162816   ;;  %vm791_vm6 = vcmask 125952   ;;  %vm1082_vm7 = vcmask 130048  }
   0xf   : > { %v580_v0 = vld [vmem:[%s562_s27] sm:$0xff]  ;;  %1302 = vset.pattern.permute.xlu0 %v1333_v9  ;;  %1303 = vset.pattern.permute.xlu1 %v1333_v9  ;;  %s566_s30 = scalar_lea.vmem %s1576_s7, %s1433_s24  ;;  %s1591_s23 = smov 125  }
  0x10   : > { %617 = vrot.lane.b32.xlu0 %v580_v0, %s1328_s17  ;;  %v1445_v1 = vld [vmem:[%s558_s0] sm:$0xf] }
  0x11   : > { %v581_v22 = vld [vmem:[%s1571_s2] sm:$0xf] }
  0x12   : > { %v584_v32 = vld [vmem:[%s1574_s5] sm:$0xf] }
  0x13   : > { %v586_v33 = vld [vmem:[%s566_s30] sm:$0xf]  ;;  %s574_s30 = scalar_lea.vmem %s1584_s15, %s1433_s24 }
  0x14   : > { %593 = vrot.lane.b32.xlu0 %v1445_v1, %s1328_s17  ;;  %v585_v40 = vld [vmem:[%s1575_s6] sm:$0xf] }
  0x82   : > { %v618_v3 = vpop.permute.xlu0 %617 }
  0x83   : > { %v620_v4 = vsel %vm596_vm0, 0.0, %v618_v3 }
  0x84   : > { %v621_v5 = vsel %vm598_vm1, %v620_v4, 0.0 }
  0x85   : > { %632 = vrot.lane.b32.xlu1 %v621_v5, %s1330_s18 }
  0x86   : > { %v594_v6 = vpop.permute.xlu0 %593 }
  0x87   : > { %v597_v7 = vsel %vm596_vm0, 0.0, %v594_v6  ;;  %v589_v6 = vld [vmem:[%s1579_s10] sm:$0xf] }
  0x88   : > { %v599_v8 = vsel %vm598_vm1, %v597_v7, 0.0 }
  0x89   : > { %629 = vrot.lane.b32.xlu1 %v621_v5, %s1587_s19  ;;  %611 = vrot.lane.b32.xlu0 %v599_v8, %s1330_s18  ;;  %v601_v10 = vrot.slane %v599_v8, 4 }
  0x8d   : > { %626 = vrot.lane.b32.xlu1 %v621_v5, %s1334_s20  ;;  %605 = vrot.lane.b32.xlu0 %v599_v8, %s1334_s20 }
  0x91   : > { %623 = vrot.lane.b32.xlu0 %v621_v5, %s1335_s25  ;;  %608 = vrot.lane.b32.xlu1 %v601_v10, %s1587_s19  ;;  %s570_s19 = scalar_lea.vmem %s1577_s8, %s1433_s24 }
  0x92   : > { %v587_v34 = vld [vmem:[%s570_s19] sm:$0xf] }
  0x95   : > { %602 = vrot.lane.b32.xlu1 %v601_v10, %s1335_s25  ;;  %787 = vperm.xlu0 %1302, %v583_v11  }
  0xf7   : > { %v633_v12 = vpop.permute.xlu1 %632 }
  0xf8   : > { %1247 = vmatpush3.msra.mxu0 %v633_v12  ;;  %v588_v12 = vld [vmem:[%s1578_s9] sm:$0xf] }
  0xf9   : > { %1248 = vmatprep.subr.mxu0 %v1329_v2 }
  0xfb   : > { %v630_v13 = vpop.permute.xlu1 %629  ;;  %v612_v14 = vpop.permute.xlu0 %611 }
  0xfc   : > { %1249 = vmatpush3.msra.mxu0 %v630_v13  ;;  %1260 = vmatpush3.msk.msra.mxu1 %vm613_vm3, %v612_v14 }
  0xfd   : > { %1250 = vmatprep.subr.mxu0 %v1329_v2  ;;  %1261 = vmatprep.subr.mxu1 %v1329_v2 }
  0xff   : > { %v627_v15 = vpop.permute.xlu1 %626  ;;  %v606_v16 = vpop.permute.xlu0 %605 }
 0x100   : > { %1251 = vmatpush3.msra.mxu0 %v627_v15 }
 0x101   : > { %1252 = vmatprep.subr.mxu0 %v1329_v2 }
 0x103   : > { %v624_v17 = vpop.permute.xlu0 %623  ;;  %v609_v18 = vpop.permute.xlu1 %608 }
 0x104   : > { %1253 = vmatpush3.msra.mxu0 %v624_v17  ;;  %v615_v19 = vsel %vm613_vm3, %v606_v16, %v609_v18 }
 0x105   : > { %1254 = vmatprep.subr.mxu0 %v1329_v2  ;;  %1262 = vmatpush3.msra.mxu1 %v615_v19  ;;  %v590_v19 = vld [vmem:[%s1580_s11] sm:$0xf] }
 0x106   : > { %1255 = vmatpush3.msk.msra.mxu0 %vm598_vm1, %v620_v4  ;;  %1263 = vmatprep.subr.mxu1 %v1329_v2 }
 0x107   : > { %v603_v21 = vpop.permute.xlu1 %602  ;;  %1257 = vmatmul.mubr.msk.f32.vlgmr.msra.gmra.mxu0 %vm635_vm4, %v582_v20  ;;  %1277 = vmatprep.subr.mxu0 %v1329_v2 }
 0x108   : > { %v614_v23 = vsel %vm613_vm3, %v599_v8, %v603_v21  ;;  %1283 = vmatprep.mubr.msk.f32.mxu0 %vm1331_vm2, %v1329_v2 }
 0x109   : > { %1264 = vmatpush3.msra.mxu1 %v614_v23 }
 0x10a   : > { %1266 = vmatmul.mubr.msk.f32.vlgmr.msra.gmra.mxu1 %vm709_vm5, %v581_v22  ;;  %1268 = vmatprep.subr.mxu1 %v1329_v2 }
 0x10b   : > { %1274 = vmatprep.mubr.msk.f32.mxu1 %vm1331_vm2, %v1329_v2 }
 0x110   : > { %v788_v27 = vpop.permute.xlu0 %787 }
 0x1c7   : > { %v705_v24 = vpop.f32.mrf.mxu0 }
 0x1c9   : > { %v1258_v25 = vpop.f32.mrf.mxu0 }
 0x1ca   : > { %v781_v26 = vpop.f32.mrf.mxu1  ;;  %v591_v25 = vld [vmem:[%s1581_s12] sm:$0xf] }
 0x1cb   : > { %v782_v28 = vadd.f32 %v781_v26, %v705_v24 }
 0x1cc   : > { %v1267_v29 = vpop.f32.mrf.mxu1 }
 0x1cd   : > { %v790_v30 = vadd.f32 %v788_v27, %v782_v28 }
 0x1cf   : > { %v792_v31 = vsel %vm791_vm6, %v790_v30, 0.0 }
 0x1d0   : > { %793 = vadd.xlane.f32.xlu1 %v792_v31 }
 0x1e1   : > { %808 = vperm.xlu1 %1303, %v584_v32  }
 0x1e5   : > { %827 = vperm.xlu1 %1303, %v586_v33  }
 0x1e9   : > { %833 = vperm.xlu1 %1303, %v587_v34  }
 0x259   : > { %v794_v35 = vpop.xlane.xlu1 %793 }
 0x25a   : > { %v796_v36 = vmul.f32 0.0625, %v794_v35 }
 0x25c   : > { %v797_v37 = vsub.f32 %v790_v30, %v796_v36 }
 0x25d   : > { %v809_v46 = vpop.permute.xlu1 %808 }
 0x25e   : > { %v798_v38 = vmul.f32 %v797_v37, %v797_v37 }
 0x260   : > { %v799_v39 = vsel %vm791_vm6, %v798_v38, 0.0 }
 0x261   : > { %800 = vadd.xlane.f32.xlu0 %v799_v39  ;;  %v828_v53 = vpop.permute.xlu1 %827 }
 0x265   : > { %v834_v57 = vpop.permute.xlu1 %833 }
 0x277   : > { %814 = vperm.xlu0 %1302, %v585_v40  }
 0x2ea   : > { %v801_v41 = vpop.xlane.xlu0 %800 }
 0x2eb   : > { %v802_v42 = vmul.f32 0.0625, %v801_v41 }
 0x2ed   : > { %v803_v43 = vadd.f32 1e-05, %v802_v42 }
 0x2ef   : > { %1304 = vrsqrt.f32 %v803_v43 }
 0x2f2   : > { %v815_v48 = vpop.permute.xlu0 %814 }
 0x2fc   : > { %v1305_v44 = vpop.eup %1304 }
 0x2fd   : > { %v805_v45 = vmul.f32 %v1305_v44, %v797_v37 }
 0x2ff   : > { %v811_v47 = vmul.f32 %v809_v46, %v805_v45 }
 0x301   : > { %v817_v49 = vadd.f32 %v815_v48, %v811_v47 }
 0x303   : > { %v1219_v50 = vmul.f32 -1.442695, %v817_v49 }
 0x305   : > { %1306 = vpow2.f32 %v1219_v50  ;;  %v979_v50 = vld [vmem:[%s1582_s13] sm:$0xff] }
 0x312   : > { %v1307_v51 = vpop.eup %1306 }
 0x313   : > { %v821_v52 = vadd.f32 1.0, %v1307_v51 }
 0x315   : > { %1308 = vrcp.f32 %v821_v52 }
 0x322   : > { %v1309_v54 = vpop.eup %1308 }
 0x323   : > { %v824_v55 = vmul.f32 %v1309_v54, %v817_v49 }
 0x325   : > { %v830_v56 = vmul.f32 %v828_v53, %v824_v55 }
 0x327   : > { %v836_v58 = vadd.f32 %v834_v57, %v830_v56 }
 0x329   : > { %v1220_v59 = vmul.f32 -1.442695, %v836_v58 }
 0x32b   : > { %1310 = vpow2.f32 %v1220_v59 }
 0x338   : > { %v1311_v60 = vpop.eup %1310 }
 0x339   : > { %v840_v61 = vadd.f32 1.0, %v1311_v60 }
 0x33b   : > { %1312 = vrcp.f32 %v840_v61 }
 0x348   : > { %v1313_v62 = vpop.eup %1312 }
 0x349   : > { %v843_v63 = vmul.f32 %v1313_v62, %v836_v58 }
 0x34b   : > { %845 = vrot.lane.b32.xlu0 %v843_v63, %s1328_s17 }
 0x3bd   : > { %v846_v0 = vpop.permute.xlu0 %845 }
 0x3be   : > { %v848_v3 = vsel %vm596_vm0, 0.0, %v846_v0 }
 0x3bf   : > { %v849_v4 = vsel %vm598_vm1, %v848_v3, 0.0 }
 0x3c0   : > { %855 = vrot.lane.b32.xlu0 %v849_v4, %s1334_s20  ;;  %861 = vrot.lane.b32.xlu1 %v849_v4, %s1330_s18  ;;  %v851_v5 = vrot.slane %v849_v4, 4 }
 0x3c4   : > { %852 = vrot.lane.b32.xlu0 %v851_v5, %s1335_s25  ;;  %858 = vrot.lane.b32.xlu1 %v851_v5, %s1591_s23 }
 0x3c8   : > { %867 = vperm.xlu1 %1303, %v589_v6  }
 0x432   : > { %v856_v7 = vpop.permute.xlu0 %855  ;;  %v862_v8 = vpop.permute.xlu1 %861 }
 0x433   : > { %1269 = vmatpush3.msk.msra.mxu1 %vm613_vm3, %v862_v8 }
 0x434   : > { %1270 = vmatprep.subr.mxu1 %v1329_v2 }
 0x436   : > { %v853_v9 = vpop.permute.xlu0 %852  ;;  %v859_v10 = vpop.permute.xlu1 %858 }
 0x437   : > { %v864_v11 = vsel %vm613_vm3, %v856_v7, %v859_v10  ;;  %v863_v13 = vsel %vm613_vm3, %v849_v4, %v853_v9 }
 0x438   : > { %1271 = vmatpush3.msra.mxu1 %v864_v11 }
 0x439   : > { %1272 = vmatprep.subr.mxu1 %v1329_v2 }
 0x43a   : > { %1273 = vmatpush3.msra.mxu1 %v863_v13 }
 0x43b   : > { %1275 = vmatmul.mubr.msk.f32.vlgmr.msra.gmra.mxu1 %vm709_vm5, %v588_v12 }
 0x443   : > { %v868_v14 = vpop.permute.xlu1 %867 }
 0x4fb   : > { %v941_v15 = vpop.f32.mrf.mxu1 }
 0x4fc   : > { %v942_v16 = vadd.f32 %v941_v15, %v868_v14 }
 0x4fd   : > { %v1276_v17 = vpop.f32.mrf.mxu1 }
 0x4fe   : > { %v945_v18 = vsel %vm791_vm6, %v942_v16, 0.0 }
 0x4ff   : > { %946 = vadd.xlane.f32.xlu0 %v945_v18 }
 0x515   : > { %960 = vperm.xlu0 %1302, %v590_v19  }
 0x588   : > { %v947_v20 = vpop.xlane.xlu0 %946 }
 0x589   : > { %v948_v21 = vmul.f32 0.0625, %v947_v20 }
 0x58b   : > { %v949_v22 = vsub.f32 %v942_v16, %v948_v21 }
 0x58d   : > { %v950_v23 = vmul.f32 %v949_v22, %v949_v22 }
 0x58f   : > { %v951_v24 = vsel %vm791_vm6, %v950_v23, 0.0 }
 0x590   : > { %952 = vadd.xlane.f32.xlu1 %v951_v24  ;;  %v961_v31 = vpop.permute.xlu0 %960 }
 0x5a1   : > { %966 = vperm.xlu1 %1303, %v591_v25  }
 0x619   : > { %v953_v26 = vpop.xlane.xlu1 %952 }
 0x61a   : > { %v954_v27 = vmul.f32 0.0625, %v953_v26 }
 0x61c   : > { %v955_v28 = vadd.f32 1e-05, %v954_v27 }
 0x61d   : > { %v967_v33 = vpop.permute.xlu1 %966 }
 0x61e   : > { %1314 = vrsqrt.f32 %v955_v28 }
 0x62b   : > { %v1315_v29 = vpop.eup %1314 }
 0x62c   : > { %v957_v30 = vmul.f32 %v1315_v29, %v949_v22 }
 0x62e   : > { %v963_v32 = vmul.f32 %v961_v31, %v957_v30 }
 0x630   : > { %v969_v34 = vadd.f32 %v967_v33, %v963_v32 }
 0x632   : > { %v1223_v35 = vmul.f32 -1.442695, %v969_v34 }
 0x634   : > { %1316 = vpow2.f32 %v1223_v35 }
 0x641   : > { %v1317_v36 = vpop.eup %1316 }
 0x642   : > { %v973_v37 = vadd.f32 1.0, %v1317_v36 }
 0x644   : > { %1318 = vrcp.f32 %v973_v37 }
 0x651   : > { %v1319_v38 = vpop.eup %1318 }
 0x652   : > { %v976_v39 = vmul.f32 %v1319_v38, %v969_v34 }
 0x654   : > { %v977_v40 = vadd.f32 %v976_v39, %v1445_v1  ;;  %v980_v1 = vld [vmem:[%s1583_s14] sm:$0xff] }
 0x656   : > { %982 = vrot.lane.b32.xlu0 %v977_v40, %s1328_s17  ;;  %978 = vst.msk [vmem:[%s574_s30] sm:$0xf] %vm791_vm6, %v977_v40 }
 0x6c8   : > { %v983_v41 = vpop.permute.xlu0 %982 }
 0x6c9   : > { %v985_v42 = vsel %vm596_vm0, 0.0, %v983_v41 }
 0x6ca   : > { %v986_v43 = vsel %vm598_vm1, %v985_v42, 0.0 }
 0x6cb   : > { %992 = vrot.lane.b32.xlu0 %v986_v43, %s1334_s20  ;;  %998 = vrot.lane.b32.xlu1 %v986_v43, %s1330_s18  ;;  %v988_v44 = vrot.slane %v986_v43, 4  ;;  %s1592_s20 = sshll.u32 %s1594_s22, 3 }
 0x6cc   : > { %s578_s26 = scalar_lea.vmem %s1585_s16, %s1592_s20 }
 0x6cf   : > { %989 = vrot.lane.b32.xlu0 %v988_v44, %s1335_s25  ;;  %995 = vrot.lane.b32.xlu1 %v988_v44, %s1591_s23 }
 0x6d3   : > { %1004 = vperm.xlu1 %1303, %v980_v1  }
 0x73d   : > { %v993_v45 = vpop.permute.xlu0 %992  ;;  %v999_v46 = vpop.permute.xlu1 %998 }
 0x73e   : > { %1278 = vmatpush3.msk.msra.mxu0 %vm613_vm3, %v999_v46 }
 0x73f   : > { %1279 = vmatprep.subr.mxu0 %v1329_v2 }
 0x741   : > { %v990_v47 = vpop.permute.xlu0 %989  ;;  %v996_v48 = vpop.permute.xlu1 %995 }
 0x742   : > { %v1001_v49 = vsel %vm613_vm3, %v993_v45, %v996_v48  ;;  %v1000_v51 = vsel %vm613_vm3, %v986_v43, %v990_v47 }
 0x743   : > { %1280 = vmatpush3.msra.mxu0 %v1001_v49 }
 0x744   : > { %1281 = vmatprep.subr.mxu0 %v1329_v2 }
 0x745   : > { %1282 = vmatpush3.msra.mxu0 %v1000_v51 }
 0x746   : > { %1284 = vmatmul.mubr.msk.f32.vlgmr.msra.gmra.mxu0 %vm709_vm5, %v979_v50 }
 0x74e   : > { %v1005_v52 = vpop.permute.xlu1 %1004 }
 0x806   : > { %v1078_v53 = vpop.f32.mrf.mxu0 }
 0x807   : > { %v1079_v54 = vadd.f32 %v1078_v53, %v1005_v52 }
 0x808   : > { %v1285_v55 = vpop.f32.mrf.mxu0 }
 0x809   : > { %1083 = vst.msk [vmem:[%s578_s26] sm:$0xff] %vm1082_vm7, %v1079_v54 }
 0x80a PF: > { %s27_s21 = sadd.s32 1, %s1326_s21  }
 0x80b   : > { %p24_p4 = scmp.ge.s32.totalorder %s27_s21, 4  }
 0x80d   :  { %26 = sbr.rel (!%p24_p4) target bundleno = 2 (0x2), region = 131 }

// kernel: unet1d_forward.11
= control target key start
LH: loop header
LB: loop body
LE: loop exit
PB: predicated region body
PF: predicated region fallthrough
CT: control target
= control target key end

     0   :  { %s1561_s21 = smov 0   ;;  %s1710_s0 = inlined_call_operand.vmem [shape: f32[2,8,16], index: 0, kind: input, shape index: {}]   ;;  %s1711_s1 = inlined_call_operand.vmem [shape: f32[2,8,16], index: 1, kind: input, shape index: {}]   ;;  %s1712_s2 = inlined_call_operand.vmem [shape: f32[8,40], index: 2, kind: input, shape index: {}]   ;;  %s1713_s3 = inlined_call_operand.vmem [shape: f32[8,40], index: 3, kind: input, shape index: {}]   ;;  %s1714_s4 = inlined_call_operand.vmem [shape: f32[8,1], index: 4, kind: input, shape index: {}, may-alias: {4,6,10,12}]   ;;  %s1715_s5 = inlined_call_operand.vmem [shape: f32[8,1], index: 5, kind: input, shape index: {}, may-alias: {5,11}]   ;;  %s1716_s6 = inlined_call_operand.vmem [shape: f32[8,1], index: 6, kind: input, shape index: {}, may-alias: {4,6,10,12}]   ;;  %s1717_s7 = inlined_call_operand.vmem [shape: f32[2,8,1], index: 7, kind: input, shape index: {}]   ;;  %s1718_s8 = inlined_call_operand.vmem [shape: f32[2,8,1], index: 8, kind: input, shape index: {}]   ;;  %s1719_s9 = inlined_call_operand.vmem [shape: f32[8,40], index: 9, kind: input, shape index: {}]   ;;  %s1720_s10 = inlined_call_operand.vmem [shape: f32[8,1], index: 10, kind: input, shape index: {}, may-alias: {4,6,10,12}]   ;;  %s1721_s11 = inlined_call_operand.vmem [shape: f32[8,1], index: 11, kind: input, shape index: {}, may-alias: {5,11}]   ;;  %s1722_s12 = inlined_call_operand.vmem [shape: f32[8,1], index: 12, kind: input, shape index: {}, may-alias: {4,6,10,12}]   ;;  %s1723_s13 = inlined_call_operand.vmem [shape: f32[16,40], index: 13, kind: input, shape index: {}]   ;;  %s1724_s14 = inlined_call_operand.vmem [shape: f32[16,1], index: 14, kind: input, shape index: {}]   ;;  %s1725_s15 = inlined_call_operand.vmem [shape: f32[2,8,16], index: 15, kind: output, shape index: {0}]   ;;  %s1726_s16 = inlined_call_operand.vmem [shape: f32[2,16,8], index: 16, kind: output, shape index: {1}]  }
   0x1   :  { %1729 = sst [smem:[#allocation2_spill]] %s1710_s0 }
   0x2 LB: > { %s1303_s22 = sadd.s32 4294967295, %s1465_s21   ;;  %p1307_p0 = scmp.ge.s32.totalorder %s1465_s21, 1  ;;  %s1465_s21 = sphi %s1561_s21, %s27_s21  }
   0x3   : > { %p491_p1 = scmp.lt.s32.totalorder %s1465_s21, 3 }
   0x5   : > { %p492_p2 = pnand %p1307_p0, %p491_p1 }
   0x6   : > { %p556_p3 = scmp.lt.s32.totalorder (!%p492_p2), %s1303_s22, 1  ;;  %s1730_s26 = sld [smem:[#allocation2_spill]] (!%p492_p2) }
   0x7   : > { %495 = sbr.rel (%p492_p2) target bundleno = 2260 (0x8d4), region = 80  ;;  %s1467_s0 = smov (!%p492_p2), 2  }
   0x8   : > { %s1469_s17 = smov (!%p492_p2), 125   ;;  %s1470_s18 = smov (!%p492_p2), 124  }
   0x9   : > { %s1727_s19 = smov (!%p492_p2), 126   ;;  %s1474_s20 = smov (!%p492_p2), 127  }
   0xc   : > { %s1733_s22 = smov (!%p556_p3, %s1303_s22), 1  ;;  %v1468_v2 = vmov 0.0   ;;  %vm598_vm0 = vcmask 15360   ;;  %vm600_vm1 = vcmask 146432   ;;  %vm1471_vm2 = vmmov 0   ;;  %v585_v10 = vld [vmem:[%s1714_s4] sm:$0xff] }
   0xd   : > { %s1572_s23 = sshll.u32 %s1733_s22, 3  ;;  %1378 = vmatprep.subr.mxu1 %v1468_v2  ;;  %1365 = vmatprep.subr.mxu0 %v1468_v2  ;;  %v1473_v9 = vmov 0   ;;  %v583_v17 = vld [vmem:[%s1712_s2] sm:$0xff]  ;;  %vm634_vm3 = vcmask 326656   ;;  %vm787_vm4 = vcmask 130048   ;;  %vm1178_vm7 = vcmask 64512  }
   0xe   : > { %s559_s27 = scalar_lea.vmem %s1730_s26, %s1572_s23  ;;  %s563_s30 = scalar_lea.vmem %s1711_s1, %s1572_s23  ;;  %1388 = vmatprep.mubr.msk.f32.mxu1 %vm1471_vm2, %v1468_v2  ;;  %1375 = vmatprep.mubr.msk.f32.mxu0 %vm1471_vm2, %v1468_v2  ;;  %v584_v20 = vld [vmem:[%s1713_s3] sm:$0xff] }
   0xf   : > { %v1582_v0 = vld [vmem:[%s559_s27] sm:$0xff]  ;;  %1441 = vset.pattern.permute.xlu0 %v1473_v9  ;;  %1442 = vset.pattern.permute.xlu1 %v1473_v9  ;;  %s567_s27 = scalar_lea.vmem %s1717_s7, %s1572_s23  ;;  %s575_s28 = scalar_lea.vmem %s1725_s15, %s1572_s23 }
  0x10   : > { %595 = vrot.lane.b32.xlu0 %v1582_v0, %s1467_s0  ;;  %v582_v1 = vld [vmem:[%s563_s30] sm:$0xff] }
  0x11   : > { %v586_v29 = vld [vmem:[%s1715_s5] sm:$0xff] }
  0x12   : > { %v588_v30 = vld [vmem:[%s567_s27] sm:$0xff] }
  0x13   : > { %v587_v37 = vld [vmem:[%s1716_s6] sm:$0xff] }
  0x14   : > { %616 = vrot.lane.b32.xlu0 %v582_v1, %s1467_s0  ;;  %v591_v1 = vld [vmem:[%s1720_s10] sm:$0xff] }
  0x82   : > { %v596_v3 = vpop.permute.xlu0 %595 }
  0x83   : > { %v599_v4 = vsel %vm598_vm0, 0.0, %v596_v3 }
  0x84   : > { %v601_v5 = vsel %vm600_vm1, %v599_v4, 0.0 }
  0x85   : > { %609 = vrot.lane.b32.xlu0 %v601_v5, %s1469_s17  ;;  %612 = vrot.lane.b32.xlu1 %v601_v5, %s1470_s18 }
  0x86   : > { %v617_v6 = vpop.permute.xlu0 %616 }
  0x87   : > { %v619_v7 = vsel %vm598_vm0, 0.0, %v617_v6 }
  0x88   : > { %v620_v8 = vsel %vm600_vm1, %v619_v7, 0.0 }
  0x89   : > { %606 = vrot.lane.b32.xlu0 %v601_v5, %s1727_s19  ;;  %631 = vrot.lane.b32.xlu1 %v620_v8, %s1470_s18 }
  0x8d   : > { %603 = vrot.lane.b32.xlu0 %v601_v5, %s1474_s20  ;;  %628 = vrot.lane.b32.xlu1 %v620_v8, %s1469_s17 }
  0x91   : > { %625 = vrot.lane.b32.xlu1 %v620_v8, %s1727_s19  ;;  %783 = vperm.xlu0 %1441, %v585_v10   ;;  %s571_s19 = scalar_lea.vmem %s1718_s8, %s1572_s23 }
  0x92   : > { %v589_v31 = vld [vmem:[%s571_s19] sm:$0xff]  ;;  %s1731_s19 = smov 126  }
  0x95   : > { %622 = vrot.lane.b32.xlu1 %v620_v8, %s1474_s20 }
  0xf7   : > { %v613_v11 = vpop.permute.xlu1 %612  ;;  %v610_v12 = vpop.permute.xlu0 %609 }
  0xf8   : > { %1379 = vmatpush3.msra.mxu1 %v613_v11 }
  0xf9   : > { %1380 = vmatprep.subr.mxu1 %v1468_v2 }
  0xfa   : > { %1381 = vmatpush3.msra.mxu1 %v610_v12 }
  0xfb   : > { %v632_v13 = vpop.permute.xlu1 %631  ;;  %1382 = vmatprep.subr.mxu1 %v1468_v2  ;;  %v607_v14 = vpop.permute.xlu0 %606 }
  0xfc   : > { %1366 = vmatpush3.msra.mxu0 %v632_v13  ;;  %1383 = vmatpush3.msra.mxu1 %v607_v14  ;;  %v592_v13 = vld [vmem:[%s1721_s11] sm:$0xff] }
  0xfd   : > { %1367 = vmatprep.subr.mxu0 %v1468_v2  ;;  %1384 = vmatprep.subr.mxu1 %v1468_v2 }
  0xff   : > { %v629_v15 = vpop.permute.xlu1 %628  ;;  %v604_v16 = vpop.permute.xlu0 %603 }
 0x100   : > { %1368 = vmatpush3.msra.mxu0 %v629_v15  ;;  %1385 = vmatpush3.msra.mxu1 %v604_v16 }
 0x101   : > { %1386 = vmatprep.subr.mxu1 %v1468_v2  ;;  %1369 = vmatprep.subr.mxu0 %v1468_v2 }
 0x102   : > { %1387 = vmatpush3.msk.msra.mxu1 %vm600_vm1, %v599_v4 }
 0x103   : > { %v626_v18 = vpop.permute.xlu1 %625  ;;  %1389 = vmatmul.mubr.msk.f32.vlgmr.msra.gmra.mxu1 %vm634_vm3, %v583_v17 }
 0x104   : > { %1370 = vmatpush3.msra.mxu0 %v626_v18  ;;  %v593_v18 = vld [vmem:[%s1722_s12] sm:$0xff] }
 0x105   : > { %1371 = vmatprep.subr.mxu0 %v1468_v2 }
 0x107   : > { %v623_v19 = vpop.permute.xlu1 %622 }
 0x108   : > { %1372 = vmatpush3.msra.mxu0 %v623_v19 }
 0x109   : > { %1373 = vmatprep.subr.mxu0 %v1468_v2 }
 0x10a   : > { %1374 = vmatpush3.msk.msra.mxu0 %vm600_vm1, %v619_v7  ;;  %v590_v7 = vld [vmem:[%s1719_s9] sm:$0xff] }
 0x10b   : > { %1376 = vmatmul.mubr.msk.f32.vlgmr.msra.gmra.mxu0 %vm634_vm3, %v584_v20  ;;  %1391 = vmatprep.subr.mxu0 %v1468_v2 }
 0x10c   : > { %1401 = vmatprep.mubr.msk.f32.mxu0 %vm1471_vm2, %v1468_v2  ;;  %v784_v24 = vpop.permute.xlu0 %783 }
 0x1c3   : > { %v777_v21 = vpop.f32.mrf.mxu1 }
 0x1c5   : > { %v1390_v22 = vpop.f32.mrf.mxu1 }
 0x1cb   : > { %v704_v23 = vpop.f32.mrf.mxu0 }
 0x1cc   : > { %v778_v25 = vadd.f32 %v777_v21, %v704_v23 }
 0x1cd   : > { %v1377_v26 = vpop.f32.mrf.mxu0 }
 0x1ce   : > { %v786_v27 = vadd.f32 %v784_v24, %v778_v25 }
 0x1d0   : > { %v788_v28 = vsel %vm787_vm4, %v786_v27, 0.0 }
 0x1d1   : > { %789 = vadd.xlane.f32.xlu1 %v788_v28 }
 0x1e2   : > { %804 = vperm.xlu1 %1442, %v586_v29  }
 0x1e6   : > { %823 = vperm.xlu1 %1442, %v588_v30  }
 0x1ea   : > { %829 = vperm.xlu1 %1442, %v589_v31  }
 0x25a   : > { %v790_v32 = vpop.xlane.xlu1 %789 }
 0x25b   : > { %v792_v33 = vmul.f32 0.0625, %v790_v32 }
 0x25d   : > { %v793_v34 = vsub.f32 %v786_v27, %v792_v33 }
 0x25e   : > { %v805_v43 = vpop.permute.xlu1 %804 }
 0x25f   : > { %v794_v35 = vmul.f32 %v793_v34, %v793_v34 }
 0x261   : > { %v795_v36 = vsel %vm787_vm4, %v794_v35, 0.0 }
 0x262   : > { %796 = vadd.xlane.f32.xlu0 %v795_v36  ;;  %v824_v50 = vpop.permute.xlu1 %823 }
 0x266   : > { %v830_v54 = vpop.permute.xlu1 %829 }
 0x278   : > { %810 = vperm.xlu0 %1441, %v587_v37  }
 0x2eb   : > { %v797_v38 = vpop.xlane.xlu0 %796 }
 0x2ec   : > { %v798_v39 = vmul.f32 0.0625, %v797_v38  ;;  %v973_v38 = vld [vmem:[%s1724_s14] sm:$0xff] }
 0x2ee   : > { %v799_v40 = vadd.f32 1e-05, %v798_v39 }
 0x2f0   : > { %1443 = vrsqrt.f32 %v799_v40 }
 0x2f3   : > { %v811_v45 = vpop.permute.xlu0 %810 }
 0x2fd   : > { %v1444_v41 = vpop.eup %1443 }
 0x2fe   : > { %v801_v42 = vmul.f32 %v1444_v41, %v793_v34  ;;  %v971_v34 = vld [vmem:[%s1723_s13] sm:$0xff] }
 0x2ff   : > { %1414 = vmatprep.mubr.msk.f32.mxu1 %vm634_vm3, %v971_v34 }
 0x300   : > { %v807_v44 = vmul.f32 %v805_v43, %v801_v42  ;;  %v972_v43 = vld [vmem:[%s1723_s13 + $0x8] sm:$0xff] }
 0x302   : > { %v813_v46 = vadd.f32 %v811_v45, %v807_v44  ;;  %v1085_v44 = vlaneseq }
 0x304   : > { %v1319_v47 = vmul.f32 -1.442695, %v813_v46  ;;  %v1086_v45 = vshrl.u32 %v1085_v44, 7 }
 0x306   : > { %1445 = vpow2.f32 %v1319_v47  ;;  %v1087_v47 = vadd.s32 8, %v1086_v45 }
 0x313   : > { %v1446_v48 = vpop.eup %1445 }
 0x314   : > { %v817_v49 = vadd.f32 1.0, %v1446_v48 }
 0x316   : > { %1447 = vrcp.f32 %v817_v49  ;;  %v1475_v49 = vmov 1.0  }
 0x323   : > { %v1448_v51 = vpop.eup %1447 }
 0x324   : > { %v820_v52 = vmul.f32 %v1448_v51, %v813_v46  ;;  %v1089_v46 = vand.u32 127, %v1085_v44 }
 0x326   : > { %v826_v53 = vmul.f32 %v824_v50, %v820_v52  ;;  %v1090_v48 = vmul.u32 2, %v1089_v46 }
 0x328   : > { %v832_v55 = vadd.f32 %v830_v54, %v826_v53  ;;  %vm1092_vm5 = vcmp.eq.s32.totalorder %v1087_v47, %v1090_v48  ;;  %vm1091_vm6 = vcmp.eq.s32.totalorder %v1086_v45, %v1090_v48 }
 0x32a   : > { %v1320_v56 = vmul.f32 -1.442695, %v832_v55 }
 0x32c   : > { %1449 = vpow2.f32 %v1320_v56 }
 0x339   : > { %v1450_v57 = vpop.eup %1449 }
 0x33a   : > { %v836_v58 = vadd.f32 1.0, %v1450_v57 }
 0x33c   : > { %1451 = vrcp.f32 %v836_v58 }
 0x349   : > { %v1452_v59 = vpop.eup %1451 }
 0x34a   : > { %v839_v60 = vmul.f32 %v1452_v59, %v832_v55 }
 0x34c   : > { %841 = vrot.lane.b32.xlu0 %v839_v60, %s1467_s0 }
 0x3be   : > { %v842_v61 = vpop.permute.xlu0 %841 }
 0x3bf   : > { %v844_v62 = vsel %vm598_vm0, 0.0, %v842_v61 }
 0x3c0   : > { %v845_v63 = vsel %vm600_vm1, %v844_v62, 0.0 }
 0x3c1   : > { %853 = vrot.lane.b32.xlu0 %v845_v63, %s1469_s17  ;;  %856 = vrot.lane.b32.xlu1 %v845_v63, %s1470_s18 }
 0x3c5   : > { %847 = vrot.lane.b32.xlu0 %v845_v63, %s1474_s20  ;;  %850 = vrot.lane.b32.xlu1 %v845_v63, %s1731_s19 }
 0x3c9   : > { %861 = vperm.xlu1 %1442, %v591_v1  }
 0x433   : > { %v854_v3 = vpop.permute.xlu0 %853  ;;  %v857_v4 = vpop.permute.xlu1 %856 }
 0x434   : > { %1392 = vmatpush3.msra.mxu0 %v857_v4 }
 0x435   : > { %1393 = vmatprep.subr.mxu0 %v1468_v2 }
 0x436   : > { %1394 = vmatpush3.msra.mxu0 %v854_v3 }
 0x437   : > { %1395 = vmatprep.subr.mxu0 %v1468_v2  ;;  %v851_v5 = vpop.permute.xlu1 %850  ;;  %v848_v6 = vpop.permute.xlu0 %847 }
 0x438   : > { %1396 = vmatpush3.msra.mxu0 %v851_v5 }
 0x439   : > { %1397 = vmatprep.subr.mxu0 %v1468_v2 }
 0x43a   : > { %1398 = vmatpush3.msra.mxu0 %v848_v6 }
 0x43b   : > { %1399 = vmatprep.subr.mxu0 %v1468_v2 }
 0x43c   : > { %1400 = vmatpush3.msk.msra.mxu0 %vm600_vm1, %v844_v62 }
 0x43d   : > { %1402 = vmatmul.mubr.msk.f32.vlgmr.msra.gmra.mxu0 %vm634_vm3, %v590_v7  ;;  %1417 = vmatprep.subr.msk.mxu0 %vm1092_vm5, %v1475_v49 }
 0x43e   : > { %1418 = vmatpush3.msk.msra.mxu0 %vm1092_vm5, %v1475_v49 }
 0x43f   : > { %1419 = vmatprep.subr.msk.mxu0 %vm1091_vm6, %v1475_v49 }
 0x440   : > { %1420 = vmatpush3.msk.msra.mxu0 %vm1091_vm6, %v1475_v49 }
 0x444   : > { %v862_v8 = vpop.permute.xlu1 %861 }
 0x4fd   : > { %v933_v9 = vpop.f32.mrf.mxu0 }
 0x4fe   : > { %v934_v10 = vadd.f32 %v933_v9, %v862_v8 }
 0x4ff   : > { %v1403_v11 = vpop.f32.mrf.mxu0 }
 0x500   : > { %v937_v12 = vsel %vm787_vm4, %v934_v10, 0.0 }
 0x501   : > { %938 = vadd.xlane.f32.xlu0 %v937_v12 }
 0x517   : > { %952 = vperm.xlu0 %1441, %v592_v13  }
 0x58a   : > { %v939_v14 = vpop.xlane.xlu0 %938 }
 0x58b   : > { %v940_v15 = vmul.f32 0.0625, %v939_v14 }
 0x58d   : > { %v941_v16 = vsub.f32 %v934_v10, %v940_v15 }
 0x58f   : > { %v942_v2 = vmul.f32 %v941_v16, %v941_v16 }
 0x591   : > { %v943_v17 = vsel %vm787_vm4, %v942_v2, 0.0 }
 0x592   : > { %944 = vadd.xlane.f32.xlu1 %v943_v17  ;;  %v953_v24 = vpop.permute.xlu0 %952 }
 0x5a3   : > { %958 = vperm.xlu1 %1442, %v593_v18  }
 0x61b   : > { %v945_v19 = vpop.xlane.xlu1 %944 }
 0x61c   : > { %v946_v20 = vmul.f32 0.0625, %v945_v19 }
 0x61e   : > { %v947_v21 = vadd.f32 1e-05, %v946_v20 }
 0x61f   : > { %v959_v26 = vpop.permute.xlu1 %958 }
 0x620   : > { %1453 = vrsqrt.f32 %v947_v21 }
 0x62d   : > { %v1454_v22 = vpop.eup %1453 }
 0x62e   : > { %v949_v23 = vmul.f32 %v1454_v22, %v941_v16 }
 0x630   : > { %v955_v25 = vmul.f32 %v953_v24, %v949_v23 }
 0x632   : > { %v961_v27 = vadd.f32 %v959_v26, %v955_v25 }
 0x634   : > { %v1323_v28 = vmul.f32 -1.442695, %v961_v27 }
 0x636   : > { %1455 = vpow2.f32 %v1323_v28 }
 0x643   : > { %v1456_v29 = vpop.eup %1455 }
 0x644   : > { %v965_v30 = vadd.f32 1.0, %v1456_v29 }
 0x646   : > { %1457 = vrcp.f32 %v965_v30 }
 0x653   : > { %v1458_v31 = vpop.eup %1457 }
 0x654   : > { %v968_v32 = vmul.f32 %v1458_v31, %v961_v27 }
 0x656   : > { %v969_v33 = vadd.f32 %v968_v32, %v1582_v0  ;;  %v974_v0 = vld [vmem:[%s1724_s14 + $0x8] sm:$0xff] }
 0x658   : > { %976 = vrot.lane.b32.xlu0 %v969_v33, %s1467_s0  ;;  %970 = vst.msk [vmem:[%s575_s28] sm:$0xff] %vm787_vm4, %v969_v33 }
 0x6ca   : > { %v977_v35 = vpop.permute.xlu0 %976 }
 0x6cb   : > { %v979_v36 = vsel %vm598_vm0, 0.0, %v977_v35 }
 0x6cc   : > { %v980_v37 = vsel %vm600_vm1, %v979_v36, 0.0 }
 0x6cd   : > { %988 = vrot.lane.b32.xlu0 %v980_v37, %s1469_s17  ;;  %991 = vrot.lane.b32.xlu1 %v980_v37, %s1470_s18 }
 0x6d1   : > { %982 = vrot.lane.b32.xlu0 %v980_v37, %s1474_s20  ;;  %985 = vrot.lane.b32.xlu1 %v980_v37, %s1731_s19  ;;  %s1335_s20 = sshll.u32 %s1733_s22, 4 }
 0x6d2   : > { %s580_s27 = scalar_lea.vmem %s1726_s16, %s1335_s20 }
 0x6d5   : > { %1001 = vperm.xlu0 %1441, %v974_v0   ;;  %996 = vperm.xlu1 %1442, %v973_v38  }
 0x73f   : > { %v989_v39 = vpop.permute.xlu0 %988  ;;  %v992_v40 = vpop.permute.xlu1 %991 }
 0x740   : > { %1404 = vmatprep.subr.mxu1 %v992_v40 }
 0x741   : > { %1405 = vmatpush3.msra.mxu1 %v992_v40 }
 0x742   : > { %1406 = vmatprep.subr.mxu1 %v989_v39 }
 0x743   : > { %1407 = vmatpush3.msra.mxu1 %v989_v39  ;;  %v986_v41 = vpop.permute.xlu1 %985  ;;  %v983_v42 = vpop.permute.xlu0 %982 }
 0x744   : > { %1408 = vmatprep.subr.mxu1 %v986_v41 }
 0x745   : > { %1409 = vmatpush3.msra.mxu1 %v986_v41 }
 0x746   : > { %1410 = vmatprep.subr.mxu1 %v983_v42 }
 0x747   : > { %1411 = vmatpush3.msra.mxu1 %v983_v42 }
 0x748   : > { %1412 = vmatprep.subr.msk.mxu1 %vm600_vm1, %v979_v36 }
 0x749   : > { %1413 = vmatpush3.msk.msra.mxu1 %vm600_vm1, %v979_v36 }
 0x74a   : > { %1415 = vmatmul.mubr.msk.f32.vlgmr.msra.gmra.mxu1 %vm634_vm3, %v972_v43 }
 0x750   : > { %v997_v51 = vpop.permute.xlu1 %996  ;;  %v1002_v53 = vpop.permute.xlu0 %1001 }
 0x80a   : > { %v1416_v50 = vpop.f32.mrf.mxu1 }
 0x80b   : > { %v1082_v55 = vadd.f32 %v1416_v50, %v1002_v53 }
 0x80c   : > { %v1076_v52 = vpop.f32.mrf.mxu1 }
 0x80d   : > { %v1077_v54 = vadd.f32 %v1076_v52, %v997_v51 }
 0x80f   : > { %1421 = vmatprep.mubr.msk.f32.mxu0 %vm787_vm4, %v1077_v54 }
 0x810   : > { %1422 = vmatmul.mubr.msk.f32.vlgmr.msra.gmra.mxu0 %vm787_vm4, %v1082_v55 }
 0x8d0   : > { %v1423_v56 = vpop.f32.mrf.mxu0 }
 0x8d1   : > { %1180 = vst.msk [vmem:[%s580_s27 + $0x8] sm:$0xff] %vm1178_vm7, %v1423_v56 }
 0x8d2   : > { %v1169_v57 = vpop.f32.mrf.mxu0 }
 0x8d3   : > { %1179 = vst.msk [vmem:[%s580_s27] sm:$0xff] %vm1178_vm7, %v1169_v57 }
 0x8d4 PF: > { %s27_s21 = sadd.s32 1, %s1465_s21  }
 0x8d5   : > { %p24_p4 = scmp.ge.s32.totalorder %s27_s21, 4  }
 0x8d7   :  { %26 = sbr.rel (!%p24_p4) target bundleno = 2 (0x2), region = 131 }

// kernel: unet1d_forward.12
= control target key start
LH: loop header
LB: loop body
LE: loop exit
PB: predicated region body
PF: predicated region fallthrough
CT: control target
= control target key end

     0   :  { %s523_s12 = smov 0   ;;  %s555_s0 = inlined_call_operand.vmem [shape: f32[2,8,16], index: 0, kind: input, shape index: {}]   ;;  %s556_s1 = inlined_call_operand.vmem [shape: f32[8,40], index: 1, kind: input, shape index: {}]   ;;  %s557_s2 = inlined_call_operand.vmem [shape: f32[8,1], index: 2, kind: input, shape index: {}]   ;;  %s558_s3 = inlined_call_operand.vmem [shape: f32[2,8,8], index: 3, kind: output, shape index: {}]  }
   0x1 LB: > { %s417_s13 = sadd.s32 4294967295, %s492_s12   ;;  %p421_p0 = scmp.ge.s32.totalorder %s492_s12, 1  ;;  %s492_s12 = sphi %s523_s12, %s13_s12  }
   0x2   : > { %p136_p1 = scmp.lt.s32.totalorder %s492_s12, 3 }
   0x4   : > { %p137_p2 = pnand %p421_p0, %p136_p1 }
   0x5   : > { %p158_p3 = scmp.lt.s32.totalorder (!%p137_p2), %s417_s13, 1  ;;  %s495_s18 = smov (!%p137_p2), 2  }
   0x6   : > { %140 = sbr.rel (%p137_p2) target bundleno = 679 (0x2a7), region = 32  ;;  %s498_s19 = smov (!%p137_p2), 125  }
   0x7   : > { %s499_s20 = smov (!%p137_p2), 124   ;;  %s501_s21 = smov (!%p137_p2), 126  }
   0x8   : > { %s502_s22 = smov (!%p137_p2), 127  }
   0xb   : > { %v494_v0 = vmov 0.0   ;;  %s560_s13 = smov (!%p158_p3, %s417_s13), 1  ;;  %vm173_vm0 = vcmask 15360   ;;  %vm496_vm1 = vmmov 0   ;;  %vm175_vm2 = vcmask 146432   ;;  %v168_v12 = vld [vmem:[%s557_s2] sm:$0xff] }
   0xc   : > { %443 = vmatprep.subr.mxu0 %v494_v0  ;;  %456 = vmatprep.subr.mxu1 %v494_v0  ;;  %s422_s14 = sshll.u32 %s560_s13, 3  ;;  %v269_v2 = vlaneseq  ;;  %v497_v4 = vmov 0   ;;  %v500_v11 = vmov 1.0   ;;  %v167_v17 = vld [vmem:[%s556_s1] sm:$0xff]  ;;  %vm195_vm4 = vcmask 326656  }
   0xd   : > { %s161_s17 = scalar_lea.vmem %s555_s0, %s422_s14  ;;  %453 = vmatprep.mubr.msk.f32.mxu0 %vm496_vm1, %v494_v0  ;;  %460 = vmatprep.mubr.msk.f32.mxu1 %vm496_vm1, %v494_v0  ;;  %vm281_vm6 = vcmask 130048   ;;  %s165_s29 = scalar_lea.vmem %s558_s3, %s422_s14  ;;  %vm362_vm7 = vcmask 64512  }
   0xe   : > { %v166_v1 = vld [vmem:[%s161_s17] sm:$0xff]  ;;  %480 = vset.pattern.permute.xlu1 %v497_v4  ;;  %481 = vset.pattern.permute.xlu0 %v497_v4  ;;  %v270_v6 = vshrl.u32 %v269_v2, 7  ;;  %v273_v7 = vand.u32 127, %v269_v2 }
   0xf   : > { %170 = vrot.lane.b32.xlu0 %v166_v1, %s495_s18 }
  0x10   : > { %v271_v9 = vadd.s32 8, %v270_v6  ;;  %v274_v10 = vmul.u32 2, %v273_v7 }
  0x12   : > { %vm276_vm3 = vcmp.eq.s32.totalorder %v271_v9, %v274_v10  ;;  %vm275_vm5 = vcmp.eq.s32.totalorder %v270_v6, %v274_v10 }
  0x13   : > { %457 = vmatpush3.msk.msra.mxu1 %vm276_vm3, %v500_v11 }
  0x14   : > { %458 = vmatprep.subr.mxu1 %v494_v0 }
  0x15   : > { %459 = vmatpush3.msk.msra.mxu1 %vm275_vm5, %v500_v11 }
  0x81   : > { %v171_v3 = vpop.permute.xlu0 %170 }
  0x82   : > { %v174_v5 = vsel %vm173_vm0, 0.0, %v171_v3 }
  0x83   : > { %v176_v8 = vsel %vm175_vm2, %v174_v5, 0.0 }
  0x84   : > { %184 = vrot.lane.b32.xlu1 %v176_v8, %s498_s19  ;;  %187 = vrot.lane.b32.xlu0 %v176_v8, %s499_s20 }
  0x88   : > { %181 = vrot.lane.b32.xlu1 %v176_v8, %s501_s21  ;;  %178 = vrot.lane.b32.xlu0 %v176_v8, %s502_s22 }
  0x8c   : > { %192 = vperm.xlu1 %480, %v168_v12  }
  0xf6   : > { %v185_v13 = vpop.permute.xlu1 %184  ;;  %v188_v14 = vpop.permute.xlu0 %187 }
  0xf7   : > { %444 = vmatpush3.msra.mxu0 %v188_v14 }
  0xf8   : > { %445 = vmatprep.subr.mxu0 %v494_v0 }
  0xf9   : > { %446 = vmatpush3.msra.mxu0 %v185_v13 }
  0xfa   : > { %v182_v15 = vpop.permute.xlu1 %181  ;;  %447 = vmatprep.subr.mxu0 %v494_v0  ;;  %v179_v16 = vpop.permute.xlu0 %178 }
  0xfb   : > { %448 = vmatpush3.msra.mxu0 %v182_v15 }
  0xfc   : > { %449 = vmatprep.subr.mxu0 %v494_v0 }
  0xfd   : > { %450 = vmatpush3.msra.mxu0 %v179_v16 }
  0xfe   : > { %451 = vmatprep.subr.mxu0 %v494_v0 }
  0xff   : > { %452 = vmatpush3.msk.msra.mxu0 %vm175_vm2, %v174_v5 }
 0x100   : > { %454 = vmatmul.mubr.msk.f32.vlgmr.msra.gmra.mxu0 %vm195_vm4, %v167_v17 }
 0x107   : > { %v193_v18 = vpop.permute.xlu1 %192 }
 0x1c0   : > { %v265_v19 = vpop.f32.mrf.mxu0 }
 0x1c1   : > { %v266_v20 = vadd.f32 %v265_v19, %v193_v18 }
 0x1c2   : > { %v455_v21 = vpop.f32.mrf.mxu0 }
 0x1c3   : > { %461 = vmatmul.mubr.msk.f32.vlgmr.msra.gmra.mxu1 %vm281_vm6, %v266_v20 }
 0x283   : > { %v351_v22 = vpop.f32.mrf.mxu1 }
 0x284   : > { %v431_v23 = vmul.f32 -1.442695, %v351_v22 }
 0x285   : > { %v462_v24 = vpop.f32.mrf.mxu1 }
 0x286   : > { %482 = vpow2.f32 %v431_v23 }
 0x293   : > { %v483_v25 = vpop.eup %482 }
 0x294   : > { %v358_v26 = vadd.f32 1.0, %v483_v25 }
 0x296   : > { %484 = vrcp.f32 %v358_v26 }
 0x2a3   : > { %v485_v27 = vpop.eup %484 }
 0x2a4   : > { %v361_v28 = vmul.f32 %v485_v27, %v351_v22 }
 0x2a6   : > { %363 = vst.msk [vmem:[%s165_s29] sm:$0xff] %vm362_vm7, %v361_v28 }
 0x2a7 PF: > { %s13_s12 = sadd.s32 1, %s492_s12  }
 0x2a8   : > { %p10_p4 = scmp.ge.s32.totalorder %s13_s12, 4  }
 0x2aa   :  { %12 = sbr.rel (!%p10_p4) target bundleno = 1 (0x1), region = 62 }

// kernel: unet1d_forward.13
= control target key start
LH: loop header
LB: loop body
LE: loop exit
PB: predicated region body
PF: predicated region fallthrough
CT: control target
= control target key end

     0   :  { %s1409_s25 = smov 0   ;;  %s1579_s0 = inlined_call_operand.vmem [shape: f32[2,16,8], index: 0, kind: input, shape index: {}]   ;;  %s1580_s1 = inlined_call_operand.vmem [shape: f32[2,8,8], index: 1, kind: input, shape index: {}]   ;;  %s1581_s2 = inlined_call_operand.vmem [shape: f32[16,80], index: 2, kind: input, shape index: {}]   ;;  %s1582_s3 = inlined_call_operand.vmem [shape: f32[16,40], index: 3, kind: input, shape index: {}]   ;;  %s1583_s4 = inlined_call_operand.vmem [shape: f32[16,1], index: 4, kind: input, shape index: {}, may-alias: {4,6,10,12}]   ;;  %s1584_s5 = inlined_call_operand.vmem [shape: f32[16,1], index: 5, kind: input, shape index: {}, may-alias: {5,11}]   ;;  %s1585_s6 = inlined_call_operand.vmem [shape: f32[16,1], index: 6, kind: input, shape index: {}, may-alias: {4,6,10,12}]   ;;  %s1586_s7 = inlined_call_operand.vmem [shape: f32[2,16,1], index: 7, kind: input, shape index: {}]   ;;  %s1587_s8 = inlined_call_operand.vmem [shape: f32[2,16,1], index: 8, kind: input, shape index: {}]   ;;  %s1588_s9 = inlined_call_operand.vmem [shape: f32[16,80], index: 9, kind: input, shape index: {}]   ;;  %s1589_s10 = inlined_call_operand.vmem [shape: f32[16,1], index: 10, kind: input, shape index: {}, may-alias: {4,6,10,12}]   ;;  %s1590_s11 = inlined_call_operand.vmem [shape: f32[16,1], index: 11, kind: input, shape index: {}, may-alias: {5,11}]   ;;  %s1591_s12 = inlined_call_operand.vmem [shape: f32[16,1], index: 12, kind: input, shape index: {}, may-alias: {4,6,10,12}]   ;;  %s1592_s13 = inlined_call_operand.vmem [shape: f32[2,16,8], index: 13, kind: output, shape index: {}]  }
   0x1 LB: > { %s1150_s26 = sadd.s32 4294967295, %s1331_s25   ;;  %p1154_p0 = scmp.ge.s32.totalorder %s1331_s25, 1  ;;  %s1331_s25 = sphi %s1409_s25, %s23_s25  }
   0x2   : > { %p416_p1 = scmp.lt.s32.totalorder %s1331_s25, 3 }
   0x4   : > { %p417_p2 = pnand %p1154_p0, %p416_p1 }
   0x5   : > { %p474_p3 = scmp.lt.s32.totalorder (!%p417_p2), %s1150_s26, 1  ;;  %s1333_s18 = smov (!%p417_p2), 2  }
   0x6   : > { %420 = sbr.rel (%p417_p2) target bundleno = 1648 (0x670), region = 72  ;;  %s1334_s19 = smov (!%p417_p2), 124  }
   0x7   : > { %s1335_s20 = smov (!%p417_p2), 125   ;;  %s1336_s21 = smov (!%p417_p2), 126  }
   0xb   : > { %s1597_s26 = smov (!%p474_p3, %s1150_s26), 1  ;;  %vm531_vm0 = vcmask 15360   ;;  %vm534_vm1 = vcmask 80896   ;;  %v501_v12 = vld [vmem:[%s1581_s2] sm:$0xff]  ;;  %vm664_vm2 = vcmask 654336   ;;  %vm582_vm3 = vcmask 326656  }
   0xc   : > { %s1417_s27 = sshll.u32 %s1597_s26, 4  ;;  %s1157_s28 = sshll.u32 %s1597_s26, 3  ;;  %1251 = vmatprep.mubr.msk.f32.mxu1 %vm664_vm2, %v501_v12  ;;  %v503_v13 = vld [vmem:[%s1582_s3] sm:$0xff]  ;;  %v1338_v14 = vmov 0   ;;  %v506_v15 = vld [vmem:[%s1583_s4 + $0x8] sm:$0xff]  ;;  %vm758_vm4 = vcmask 64512  }
   0xd   : > { %s478_s14 = scalar_lea.vmem %s1579_s0, %s1417_s27  ;;  %s482_s17 = scalar_lea.vmem %s1580_s1, %s1157_s28  ;;  %1228 = vmatprep.mubr.msk.f32.mxu0 %vm582_vm3, %v503_v13  ;;  %1291 = vset.pattern.permute.xlu1 %v1338_v14  ;;  %v505_v16 = vld [vmem:[%s1583_s4] sm:$0xff]  ;;  %v502_v29 = vld [vmem:[%s1581_s2 + $0x8] sm:$0xff] }
   0xe   : > { %v1423_v0 = vld [vmem:[%s478_s14 + $0x8] sm:$0xff]  ;;  %v500_v1 = vld [vmem:[%s482_s17] sm:$0xff]  ;;  %s1593_s28 = smov 127   ;;  %1292 = vset.pattern.permute.xlu0 %v1338_v14  ;;  %s487_s22 = scalar_lea.vmem %s1586_s7, %s1417_s27 }
   0xf   : > { %527 = vrot.lane.b32.xlu0 %v1423_v0, %s1333_s18  ;;  %v1430_v2 = vld [vmem:[%s478_s14] sm:$0xff]  ;;  %564 = vrot.lane.b32.xlu1 %v500_v1, %s1333_s18  ;;  %v504_v30 = vld [vmem:[%s1582_s3 + $0x8] sm:$0xff]  ;;  %s492_s29 = scalar_lea.vmem %s1587_s8, %s1417_s27  ;;  %s497_s15 = scalar_lea.vmem %s1592_s13, %s1417_s27 }
  0x10   : > { %v508_v43 = vld [vmem:[%s1584_s5 + $0x8] sm:$0xff]  ;;  %v509_v55 = vld [vmem:[%s1585_s6] sm:$0xff] }
  0x11   : > { %v510_v54 = vld [vmem:[%s1585_s6 + $0x8] sm:$0xff]  ;;  %v507_v56 = vld [vmem:[%s1584_s5] sm:$0xff] }
  0x12   : > { %v511_v57 = vld [vmem:[%s487_s22] sm:$0xff]  ;;  %v512_v58 = vld [vmem:[%s487_s22 + $0x8] sm:$0xff] }
  0x13   : > { %525 = vrot.lane.b32.xlu0 %v1430_v2, %s1333_s18  ;;  %v513_v59 = vld [vmem:[%s492_s29] sm:$0xff]  ;;  %v514_v60 = vld [vmem:[%s492_s29 + $0x8] sm:$0xff] }
  0x81   : > { %v528_v3 = vpop.permute.xlu0 %527  ;;  %v565_v9 = vpop.permute.xlu1 %564 }
  0x82   : > { %v1436_v4 = vsel %vm531_vm0, 0.0, %v528_v3  ;;  %v1449_v10 = vsel %vm531_vm0, 0.0, %v565_v9 }
  0x83   : > { %v536_v5 = vsel %vm534_vm1, %v1436_v4, 0.0  ;;  %v568_v11 = vsel %vm534_vm1, %v1449_v10, 0.0 }
  0x84   : > { %559 = vrot.lane.b32.xlu1 %v536_v5, %s1334_s19 }
  0x85   : > { %v526_v6 = vpop.permute.xlu0 %525 }
  0x86   : > { %v1442_v7 = vsel %vm531_vm0, 0.0, %v526_v6 }
  0x87   : > { %v535_v8 = vsel %vm534_vm1, %v1442_v7, 0.0 }
  0x88   : > { %553 = vrot.lane.b32.xlu1 %v536_v5, %s1335_s20  ;;  %557 = vrot.lane.b32.xlu0 %v535_v8, %s1334_s19 }
  0x8c   : > { %547 = vrot.lane.b32.xlu1 %v536_v5, %s1336_s21  ;;  %551 = vrot.lane.b32.xlu0 %v535_v8, %s1335_s20 }
  0x90   : > { %579 = vrot.lane.b32.xlu1 %v568_v11, %s1334_s19  ;;  %545 = vrot.lane.b32.xlu0 %v535_v8, %s1336_s21 }
  0x94   : > { %576 = vrot.lane.b32.xlu1 %v568_v11, %s1335_s20  ;;  %541 = vrot.lane.b32.xlu0 %v536_v5, %s1593_s28 }
  0x98   : > { %573 = vrot.lane.b32.xlu1 %v568_v11, %s1336_s21  ;;  %539 = vrot.lane.b32.xlu0 %v535_v8, %s1593_s28 }
  0x9c   : > { %570 = vrot.lane.b32.xlu0 %v568_v11, %s1593_s28  ;;  %753 = vperm.xlu1 %1291, %v506_v15  }
  0xa0   : > { %748 = vperm.xlu0 %1292, %v505_v16  }
  0xf6   : > { %v560_v17 = vpop.permute.xlu1 %559 }
  0xf7   : > { %1231 = vmatprep.subr.mxu1 %v560_v17 }
  0xf8   : > { %1232 = vmatpush3.msra.mxu1 %v560_v17 }
  0xfa   : > { %v554_v18 = vpop.permute.xlu1 %553  ;;  %v558_v19 = vpop.permute.xlu0 %557 }
  0xfb   : > { %1233 = vmatprep.subr.mxu1 %v558_v19 }
  0xfc   : > { %1234 = vmatpush3.msra.mxu1 %v558_v19 }
  0xfd   : > { %1235 = vmatprep.subr.mxu1 %v554_v18 }
  0xfe   : > { %v548_v20 = vpop.permute.xlu1 %547  ;;  %1236 = vmatpush3.msra.mxu1 %v554_v18  ;;  %v552_v21 = vpop.permute.xlu0 %551 }
  0xff   : > { %1237 = vmatprep.subr.mxu1 %v552_v21 }
 0x100   : > { %1238 = vmatpush3.msra.mxu1 %v552_v21 }
 0x101   : > { %1239 = vmatprep.subr.mxu1 %v548_v20 }
 0x102   : > { %v580_v22 = vpop.permute.xlu1 %579  ;;  %1240 = vmatpush3.msra.mxu1 %v548_v20  ;;  %v546_v23 = vpop.permute.xlu0 %545 }
 0x103   : > { %1241 = vmatprep.subr.mxu1 %v546_v23  ;;  %1218 = vmatprep.subr.mxu0 %v580_v22 }
 0x104   : > { %1242 = vmatpush3.msra.mxu1 %v546_v23  ;;  %1219 = vmatpush3.msra.mxu0 %v580_v22 }
 0x106   : > { %v577_v24 = vpop.permute.xlu1 %576  ;;  %v542_v25 = vpop.permute.xlu0 %541 }
 0x107   : > { %1220 = vmatprep.subr.mxu0 %v577_v24  ;;  %1243 = vmatprep.subr.mxu1 %v542_v25 }
 0x108   : > { %1221 = vmatpush3.msra.mxu0 %v577_v24  ;;  %1244 = vmatpush3.msra.mxu1 %v542_v25 }
 0x10a   : > { %v574_v26 = vpop.permute.xlu1 %573  ;;  %v540_v27 = vpop.permute.xlu0 %539 }
 0x10b   : > { %1222 = vmatprep.subr.mxu0 %v574_v26  ;;  %1245 = vmatprep.subr.mxu1 %v540_v27 }
 0x10c   : > { %1223 = vmatpush3.msra.mxu0 %v574_v26  ;;  %1246 = vmatpush3.msra.mxu1 %v540_v27 }
 0x10d   : > { %1247 = vmatprep.subr.msk.mxu1 %vm534_vm1, %v1436_v4 }
 0x10e   : > { %1248 = vmatpush3.msk.msra.mxu1 %vm534_vm1, %v1436_v4  ;;  %v571_v28 = vpop.permute.xlu0 %570 }
 0x10f   : > { %1224 = vmatprep.subr.mxu0 %v571_v28  ;;  %1249 = vmatprep.subr.msk.mxu1 %vm534_vm1, %v1442_v7 }
 0x110   : > { %1225 = vmatpush3.msra.mxu0 %v571_v28  ;;  %1250 = vmatpush3.msk.msra.mxu1 %vm534_vm1, %v1442_v7 }
 0x111   : > { %1226 = vmatprep.subr.msk.mxu0 %vm534_vm1, %v1449_v10  ;;  %1252 = vmatmul.mubr.msk.f32.vlgmr.msra.gmra.mxu1 %vm664_vm2, %v502_v29 }
 0x112   : > { %1227 = vmatpush3.msk.msra.mxu0 %vm534_vm1, %v1449_v10 }
 0x113   : > { %1229 = vmatmul.mubr.msk.f32.vlgmr.msra.gmra.mxu0 %vm582_vm3, %v504_v30 }
 0x117   : > { %v754_v33 = vpop.permute.xlu1 %753 }
 0x11b   : > { %v749_v35 = vpop.permute.xlu0 %748 }
 0x1d1   : > { %v1253_v31 = vpop.f32.mrf.mxu1 }
 0x1d3   : > { %v1230_v32 = vpop.f32.mrf.mxu0  ;;  %v737_v36 = vpop.f32.mrf.mxu1 }
 0x1d4   : > { %v743_v34 = vadd.f32 %v1253_v31, %v1230_v32 }
 0x1d5   : > { %v655_v37 = vpop.f32.mrf.mxu0 }
 0x1d6   : > { %v757_v38 = vadd.f32 %v754_v33, %v743_v34  ;;  %v738_v39 = vadd.f32 %v737_v36, %v655_v37 }
 0x1d8   : > { %v756_v40 = vadd.f32 %v749_v35, %v738_v39  ;;  %v762_v41 = vsel %vm758_vm4, %v757_v38, 0.0 }
 0x1d9   : > { %763 = vadd.xlane.f32.xlu1 %v762_v41 }
 0x1da   : > { %v759_v42 = vsel %vm758_vm4, %v756_v40, 0.0 }
 0x1db   : > { %760 = vadd.xlane.f32.xlu0 %v759_v42 }
 0x1ea   : > { %793 = vperm.xlu1 %1291, %v508_v43  }
 0x262   : > { %v764_v44 = vpop.xlane.xlu1 %763 }
 0x263   : > { %v767_v45 = vmul.f32 0.125, %v764_v44 }
 0x264   : > { %v761_v46 = vpop.xlane.xlu0 %760 }
 0x265   : > { %v769_v47 = vsub.f32 %v757_v38, %v767_v45  ;;  %v766_v48 = vmul.f32 0.125, %v761_v46 }
 0x266   : > { %v794_v61 = vpop.permute.xlu1 %793 }
 0x267   : > { %v768_v49 = vsub.f32 %v756_v40, %v766_v48  ;;  %v771_v50 = vmul.f32 %v769_v47, %v769_v47 }
 0x269   : > { %v775_v51 = vsel %vm758_vm4, %v771_v50, 0.0  ;;  %v770_v52 = vmul.f32 %v768_v49, %v768_v49 }
 0x26a   : > { %776 = vadd.xlane.f32.xlu1 %v775_v51  ;;  %v515_v51 = vld [vmem:[%s1588_s9] sm:$0xff] }
 0x26b   : > { %v772_v53 = vsel %vm758_vm4, %v770_v52, 0.0  ;;  %1274 = vmatprep.mubr.msk.f32.mxu0 %vm664_vm2, %v515_v51  ;;  %v517_v52 = vld [vmem:[%s1589_s10] sm:$0xff] }
 0x26c   : > { %773 = vadd.xlane.f32.xlu0 %v772_v53  ;;  %v518_v53 = vld [vmem:[%s1589_s10 + $0x8] sm:$0xff] }
 0x27b   : > { %805 = vperm.xlu1 %1291, %v510_v54  }
 0x27f   : > { %800 = vperm.xlu1 %1291, %v509_v55  }
 0x282   : > { %788 = vperm.xlu0 %1292, %v507_v56  }
 0x283   : > { %826 = vperm.xlu1 %1291, %v511_v57  }
 0x286   : > { %831 = vperm.xlu0 %1292, %v512_v58  }
 0x287   : > { %838 = vperm.xlu1 %1291, %v513_v59  }
 0x28a   : > { %843 = vperm.xlu0 %1292, %v514_v60  }
 0x2f3   : > { %v777_v62 = vpop.xlane.xlu1 %776 }
 0x2f4   : > { %v779_v63 = vmul.f32 0.125, %v777_v62  ;;  %v516_v62 = vld [vmem:[%s1588_s9 + $0x8] sm:$0xff] }
 0x2f5   : > { %v774_v1 = vpop.xlane.xlu0 %773 }
 0x2f6   : > { %v781_v3 = vadd.f32 1e-05, %v779_v63  ;;  %v778_v4 = vmul.f32 0.125, %v774_v1 }
 0x2f7   : > { %v806_v7 = vpop.permute.xlu1 %805 }
 0x2f8   : > { %1293 = vrsqrt.f32 %v781_v3  ;;  %v780_v5 = vadd.f32 1e-05, %v778_v4 }
 0x2fa   : > { %1295 = vrsqrt.f32 %v780_v5 }
 0x2fb   : > { %v801_v15 = vpop.permute.xlu1 %800 }
 0x2fd   : > { %v789_v12 = vpop.permute.xlu0 %788 }
 0x2ff   : > { %v827_v25 = vpop.permute.xlu1 %826 }
 0x301   : > { %v832_v23 = vpop.permute.xlu0 %831 }
 0x303   : > { %v839_v33 = vpop.permute.xlu1 %838 }
 0x305   : > { %v1294_v6 = vpop.eup %1293  ;;  %v844_v30 = vpop.permute.xlu0 %843 }
 0x306   : > { %v785_v8 = vmul.f32 %v1294_v6, %v769_v47 }
 0x307   : > { %v1296_v9 = vpop.eup %1295 }
 0x308   : > { %v797_v10 = vmul.f32 %v794_v61, %v785_v8  ;;  %v784_v11 = vmul.f32 %v1296_v9, %v768_v49  ;;  %v519_v9 = vld [vmem:[%s1590_s11] sm:$0xff] }
 0x30a   : > { %v809_v13 = vadd.f32 %v806_v7, %v797_v10  ;;  %v796_v14 = vmul.f32 %v789_v12, %v784_v11  ;;  %v521_v10 = vld [vmem:[%s1591_s12] sm:$0xff]  ;;  %v522_v11 = vld [vmem:[%s1591_s12 + $0x8] sm:$0xff] }
 0x30c   : > { %v1172_v16 = vmul.f32 -1.442695, %v809_v13  ;;  %v808_v17 = vadd.f32 %v801_v15, %v796_v14 }
 0x30e   : > { %1297 = vpow2.f32 %v1172_v16  ;;  %v1171_v18 = vmul.f32 -1.442695, %v808_v17 }
 0x310   : > { %1299 = vpow2.f32 %v1171_v18 }
 0x31b   : > { %v1298_v19 = vpop.eup %1297 }
 0x31c   : > { %v817_v20 = vadd.f32 1.0, %v1298_v19 }
 0x31d   : > { %v1300_v21 = vpop.eup %1299 }
 0x31e   : > { %1301 = vrcp.f32 %v817_v20  ;;  %v816_v22 = vadd.f32 1.0, %v1300_v21 }
 0x320   : > { %1303 = vrcp.f32 %v816_v22  ;;  %v520_v22 = vld [vmem:[%s1590_s11 + $0x8] sm:$0xff] }
 0x32b   : > { %v1302_v24 = vpop.eup %1301 }
 0x32c   : > { %v823_v26 = vmul.f32 %v1302_v24, %v809_v13 }
 0x32d   : > { %v1304_v27 = vpop.eup %1303 }
 0x32e   : > { %v822_v28 = vmul.f32 %v1304_v27, %v808_v17  ;;  %v835_v29 = vmul.f32 %v832_v23, %v823_v26 }
 0x330   : > { %v834_v31 = vmul.f32 %v827_v25, %v822_v28  ;;  %v847_v32 = vadd.f32 %v844_v30, %v835_v29 }
 0x332   : > { %v846_v34 = vadd.f32 %v839_v33, %v834_v31  ;;  %v1174_v35 = vmul.f32 -1.442695, %v847_v32 }
 0x334   : > { %v1173_v36 = vmul.f32 -1.442695, %v846_v34  ;;  %1305 = vpow2.f32 %v1174_v35 }
 0x336   : > { %1307 = vpow2.f32 %v1173_v36 }
 0x341   : > { %v1306_v37 = vpop.eup %1305 }
 0x342   : > { %v855_v38 = vadd.f32 1.0, %v1306_v37 }
 0x343   : > { %v1308_v39 = vpop.eup %1307 }
 0x344   : > { %v854_v40 = vadd.f32 1.0, %v1308_v39  ;;  %1309 = vrcp.f32 %v855_v38 }
 0x346   : > { %1311 = vrcp.f32 %v854_v40 }
 0x351   : > { %v1310_v41 = vpop.eup %1309 }
 0x352   : > { %v861_v42 = vmul.f32 %v1310_v41, %v847_v32 }
 0x353   : > { %v1312_v43 = vpop.eup %1311 }
 0x354   : > { %v860_v44 = vmul.f32 %v1312_v43, %v846_v34  ;;  %866 = vrot.lane.b32.xlu0 %v861_v42, %s1333_s18 }
 0x356   : > { %864 = vrot.lane.b32.xlu1 %v860_v44, %s1333_s18  ;;  %s1595_s18 = smov 127  }
 0x3c6   : > { %v867_v45 = vpop.permute.xlu0 %866 }
 0x3c7   : > { %v871_v46 = vsel %vm531_vm0, 0.0, %v867_v45 }
 0x3c8   : > { %v873_v47 = vsel %vm534_vm1, %v871_v46, 0.0  ;;  %v865_v48 = vpop.permute.xlu1 %864 }
 0x3c9   : > { %v870_v49 = vsel %vm531_vm0, 0.0, %v865_v48  ;;  %896 = vrot.lane.b32.xlu0 %v873_v47, %s1334_s19 }
 0x3ca   : > { %v872_v50 = vsel %vm534_vm1, %v870_v49, 0.0 }
 0x3cb   : > { %894 = vrot.lane.b32.xlu1 %v872_v50, %s1334_s19 }
 0x3cd   : > { %890 = vrot.lane.b32.xlu0 %v873_v47, %s1335_s20 }
 0x3cf   : > { %888 = vrot.lane.b32.xlu1 %v872_v50, %s1335_s20 }
 0x3d1   : > { %884 = vrot.lane.b32.xlu0 %v873_v47, %s1336_s21 }
 0x3d3   : > { %882 = vrot.lane.b32.xlu1 %v872_v50, %s1336_s21 }
 0x3d5   : > { %878 = vrot.lane.b32.xlu0 %v873_v47, %s1595_s18 }
 0x3d7   : > { %876 = vrot.lane.b32.xlu1 %v872_v50, %s1595_s18 }
 0x3d9   : > { %902 = vperm.xlu0 %1292, %v517_v52  }
 0x3db   : > { %907 = vperm.xlu1 %1291, %v518_v53  }
 0x43b   : > { %v897_v54 = vpop.permute.xlu0 %896 }
 0x43c   : > { %1254 = vmatprep.subr.mxu0 %v897_v54 }
 0x43d   : > { %v895_v55 = vpop.permute.xlu1 %894  ;;  %1255 = vmatpush3.msra.mxu0 %v897_v54 }
 0x43e   : > { %1256 = vmatprep.subr.mxu0 %v895_v55 }
 0x43f   : > { %1257 = vmatpush3.msra.mxu0 %v895_v55  ;;  %v891_v56 = vpop.permute.xlu0 %890 }
 0x440   : > { %1258 = vmatprep.subr.mxu0 %v891_v56 }
 0x441   : > { %v889_v57 = vpop.permute.xlu1 %888  ;;  %1259 = vmatpush3.msra.mxu0 %v891_v56 }
 0x442   : > { %1260 = vmatprep.subr.mxu0 %v889_v57 }
 0x443   : > { %1261 = vmatpush3.msra.mxu0 %v889_v57  ;;  %v885_v58 = vpop.permute.xlu0 %884 }
 0x444   : > { %1262 = vmatprep.subr.mxu0 %v885_v58 }
 0x445   : > { %v883_v59 = vpop.permute.xlu1 %882  ;;  %1263 = vmatpush3.msra.mxu0 %v885_v58 }
 0x446   : > { %1264 = vmatprep.subr.mxu0 %v883_v59 }
 0x447   : > { %1265 = vmatpush3.msra.mxu0 %v883_v59  ;;  %v879_v60 = vpop.permute.xlu0 %878 }
 0x448   : > { %1266 = vmatprep.subr.mxu0 %v879_v60 }
 0x449   : > { %v877_v61 = vpop.permute.xlu1 %876  ;;  %1267 = vmatpush3.msra.mxu0 %v879_v60 }
 0x44a   : > { %1268 = vmatprep.subr.mxu0 %v877_v61 }
 0x44b   : > { %1269 = vmatpush3.msra.mxu0 %v877_v61 }
 0x44c   : > { %1270 = vmatprep.subr.msk.mxu0 %vm534_vm1, %v871_v46 }
 0x44d   : > { %1271 = vmatpush3.msk.msra.mxu0 %vm534_vm1, %v871_v46 }
 0x44e   : > { %1272 = vmatprep.subr.msk.mxu0 %vm534_vm1, %v870_v49 }
 0x44f   : > { %1273 = vmatpush3.msk.msra.mxu0 %vm534_vm1, %v870_v49 }
 0x450   : > { %1275 = vmatmul.mubr.msk.f32.vlgmr.msra.gmra.mxu0 %vm664_vm2, %v516_v62 }
 0x454   : > { %v903_v4 = vpop.permute.xlu0 %902 }
 0x456   : > { %v908_v63 = vpop.permute.xlu1 %907 }
 0x510   : > { %v1276_v1 = vpop.f32.mrf.mxu0 }
 0x511   : > { %v988_v3 = vadd.f32 %v1276_v1, %v908_v63 }
 0x512   : > { %v982_v5 = vpop.f32.mrf.mxu0 }
 0x513   : > { %v983_v6 = vadd.f32 %v982_v5, %v903_v4  ;;  %v994_v7 = vsel %vm758_vm4, %v988_v3, 0.0 }
 0x514   : > { %995 = vadd.xlane.f32.xlu1 %v994_v7 }
 0x515   : > { %v991_v8 = vsel %vm758_vm4, %v983_v6, 0.0 }
 0x516   : > { %992 = vadd.xlane.f32.xlu0 %v991_v8 }
 0x525   : > { %1019 = vperm.xlu1 %1291, %v519_v9  }
 0x529   : > { %1031 = vperm.xlu1 %1291, %v521_v10  }
 0x52d   : > { %1036 = vperm.xlu1 %1291, %v522_v11  }
 0x59d   : > { %v996_v12 = vpop.xlane.xlu1 %995 }
 0x59e   : > { %v998_v13 = vmul.f32 0.125, %v996_v12 }
 0x59f   : > { %v993_v14 = vpop.xlane.xlu0 %992 }
 0x5a0   : > { %v1000_v15 = vsub.f32 %v988_v3, %v998_v13  ;;  %v997_v16 = vmul.f32 0.125, %v993_v14 }
 0x5a1   : > { %v1020_v29 = vpop.permute.xlu1 %1019 }
 0x5a2   : > { %v999_v17 = vsub.f32 %v983_v6, %v997_v16  ;;  %v1002_v18 = vmul.f32 %v1000_v15, %v1000_v15 }
 0x5a4   : > { %v1006_v19 = vsel %vm758_vm4, %v1002_v18, 0.0  ;;  %v1001_v20 = vmul.f32 %v999_v17, %v999_v17 }
 0x5a5   : > { %1007 = vadd.xlane.f32.xlu0 %v1006_v19  ;;  %v1032_v30 = vpop.permute.xlu1 %1031 }
 0x5a6   : > { %v1003_v21 = vsel %vm758_vm4, %v1001_v20, 0.0 }
 0x5a9   : > { %1004 = vadd.xlane.f32.xlu0 %v1003_v21  ;;  %v1037_v36 = vpop.permute.xlu1 %1036 }
 0x5bf   : > { %1024 = vperm.xlu0 %1292, %v520_v22  }
 0x62e   : > { %v1008_v23 = vpop.xlane.xlu0 %1007 }
 0x62f   : > { %v1010_v24 = vmul.f32 0.125, %v1008_v23 }
 0x631   : > { %v1012_v25 = vadd.f32 1e-05, %v1010_v24 }
 0x632   : > { %v1005_v26 = vpop.xlane.xlu0 %1004 }
 0x633   : > { %1313 = vrsqrt.f32 %v1012_v25  ;;  %v1009_v27 = vmul.f32 0.125, %v1005_v26 }
 0x635   : > { %v1011_v28 = vadd.f32 1e-05, %v1009_v27 }
 0x637   : > { %1315 = vrsqrt.f32 %v1011_v28 }
 0x63a   : > { %v1025_v33 = vpop.permute.xlu0 %1024 }
 0x640   : > { %v1314_v31 = vpop.eup %1313 }
 0x641   : > { %v1016_v32 = vmul.f32 %v1314_v31, %v1000_v15 }
 0x643   : > { %v1028_v34 = vmul.f32 %v1025_v33, %v1016_v32 }
 0x644   : > { %v1316_v35 = vpop.eup %1315 }
 0x645   : > { %v1015_v37 = vmul.f32 %v1316_v35, %v999_v17  ;;  %v1040_v38 = vadd.f32 %v1037_v36, %v1028_v34 }
 0x647   : > { %v1027_v39 = vmul.f32 %v1020_v29, %v1015_v37  ;;  %v1180_v40 = vmul.f32 -1.442695, %v1040_v38 }
 0x649   : > { %v1039_v41 = vadd.f32 %v1032_v30, %v1027_v39  ;;  %1317 = vpow2.f32 %v1180_v40 }
 0x64b   : > { %v1179_v42 = vmul.f32 -1.442695, %v1039_v41 }
 0x64d   : > { %1319 = vpow2.f32 %v1179_v42 }
 0x656   : > { %v1318_v43 = vpop.eup %1317 }
 0x657   : > { %v1048_v44 = vadd.f32 1.0, %v1318_v43 }
 0x659   : > { %1321 = vrcp.f32 %v1048_v44 }
 0x65a   : > { %v1320_v45 = vpop.eup %1319 }
 0x65b   : > { %v1047_v46 = vadd.f32 1.0, %v1320_v45 }
 0x65d   : > { %1323 = vrcp.f32 %v1047_v46 }
 0x666   : > { %v1322_v47 = vpop.eup %1321 }
 0x667   : > { %v1054_v48 = vmul.f32 %v1322_v47, %v1040_v38 }
 0x669   : > { %v1056_v49 = vadd.f32 %v1054_v48, %v1423_v0 }
 0x66a   : > { %v1324_v50 = vpop.eup %1323 }
 0x66b   : > { %v1053_v51 = vmul.f32 %v1324_v50, %v1039_v41  ;;  %1058 = vst.msk [vmem:[%s497_s15 + $0x8] sm:$0xff] %vm758_vm4, %v1056_v49 }
 0x66d   : > { %v1055_v52 = vadd.f32 %v1053_v51, %v1430_v2 }
 0x66f   : > { %1057 = vst.msk [vmem:[%s497_s15] sm:$0xff] %vm758_vm4, %v1055_v52 }
 0x670 PF: > { %s23_s25 = sadd.s32 1, %s1331_s25  }
 0x671   : > { %p20_p4 = scmp.ge.s32.totalorder %s23_s25, 4  }
 0x673   :  { %22 = sbr.rel (!%p20_p4) target bundleno = 1 (0x1), region = 111 }

// kernel: unet1d_forward.14
= control target key start
LH: loop header
LB: loop body
LE: loop exit
PB: predicated region body
PF: predicated region fallthrough
CT: control target
= control target key end

     0   :  { %s2022_s0 = inlined_call_operand.vmem [shape: f32[2,16,8], index: 0, kind: input, shape index: {}]   ;;  %s2023_s1 = inlined_call_operand.vmem [shape: f32[2,8,16], index: 1, kind: input, shape index: {}]   ;;  %s2024_s2 = inlined_call_operand.vmem [shape: f32[2,8,16], index: 2, kind: input, shape index: {}]   ;;  %s2025_s3 = inlined_call_operand.vmem [shape: f32[8,48], index: 3, kind: input, shape index: {}]   ;;  %s2026_s4 = inlined_call_operand.vmem [shape: f32[8,1], index: 4, kind: input, shape index: {}, may-alias: {4,8,10,14,16,18}]   ;;  %s2027_s5 = inlined_call_operand.vmem [shape: f32[8,40], index: 5, kind: input, shape index: {}]   ;;  %s2028_s6 = inlined_call_operand.vmem [shape: f32[8,40], index: 6, kind: input, shape index: {}]   ;;  %s2029_s7 = inlined_call_operand.vmem [shape: f32[8,40], index: 7, kind: input, shape index: {}]   ;;  %s2030_s8 = inlined_call_operand.vmem [shape: f32[8,1], index: 8, kind: input, shape index: {}, may-alias: {4,8,10,14,16,18}]   ;;  %s2031_s9 = inlined_call_operand.vmem [shape: f32[8,1], index: 9, kind: input, shape index: {}, may-alias: {9,15}]   ;;  %s2032_s10 = inlined_call_operand.vmem [shape: f32[8,1], index: 10, kind: input, shape index: {}, may-alias: {4,8,10,14,16,18}]   ;;  %s2033_s11 = inlined_call_operand.vmem [shape: f32[2,8,1], index: 11, kind: input, shape index: {}]   ;;  %s2034_s12 = inlined_call_operand.vmem [shape: f32[2,8,1], index: 12, kind: input, shape index: {}]   ;;  %s2035_s13 = inlined_call_operand.vmem [shape: f32[8,40], index: 13, kind: input, shape index: {}]   ;;  %s2036_s14 = inlined_call_operand.vmem [shape: f32[8,1], index: 14, kind: input, shape index: {}, may-alias: {4,8,10,14,16,18}]   ;;  %s2037_s15 = inlined_call_operand.vmem [shape: f32[8,1], index: 15, kind: input, shape index: {}, may-alias: {9,15}]   ;;  %s2038_s16 = inlined_call_operand.vmem [shape: f32[8,1], index: 16, kind: input, shape index: {}, may-alias: {4,8,10,14,16,18}]   ;;  %s2039_s17 = inlined_call_operand.vmem [shape: f32[8,8], index: 17, kind: input, shape index: {}]   ;;  %s2040_s18 = inlined_call_operand.vmem [shape: f32[8,1], index: 18, kind: input, shape index: {}, may-alias: {4,8,10,14,16,18}]   ;;  %s2041_s19 = inlined_call_operand.vmem [shape: f32[2,8,16], index: 19, kind: output, shape index: {}]  }
   0x1   :  { %2042 = sst [smem:[#allocation2_spill]] %s2022_s0  ;;  %s1840_s0 = smov 0  }
   0x2   :  { %2043 = sst [smem:[#allocation3_spill]] %s2023_s1 }
   0x3   :  { %2044 = sst [smem:[#allocation4_spill]] %s2024_s2 }
   0x4   :  { %2045 = sst [smem:[#allocation5_spill]] %s2025_s3 }
   0x5 LB: > { %s1539_s30 = sadd.s32 4294967295, %s1728_s0   ;;  %p1543_p0 = scmp.ge.s32.totalorder %s1728_s0, 1  ;;  %s1728_s0 = sphi %s1840_s0, %s29_s0  }
   0x6   : > { %p573_p1 = scmp.lt.s32.totalorder %s1728_s0, 3 }
   0x8   : > { %p574_p2 = pnand %p1543_p0, %p573_p1 }
   0x9   : > { %p644_p3 = scmp.lt.s32.totalorder (!%p574_p2), %s1539_s30, 1  ;;  %s2046_s22 = sld [smem:[#allocation2_spill]] (!%p574_p2) }
   0xa   : > { %577 = sbr.rel (%p574_p2) target bundleno = 2265 (0x8d9), region = 96  ;;  %s1732_s23 = smov (!%p574_p2), 1  }
   0xb   : > { %s1734_s24 = smov (!%p574_p2), 126   ;;  %s1735_s25 = smov (!%p574_p2), 127  }
   0xc   : > { %s2049_s28 = sld [smem:[#allocation5_spill]] (!%p574_p2)  ;;  %s1738_s29 = smov (!%p574_p2), 125  }
   0xf   : > { %v671_v0 = vlaneseq  ;;  %s2051_s30 = smov (!%p644_p3, %s1539_s30), 1  ;;  %vm683_vm0 = vcmask 64512   ;;  %v1730_v8 = vmov 1.0   ;;  %v1731_v9 = vmov 0.0   ;;  %v766_v17 = vld [vmem:[%s2026_s4] sm:$0xff] }
  0x10   : > { %s1572_s20 = sshll.u32 %s2051_s30, 4  ;;  %1614 = vmatprep.subr.mxu1 %v1731_v9  ;;  %vm775_vm4 = vcmask 7168   ;;  %vm778_vm5 = vcmask 138240   ;;  %vm1733_vm6 = vmmov 0   ;;  %s1867_s3 = sshll.u32 %s2051_s30, 3  ;;  %v1736_v16 = vmov 0  }
  0x11   : > { %v672_v1 = vshrl.u32 %v671_v0, 7  ;;  %v674_v2 = vand.u32 127, %v671_v0  ;;  %s648_s2 = scalar_lea.vmem %s2046_s22, %s1572_s20  ;;  %1626 = vmatprep.mubr.msk.f32.mxu1 %vm1733_vm6, %v1731_v9  ;;  %1704 = vset.pattern.permute.xlu0 %v1736_v16  ;;  %s2047_s20 = sld [smem:[#allocation4_spill]]  ;;  %vm800_vm7 = vcmask 392192   ;;  %vm972_vm8 = vcmask 15360   ;;  %v876_v33 = vld [vmem:[%s2039_s17] sm:$0xff] }
  0x12   : > { %v669_v6 = vld [vmem:[%s648_s2] sm:$0xff]  ;;  %v670_v7 = vld [vmem:[%s648_s2 + $0x8] sm:$0xff]  ;;  %1705 = vset.pattern.permute.xlu1 %v1736_v16  ;;  %s2048_s22 = sld [smem:[#allocation3_spill]]  ;;  %vm974_vm9 = vcmask 146432   ;;  %s1739_s30 = smov 124   ;;  %vm1008_vm10 = vcmask 326656  }
  0x13   : > { %v675_v3 = vmul.u32 2, %v672_v1  ;;  %v677_v4 = vadd.s32 1, %v672_v1  ;;  %1611 = vmatprep.mubr.msk.f32.mxu0 %vm683_vm0, %v669_v6  ;;  %v765_v26 = vld [vmem:[%s2049_s28] sm:$0xff]  ;;  %vm1254_vm11 = vcmask 130048   ;;  %s660_s27 = scalar_lea.vmem %s2033_s11, %s1867_s3 }
  0x14   : > { %v957_v45 = vld [vmem:[%s2028_s6] sm:$0xff] }
  0x15   : > { %vm676_vm1 = vcmp.ge.s32.totalorder %v674_v2, %v675_v3  ;;  %v678_v5 = vmul.u32 2, %v677_v4  ;;  %v959_v46 = vld [vmem:[%s2030_s8] sm:$0xff] }
  0x16   : > { %v956_v56 = vld [vmem:[%s2027_s5] sm:$0xff] }
  0x17   : > { %vm679_vm2 = vcmp.lt.s32.totalorder %v674_v2, %v678_v5  ;;  %s656_s21 = scalar_lea.vmem %s2047_s20, %s1867_s3  ;;  %v958_v58 = vld [vmem:[%s2029_s7] sm:$0xff] }
  0x18   : > { %vm680_vm3 = vmand %vm676_vm1, %vm679_vm2  ;;  %v875_v20 = vld [vmem:[%s656_s21] sm:$0xff]  ;;  %s652_s2 = scalar_lea.vmem %s2048_s22, %s1867_s3  ;;  %s664_s22 = scalar_lea.vmem %s2034_s12, %s1867_s3 }
  0x19   : > { %1609 = vmatprep.subr.msk.mxu0 %vm680_vm3, %v1730_v8  ;;  %v874_v21 = vld [vmem:[%s652_s2] sm:$0xff] }
  0x1a   : > { %1610 = vmatpush3.msk.msra.mxu0 %vm680_vm3, %v1730_v8  ;;  %v960_v6 = vld [vmem:[%s2031_s9] sm:$0xff] }
  0x1b   : > { %1612 = vmatmul.mubr.msk.f32.vlgmr.msra.gmra.mxu0 %vm683_vm0, %v670_v7  ;;  %1629 = vmatprep.subr.mxu0 %v1731_v9  ;;  %v962_v7 = vld [vmem:[%s660_s27] sm:$0xff] }
  0x1c   : > { %1631 = vmatprep.mubr.msk.f32.mxu0 %vm1733_vm6, %v1731_v9 }
  0xdb   : > { %v1613_v10 = vpop.f32.mrf.mxu0 }
  0xdc   : > { %771 = vrot.lane.b32.xlu0 %v1613_v10, %s1732_s23 }
  0xdd   : > { %v756_v11 = vpop.f32.mrf.mxu0 }
  0xe0   : > { %769 = vrot.lane.b32.xlu0 %v756_v11, %s1732_s23  ;;  %s1737_s23 = smov 2  }
 0x14e   : > { %v772_v12 = vpop.permute.xlu0 %771 }
 0x14f   : > { %v777_v13 = vsel %vm775_vm4, 0.0, %v772_v12 }
 0x150   : > { %v780_v14 = vsel %vm778_vm5, %v777_v13, 0.0 }
 0x151   : > { %791 = vrot.lane.b32.xlu1 %v780_v14, %s1734_s24  ;;  %785 = vrot.lane.b32.xlu0 %v780_v14, %s1735_s25  ;;  %v961_v14 = vld [vmem:[%s2032_s10] sm:$0xff] }
 0x152   : > { %v770_v15 = vpop.permute.xlu0 %769 }
 0x153   : > { %v776_v18 = vsel %vm775_vm4, 0.0, %v770_v15  ;;  %v963_v15 = vld [vmem:[%s664_s22] sm:$0xff]  ;;  %s668_s22 = scalar_lea.vmem %s2041_s19, %s1867_s3 }
 0x154   : > { %v779_v19 = vsel %vm778_vm5, %v776_v18, 0.0 }
 0x155   : > { %789 = vrot.lane.b32.xlu1 %v779_v19, %s1734_s24  ;;  %797 = vperm.xlu0 %1704, %v766_v17  }
 0x159   : > { %783 = vrot.lane.b32.xlu1 %v779_v19, %s1735_s25  ;;  %1156 = vrot.lane.b32.xlu0 %v875_v20, %s1737_s23 }
 0x15d   : > { %990 = vrot.lane.b32.xlu1 %v874_v21, %s1737_s23 }
 0x1c3   : > { %v792_v22 = vpop.permute.xlu1 %791  ;;  %v786_v24 = vpop.permute.xlu0 %785 }
 0x1c4   : > { %1615 = vmatpush3.msra.mxu1 %v792_v22 }
 0x1c5   : > { %1616 = vmatprep.subr.mxu1 %v1731_v9 }
 0x1c7   : > { %v790_v23 = vpop.permute.xlu1 %789 }
 0x1c8   : > { %1617 = vmatpush3.msra.mxu1 %v790_v23 }
 0x1c9   : > { %1618 = vmatprep.subr.mxu1 %v1731_v9 }
 0x1ca   : > { %1619 = vmatpush3.msra.mxu1 %v786_v24 }
 0x1cb   : > { %v784_v25 = vpop.permute.xlu1 %783  ;;  %1620 = vmatprep.subr.mxu1 %v1731_v9 }
 0x1cc   : > { %1621 = vmatpush3.msra.mxu1 %v784_v25 }
 0x1cd   : > { %1622 = vmatprep.subr.mxu1 %v1731_v9 }
 0x1ce   : > { %1623 = vmatpush3.msk.msra.mxu1 %vm778_vm5, %v777_v13 }
 0x1cf   : > { %1624 = vmatprep.subr.mxu1 %v1731_v9  ;;  %v991_v27 = vpop.permute.xlu1 %990 }
 0x1d0   : > { %1625 = vmatpush3.msk.msra.mxu1 %vm778_vm5, %v776_v18  ;;  %v993_v28 = vsel %vm972_vm8, 0.0, %v991_v27  ;;  %v798_v30 = vpop.permute.xlu0 %797 }
 0x1d1   : > { %1627 = vmatmul.mubr.msk.f32.vlgmr.msra.gmra.mxu1 %vm800_vm7, %v765_v26  ;;  %1647 = vmatprep.subr.mxu1 %v1731_v9  ;;  %v994_v29 = vsel %vm974_vm9, %v993_v28, 0.0 }
 0x1d2   : > { %1657 = vmatprep.mubr.msk.f32.mxu1 %vm1733_vm6, %v1731_v9  ;;  %1002 = vrot.lane.b32.xlu0 %v994_v29, %s1738_s29 }
 0x1d4   : > { %v1157_v35 = vpop.permute.xlu0 %1156 }
 0x1d5   : > { %v1913_v36 = vsel %vm972_vm8, 0.0, %v1157_v35 }
 0x1d6   : > { %996 = vrot.lane.b32.xlu0 %v994_v29, %s1735_s25  ;;  %v1160_v37 = vsel %vm974_vm9, %v1913_v36, 0.0 }
 0x244   : > { %v1003_v41 = vpop.permute.xlu0 %1002 }
 0x248   : > { %v997_v44 = vpop.permute.xlu0 %996 }
 0x291   : > { %v870_v31 = vpop.f32.mrf.mxu1 }
 0x292   : > { %v871_v32 = vadd.f32 %v870_v31, %v798_v30 }
 0x293   : > { %v1628_v34 = vpop.f32.mrf.mxu1 }
 0x294   : > { %969 = vrot.lane.b32.xlu1 %v871_v32, %s1737_s23  ;;  %1630 = vmatpush3.msra.mxu0 %v871_v32 }
 0x295   : > { %1634 = vmatprep.subr.mxu0 %v1731_v9  ;;  %1632 = vmatmul.mubr.msk.f32.vlgmr.msra.gmra.mxu0 %vm683_vm0, %v876_v33 }
 0x296   : > { %1644 = vmatprep.mubr.msk.f32.mxu0 %vm1733_vm6, %v1731_v9 }
 0x298   : > { %1005 = vrot.lane.b32.xlu1 %v994_v29, %s1739_s30 }
 0x29c   : > { %999 = vrot.lane.b32.xlu1 %v994_v29, %s1734_s24 }
 0x2a0   : > { %1171 = vrot.lane.b32.xlu1 %v1160_v37, %s1739_s30 }
 0x306   : > { %v970_v38 = vpop.permute.xlu1 %969 }
 0x307   : > { %v973_v39 = vsel %vm972_vm8, 0.0, %v970_v38 }
 0x308   : > { %v975_v40 = vsel %vm974_vm9, %v973_v39, 0.0 }
 0x309   : > { %983 = vrot.lane.b32.xlu0 %v975_v40, %s1738_s29  ;;  %986 = vrot.lane.b32.xlu1 %v975_v40, %s1739_s30 }
 0x30a   : > { %v1006_v42 = vpop.permute.xlu1 %1005 }
 0x30b   : > { %1635 = vmatpush3.msra.mxu0 %v1006_v42  ;;  %v965_v42 = vld [vmem:[%s2036_s14] sm:$0xff] }
 0x30c   : > { %1636 = vmatprep.subr.mxu0 %v1731_v9 }
 0x30d   : > { %980 = vrot.lane.b32.xlu0 %v975_v40, %s1734_s24  ;;  %1168 = vrot.lane.b32.xlu1 %v1160_v37, %s1738_s29 }
 0x30e   : > { %1637 = vmatpush3.msra.mxu0 %v1003_v41  ;;  %v1000_v43 = vpop.permute.xlu1 %999 }
 0x30f   : > { %1638 = vmatprep.subr.mxu0 %v1731_v9 }
 0x310   : > { %1639 = vmatpush3.msra.mxu0 %v1000_v43 }
 0x311   : > { %1640 = vmatprep.subr.mxu0 %v1731_v9  ;;  %977 = vrot.lane.b32.xlu0 %v975_v40, %s1735_s25 }
 0x312   : > { %1165 = vrot.lane.b32.xlu1 %v1160_v37, %s1734_s24  ;;  %1641 = vmatpush3.msra.mxu0 %v997_v44  ;;  %v1172_v47 = vpop.permute.xlu1 %1171 }
 0x313   : > { %1642 = vmatprep.subr.mxu0 %v1731_v9 }
 0x314   : > { %1643 = vmatpush3.msk.msra.mxu0 %vm974_vm9, %v993_v28 }
 0x315   : > { %1162 = vrot.lane.b32.xlu0 %v1160_v37, %s1735_s25  ;;  %1660 = vmatprep.subr.mxu0 %v1731_v9 }
 0x316   : > { %1645 = vmatmul.mubr.msk.f32.vlgmr.msra.gmra.mxu0 %vm1008_vm10, %v957_v45  ;;  %1250 = vperm.xlu1 %1705, %v959_v46  }
 0x317   : > { %1661 = vmatpush3.msra.mxu0 %v1172_v47  ;;  %1670 = vmatprep.mubr.msk.f32.mxu0 %vm1733_vm6, %v1731_v9  ;;  %v964_v47 = vld [vmem:[%s2035_s13] sm:$0xff] }
 0x318   : > { %1662 = vmatprep.subr.mxu0 %v1731_v9 }
 0x355   : > { %v1944_v48 = vpop.f32.mrf.mxu0 }
 0x357   : > { %v1633_v49 = vpop.f32.mrf.mxu0 }
 0x37b   : > { %v987_v50 = vpop.permute.xlu1 %986  ;;  %v984_v51 = vpop.permute.xlu0 %983 }
 0x37c   : > { %1648 = vmatpush3.msra.mxu1 %v987_v50 }
 0x37d   : > { %1649 = vmatprep.subr.mxu1 %v1731_v9 }
 0x37e   : > { %1650 = vmatpush3.msra.mxu1 %v984_v51 }
 0x37f   : > { %v1169_v52 = vpop.permute.xlu1 %1168  ;;  %1651 = vmatprep.subr.mxu1 %v1731_v9  ;;  %v981_v53 = vpop.permute.xlu0 %980 }
 0x380   : > { %1652 = vmatpush3.msra.mxu1 %v981_v53  ;;  %1663 = vmatpush3.msra.mxu0 %v1169_v52 }
 0x381   : > { %1653 = vmatprep.subr.mxu1 %v1731_v9  ;;  %1664 = vmatprep.subr.mxu0 %v1731_v9 }
 0x383   : > { %v978_v54 = vpop.permute.xlu0 %977 }
 0x384   : > { %v1166_v55 = vpop.permute.xlu1 %1165  ;;  %1654 = vmatpush3.msra.mxu1 %v978_v54  ;;  %v966_v54 = vld [vmem:[%s2037_s15] sm:$0xff] }
 0x385   : > { %1665 = vmatpush3.msra.mxu0 %v1166_v55  ;;  %1655 = vmatprep.subr.mxu1 %v1731_v9 }
 0x386   : > { %1656 = vmatpush3.msk.msra.mxu1 %vm974_vm9, %v973_v39  ;;  %1666 = vmatprep.subr.mxu0 %v1731_v9 }
 0x387   : > { %1658 = vmatmul.mubr.msk.f32.vlgmr.msra.gmra.mxu1 %vm1008_vm10, %v956_v56  ;;  %v1163_v57 = vpop.permute.xlu0 %1162  ;;  %1673 = vmatprep.subr.mxu1 %v1731_v9 }
 0x388   : > { %1667 = vmatpush3.msra.mxu0 %v1163_v57  ;;  %1683 = vmatprep.mubr.msk.f32.mxu1 %vm1733_vm6, %v1731_v9 }
 0x389   : > { %1668 = vmatprep.subr.mxu0 %v1731_v9 }
 0x38a   : > { %1669 = vmatpush3.msk.msra.mxu0 %vm974_vm9, %v1913_v36 }
 0x38b   : > { %1671 = vmatmul.mubr.msk.f32.vlgmr.msra.gmra.mxu0 %vm1008_vm10, %v958_v58 }
 0x391   : > { %v1251_v1 = vpop.permute.xlu1 %1250 }
 0x3d6   : > { %v1078_v59 = vpop.f32.mrf.mxu0 }
 0x3d8   : > { %v1646_v60 = vpop.f32.mrf.mxu0 }
 0x3d9   : > { %v967_v60 = vld [vmem:[%s2038_s16] sm:$0xff] }
 0x447   : > { %v1151_v61 = vpop.f32.mrf.mxu1 }
 0x448   : > { %v1152_v63 = vadd.f32 %v1151_v61, %v1078_v59 }
 0x449   : > { %v1659_v62 = vpop.f32.mrf.mxu1 }
 0x44b   : > { %v1243_v0 = vpop.f32.mrf.mxu0 }
 0x44c   : > { %v1247_v2 = vadd.f32 %v1243_v0, %v1152_v63 }
 0x44d   : > { %v1672_v3 = vpop.f32.mrf.mxu0 }
 0x44e   : > { %v1253_v4 = vadd.f32 %v1251_v1, %v1247_v2 }
 0x450   : > { %v1255_v5 = vsel %vm1254_vm11, %v1253_v4, 0.0 }
 0x451   : > { %1256 = vadd.xlane.f32.xlu0 %v1255_v5 }
 0x467   : > { %1271 = vperm.xlu0 %1704, %v960_v6  }
 0x46b   : > { %1290 = vperm.xlu0 %1704, %v962_v7  }
 0x4da   : > { %v1257_v8 = vpop.xlane.xlu0 %1256 }
 0x4db   : > { %v1259_v10 = vmul.f32 0.0625, %v1257_v8 }
 0x4dd   : > { %v1260_v11 = vsub.f32 %v1253_v4, %v1259_v10 }
 0x4df   : > { %v1261_v12 = vmul.f32 %v1260_v11, %v1260_v11 }
 0x4e1   : > { %v1262_v13 = vsel %vm1254_vm11, %v1261_v12, 0.0 }
 0x4e2   : > { %1263 = vadd.xlane.f32.xlu1 %v1262_v13  ;;  %v1272_v21 = vpop.permute.xlu0 %1271 }
 0x4e6   : > { %v1291_v30 = vpop.permute.xlu0 %1290 }
 0x4f3   : > { %1277 = vperm.xlu1 %1705, %v961_v14  }
 0x4f7   : > { %1296 = vperm.xlu1 %1705, %v963_v15  }
 0x56b   : > { %v1264_v16 = vpop.xlane.xlu1 %1263 }
 0x56c   : > { %v1265_v17 = vmul.f32 0.0625, %v1264_v16 }
 0x56e   : > { %v1266_v18 = vadd.f32 1e-05, %v1265_v17 }
 0x56f   : > { %v1278_v23 = vpop.permute.xlu1 %1277 }
 0x570   : > { %1706 = vrsqrt.f32 %v1266_v18 }
 0x573   : > { %v1297_v32 = vpop.permute.xlu1 %1296 }
 0x57d   : > { %v1707_v19 = vpop.eup %1706 }
 0x57e   : > { %v1268_v20 = vmul.f32 %v1707_v19, %v1260_v11 }
 0x580   : > { %v1274_v22 = vmul.f32 %v1272_v21, %v1268_v20 }
 0x582   : > { %v1280_v24 = vadd.f32 %v1278_v23, %v1274_v22 }
 0x584   : > { %v1565_v25 = vmul.f32 -1.442695, %v1280_v24 }
 0x586   : > { %1708 = vpow2.f32 %v1565_v25 }
 0x593   : > { %v1709_v26 = vpop.eup %1708 }
 0x594   : > { %v1284_v27 = vadd.f32 1.0, %v1709_v26 }
 0x596   : > { %1710 = vrcp.f32 %v1284_v27 }
 0x5a3   : > { %v1711_v28 = vpop.eup %1710 }
 0x5a4   : > { %v1287_v29 = vmul.f32 %v1711_v28, %v1280_v24 }
 0x5a6   : > { %v1293_v31 = vmul.f32 %v1291_v30, %v1287_v29 }
 0x5a8   : > { %v1299_v33 = vadd.f32 %v1297_v32, %v1293_v31 }
 0x5aa   : > { %v1566_v34 = vmul.f32 -1.442695, %v1299_v33 }
 0x5ac   : > { %1712 = vpow2.f32 %v1566_v34 }
 0x5b9   : > { %v1713_v35 = vpop.eup %1712 }
 0x5ba   : > { %v1303_v36 = vadd.f32 1.0, %v1713_v35 }
 0x5bc   : > { %1714 = vrcp.f32 %v1303_v36 }
 0x5c9   : > { %v1715_v37 = vpop.eup %1714 }
 0x5ca   : > { %v1306_v38 = vmul.f32 %v1715_v37, %v1299_v33 }
 0x5cc   : > { %1308 = vrot.lane.b32.xlu0 %v1306_v38, %s1737_s23 }
 0x63e   : > { %v1309_v39 = vpop.permute.xlu0 %1308 }
 0x63f   : > { %v1311_v40 = vsel %vm972_vm8, 0.0, %v1309_v39 }
 0x640   : > { %v1312_v41 = vsel %vm974_vm9, %v1311_v40, 0.0 }
 0x641   : > { %1320 = vrot.lane.b32.xlu0 %v1312_v41, %s1738_s29  ;;  %1323 = vrot.lane.b32.xlu1 %v1312_v41, %s1739_s30 }
 0x645   : > { %1314 = vrot.lane.b32.xlu0 %v1312_v41, %s1735_s25  ;;  %1317 = vrot.lane.b32.xlu1 %v1312_v41, %s1734_s24 }
 0x649   : > { %1328 = vperm.xlu1 %1705, %v965_v42  }
 0x6b3   : > { %v1321_v43 = vpop.permute.xlu0 %1320  ;;  %v1324_v44 = vpop.permute.xlu1 %1323 }
 0x6b4   : > { %1674 = vmatpush3.msra.mxu1 %v1324_v44 }
 0x6b5   : > { %1675 = vmatprep.subr.mxu1 %v1731_v9 }
 0x6b6   : > { %1676 = vmatpush3.msra.mxu1 %v1321_v43 }
 0x6b7   : > { %1677 = vmatprep.subr.mxu1 %v1731_v9  ;;  %v1318_v45 = vpop.permute.xlu1 %1317  ;;  %v1315_v46 = vpop.permute.xlu0 %1314 }
 0x6b8   : > { %1678 = vmatpush3.msra.mxu1 %v1318_v45 }
 0x6b9   : > { %1679 = vmatprep.subr.mxu1 %v1731_v9 }
 0x6ba   : > { %1680 = vmatpush3.msra.mxu1 %v1315_v46 }
 0x6bb   : > { %1681 = vmatprep.subr.mxu1 %v1731_v9  ;;  %v877_v9 = vld [vmem:[%s2040_s18] sm:$0xff] }
 0x6bc   : > { %1682 = vmatpush3.msk.msra.mxu1 %vm974_vm9, %v1311_v40 }
 0x6bd   : > { %1684 = vmatmul.mubr.msk.f32.vlgmr.msra.gmra.mxu1 %vm1008_vm10, %v964_v47 }
 0x6c4   : > { %v1329_v49 = vpop.permute.xlu1 %1328 }
 0x77d   : > { %v1400_v50 = vpop.f32.mrf.mxu1 }
 0x77e   : > { %v1401_v51 = vadd.f32 %v1400_v50, %v1329_v49 }
 0x77f   : > { %v1685_v52 = vpop.f32.mrf.mxu1 }
 0x780   : > { %v1404_v53 = vsel %vm1254_vm11, %v1401_v51, 0.0 }
 0x781   : > { %1405 = vadd.xlane.f32.xlu0 %v1404_v53 }
 0x797   : > { %1419 = vperm.xlu0 %1704, %v966_v54  }
 0x79b   : > { %880 = vperm.xlu0 %1704, %v877_v9  }
 0x80a   : > { %v1406_v55 = vpop.xlane.xlu0 %1405 }
 0x80b   : > { %v1407_v56 = vmul.f32 0.0625, %v1406_v55 }
 0x80d   : > { %v1408_v57 = vsub.f32 %v1401_v51, %v1407_v56 }
 0x80f   : > { %v1409_v58 = vmul.f32 %v1408_v57, %v1408_v57 }
 0x811   : > { %v1410_v59 = vsel %vm1254_vm11, %v1409_v58, 0.0 }
 0x812   : > { %1411 = vadd.xlane.f32.xlu1 %v1410_v59  ;;  %v1420_v2 = vpop.permute.xlu0 %1419 }
 0x816   : > { %v881_v10 = vpop.permute.xlu0 %880 }
 0x817   : > { %v953_v12 = vadd.f32 %v1944_v48, %v881_v10 }
 0x823   : > { %1425 = vperm.xlu1 %1705, %v967_v60  }
 0x89b   : > { %v1412_v61 = vpop.xlane.xlu1 %1411 }
 0x89c   : > { %v1413_v62 = vmul.f32 0.0625, %v1412_v61 }
 0x89e   : > { %v1414_v63 = vadd.f32 1e-05, %v1413_v62 }
 0x89f   : > { %v1426_v4 = vpop.permute.xlu1 %1425 }
 0x8a0   : > { %1716 = vrsqrt.f32 %v1414_v63 }
 0x8ad   : > { %v1717_v0 = vpop.eup %1716 }
 0x8ae   : > { %v1416_v1 = vmul.f32 %v1717_v0, %v1408_v57 }
 0x8b0   : > { %v1422_v3 = vmul.f32 %v1420_v2, %v1416_v1 }
 0x8b2   : > { %v1428_v5 = vadd.f32 %v1426_v4, %v1422_v3 }
 0x8b4   : > { %v1569_v6 = vmul.f32 -1.442695, %v1428_v5 }
 0x8b6   : > { %1718 = vpow2.f32 %v1569_v6 }
 0x8c3   : > { %v1719_v7 = vpop.eup %1718 }
 0x8c4   : > { %v1432_v8 = vadd.f32 1.0, %v1719_v7 }
 0x8c6   : > { %1720 = vrcp.f32 %v1432_v8 }
 0x8d3   : > { %v1721_v11 = vpop.eup %1720 }
 0x8d4   : > { %v1435_v13 = vmul.f32 %v1721_v11, %v1428_v5 }
 0x8d6   : > { %v1436_v14 = vadd.f32 %v1435_v13, %v953_v12 }
 0x8d8   : > { %1437 = vst.msk [vmem:[%s668_s22] sm:$0xff] %vm1254_vm11, %v1436_v14 }
 0x8d9 PF: > { %s29_s0 = sadd.s32 1, %s1728_s0  }
 0x8da   : > { %p26_p4 = scmp.ge.s32.totalorder %s29_s0, 4  }
 0x8dc   :  { %28 = sbr.rel (!%p26_p4) target bundleno = 5 (0x5), region = 138 }

// kernel: unet1d_forward.15
= control target key start
LH: loop header
LB: loop body
LE: loop exit
PB: predicated region body
PF: predicated region fallthrough
CT: control target
= control target key end

     0   :  { %s2044_s0 = inlined_call_operand.vmem [shape: f32[2,8,16], index: 0, kind: input, shape index: {}]   ;;  %s2045_s1 = inlined_call_operand.vmem [shape: f32[2,4,16], index: 1, kind: input, shape index: {}]   ;;  %s2046_s2 = inlined_call_operand.vmem [shape: f32[2,8,16], index: 2, kind: input, shape index: {}]   ;;  %s2047_s3 = inlined_call_operand.vmem [shape: f32[4,24], index: 3, kind: input, shape index: {}]   ;;  %s2048_s4 = inlined_call_operand.vmem [shape: f32[4,1], index: 4, kind: input, shape index: {}, may-alias: {4,8,10,14,16,18}]   ;;  %s2049_s5 = inlined_call_operand.vmem [shape: f32[4,20], index: 5, kind: input, shape index: {}]   ;;  %s2050_s6 = inlined_call_operand.vmem [shape: f32[4,20], index: 6, kind: input, shape index: {}]   ;;  %s2051_s7 = inlined_call_operand.vmem [shape: f32[4,40], index: 7, kind: input, shape index: {}]   ;;  %s2052_s8 = inlined_call_operand.vmem [shape: f32[4,1], index: 8, kind: input, shape index: {}, may-alias: {4,8,10,14,16,18}]   ;;  %s2053_s9 = inlined_call_operand.vmem [shape: f32[4,1], index: 9, kind: input, shape index: {}, may-alias: {9,15}]   ;;  %s2054_s10 = inlined_call_operand.vmem [shape: f32[4,1], index: 10, kind: input, shape index: {}, may-alias: {4,8,10,14,16,18}]   ;;  %s2055_s11 = inlined_call_operand.vmem [shape: f32[2,4,1], index: 11, kind: input, shape index: {}]   ;;  %s2056_s12 = inlined_call_operand.vmem [shape: f32[2,4,1], index: 12, kind: input, shape index: {}]   ;;  %s2057_s13 = inlined_call_operand.vmem [shape: f32[4,20], index: 13, kind: input, shape index: {}]   ;;  %s2058_s14 = inlined_call_operand.vmem [shape: f32[4,1], index: 14, kind: input, shape index: {}, may-alias: {4,8,10,14,16,18}]   ;;  %s2059_s15 = inlined_call_operand.vmem [shape: f32[4,1], index: 15, kind: input, shape index: {}, may-alias: {9,15}]   ;;  %s2060_s16 = inlined_call_operand.vmem [shape: f32[4,1], index: 16, kind: input, shape index: {}, may-alias: {4,8,10,14,16,18}]   ;;  %s2061_s17 = inlined_call_operand.vmem [shape: f32[4,4], index: 17, kind: input, shape index: {}]   ;;  %s2062_s18 = inlined_call_operand.vmem [shape: f32[4,1], index: 18, kind: input, shape index: {}, may-alias: {4,8,10,14,16,18}]   ;;  %s2063_s19 = inlined_call_operand.hbm [shape: f32[2,4,16], index: 19, kind: output, shape index: {}]  }
   0x1   :  { %2073 = sst [smem:[#allocation12_spill]] %s2044_s0 }
   0x2   :  { %2074 = sst [smem:[#allocation13_spill]] %s2045_s1 }
   0x3   :  { %2075 = sst [smem:[#allocation14_spill]] %s2046_s2 }
   0x4   :  { %2076 = sst [smem:[#allocation15_spill]] %s2047_s3 }
   0x5   :  { %2077 = sst [smem:[#allocation16_spill]] %s2063_s19 }
   0x6   :  { %24 = vsyncpa [#allocation3], 0 }
   0x7   :  { %26 = vsyncpa [#allocation3 + $0x1], 0  ;;  %s1810_s0 = smov 0   ;;  %s1812_s30 = smov 0  }
   0x8   :  { %s1814_s20 = smov 0   ;;  %s1816_s21 = smov 0  }
   0x9 LB: > { %2078 = sst [smem:[#allocation5_spill]] %s1686_s0  ;;  %s1831_s1 = sadd.s32 4294967295, %s1698_s21   ;;  %s1698_s21 = sphi %s1816_s21, %s2096_s21   ;;  %s1694_s20 = sphi %s1814_s20, %s2098_s20   ;;  %s1690_s30 = sphi %s1812_s30, %s2100_s30   ;;  %s1686_s0 = sphi %s1810_s0, %s2099_s0  }
   0xa   : > { %2079 = sst [smem:[#allocation6_spill]] %s1694_s20  ;;  %s1465_s22 = sadd.s32 4294967294, %s1698_s21  }
   0xb   : > { %2080 = sst [smem:[#allocation7_spill]] %s1698_s21  ;;  %s1835_s2 = sadd.s32 1, %s1698_s21  }
   0xc   : > { %2081 = sst [smem:[#allocation8_spill]] %s1835_s2  ;;  %s463_s23 = sadd.s32 1, %s1694_s20 }
   0xd   : > { %s460_s24 = ssub.s32 %s1698_s21, %s1835_s2  ;;  %p473_p0 = scmp.ne.s32.totalorder %s1694_s20, %s1690_s30 }
   0xe   : > { %p461_p1 = scmp.eq.s32.totalorder %s460_s24, 0  ;;  %p474_p2 = scmp.eq.s32.totalorder %s1831_s1, 1 }
   0xf   : > { %p479_p3 = scmp.ne.s32.totalorder %s1690_s30, %s1686_s0  ;;  %p480_p4 = scmp.eq.s32.totalorder %s1465_s22, 1 }
  0x10   : > { %s1846_s25 = scalar_select %p461_p1, %s1694_s20, %s463_s23  }
  0x11   : > { %p1848_p5 = por %p474_p2, %p473_p0  ;;  %p1852_p6 = por %p480_p4, %p479_p3 }
  0x12   : > { %2082 = sst [smem:[#allocation9_spill]] %s1846_s25  ;;  %p1468_p7 = scmp.ge.s32.totalorder %s1698_s21, 1 }
  0x13   : > { %s2083_s3 = scalar_select %p1848_p5, 1, 0 }
  0x14   : > { %s2085_s26 = scalar_select %p1852_p6, 1, 0 }
  0x15   : > { %2084 = sst [smem:[#allocation10_spill]] %s2083_s3  ;;  %p575_p8 = scmp.lt.s32.totalorder %s1698_s21, 3 }
  0x16   : > { %2086 = sst [smem:[#allocation11_spill]] %s2085_s26 }
  0x17   : > { %p576_p9 = pnand %p1468_p7, %p575_p8 }
  0x18   : > { %p646_p10 = scmp.lt.s32.totalorder (!%p576_p9), %s1831_s1, 1  ;;  %s2087_s23 = sld [smem:[#allocation12_spill]] (!%p576_p9) }
  0x19   : > { %579 = sbr.rel (%p576_p9) target bundleno = 2083 (0x823), region = 96  ;;  %s1701_s25 = smov (!%p576_p9), 1  }
  0x1a   : > { %s1705_s2 = smov (!%p576_p9), 126   ;;  %s2089_s19 = sld [smem:[#allocation14_spill]] (!%p576_p9) }
  0x1b   : > { %s1706_s29 = smov (!%p576_p9), 2   ;;  %s2090_s22 = sld [smem:[#allocation15_spill]] (!%p576_p9) }
  0x1c   : > { %s1708_s21 = smov (!%p576_p9), 125  }
  0x1e   : > { %v1700_v0 = vmov 0.0   ;;  %s647_s27 = scalar_select %p646_p10, %s1831_s1, 1  ;;  %vm1702_vm0 = vmmov 0   ;;  %v1703_v2 = vmov 0   ;;  %vm673_vm1 = vcmask 7168  }
  0x1f   : > { %1518 = vmatprep.subr.mxu0 %v1700_v0  ;;  %1527 = vmatprep.subr.mxu1 %v1700_v0  ;;  %vm675_vm2 = vcmask 138240   ;;  %v668_v6 = vld [vmem:[%s2048_s4] sm:$0xf]  ;;  %vm689_vm3 = vcmask 195584   ;;  %vm865_vm4 = vcmask 15360   ;;  %vm867_vm5 = vcmask 146432  }
  0x20   : > { %s1470_s28 = sshll.u32 %s647_s27, 3  ;;  %1524 = vmatprep.mubr.msk.f32.mxu0 %vm1702_vm0, %v1700_v0  ;;  %1529 = vmatprep.mubr.msk.f32.mxu1 %vm1702_vm0, %v1700_v0  ;;  %s1869_s20 = sshll.u32 %s647_s27, 2  ;;  %vm776_vm6 = vcmask 1043456   ;;  %v765_v22 = vld [vmem:[%s2061_s17] sm:$0xf]  ;;  %vm772_vm7 = vcmask 31744  }
  0x21   : > { %s649_s24 = scalar_lea.vmem %s2087_s23, %s1470_s28  ;;  %1620 = vset.pattern.permute.xlu1 %v1703_v2  ;;  %1621 = vset.pattern.permute.xlu0 %v1703_v2  ;;  %s657_s3 = scalar_lea.vmem %s2089_s19, %s1470_s28  ;;  %v667_v11 = vld [vmem:[%s2090_s22] sm:$0xf]  ;;  %vm905_vm8 = vcmask 162816   ;;  %vm1075_vm9 = vcmask 326656   ;;  %vm1156_vm10 = vcmask 125952  }
  0x22   : > { %v666_v1 = vld [vmem:[%s649_s24] sm:$0xff]  ;;  %s1704_s24 = smov 127   ;;  %s1707_s19 = smov 124  }
  0x23   : > { %670 = vrot.lane.b32.xlu0 %v666_v1, %s1701_s25  ;;  %s2088_s25 = sld [smem:[#allocation13_spill]]  ;;  %v764_v8 = vld [vmem:[%s657_s3] sm:$0xff]  ;;  %s661_s3 = scalar_lea.vmem %s2055_s11, %s1869_s20 }
  0x24   : > { %v851_v35 = vld [vmem:[%s2050_s6] sm:$0xf] }
  0x25   : > { %v853_v36 = vld [vmem:[%s2052_s8] sm:$0xf] }
  0x26   : > { %v850_v46 = vld [vmem:[%s2049_s5] sm:$0xf] }
  0x27   : > { %v852_v49 = vld [vmem:[%s2051_s7] sm:$0xf] }
  0x28   : > { %v854_v61 = vld [vmem:[%s2053_s9] sm:$0xf] }
  0x29   : > { %s653_s23 = scalar_lea.vmem %s2088_s25, %s1869_s20 }
  0x2a   : > { %v763_v7 = vld [vmem:[%s653_s23] sm:$0xf]  ;;  %s665_s23 = scalar_lea.vmem %s2056_s12, %s1869_s20 }
  0x95   : > { %v671_v3 = vpop.permute.xlu0 %670 }
  0x96   : > { %v674_v4 = vsel %vm673_vm1, 0.0, %v671_v3 }
  0x97   : > { %v676_v5 = vsel %vm675_vm2, %v674_v4, 0.0 }
  0x98   : > { %678 = vrot.lane.b32.xlu1 %v676_v5, %s1704_s24  ;;  %681 = vrot.lane.b32.xlu0 %v676_v5, %s1705_s2  ;;  %v856_v5 = vld [vmem:[%s661_s3] sm:$0xf]  ;;  %s643_s3 = sand.u32 1, %s1690_s30  }
  0x99   : > { %s1469_s25 = sshll.u32 %s643_s3, 2 }
  0x9a   : > { %s645_s20 = scalar_lea.vmem [#allocation2], %s1469_s25 }
  0x9b   : > { %s1358_s27 = sshll.u32 %s645_s20, 4  ;;  %s1359_s27 = int_to_ptr.vmem [resolvable:$true] %s1358_s27 }
  0x9c   : > { %686 = vperm.xlu1 %1620, %v668_v6   ;;  %885 = vrot.lane.b32.xlu0 %v763_v7, %s1706_s29  ;;  %v857_v6 = vld [vmem:[%s665_s23] sm:$0xf]  ;;  %s1491_s23 = sshll.u32 %s1831_s1, 6  ;;  %s1638_s0 = scalar_lea.vmem %s1359_s27, 64 }
  0x9d   : > { %p1639_p11 = scmp.ne.s32.totalorder %s1359_s27, %s1638_s0  ;;  %s1709_s1 = smov [#allocation2]  }
  0x9e   : > { %s1642_s26 = sshll.u32 %s1709_s1, 4  ;;  %s1643_s26 = int_to_ptr.vmem [resolvable:$false] %s1642_s26 }
  0x9f   : > { %p1640_p12 = pnand %p1639_p11, %p1848_p5  ;;  %s1644_s22 = scalar_lea.vmem %s1643_s26, 128 }
  0xa0   : > { %1057 = vrot.lane.b32.xlu1 %v764_v8, %s1706_s29  ;;  %p1645_p0 = scmp.lt.s32.totalorder %s1359_s27, %s1643_s26  ;;  %p1646_p1 = scmp.lt.s32.totalorder %s1644_s22, %s1638_s0 }
  0xa1   : > { %p1641_p13 = pneg %p1640_p12 }
  0xa2   : > { %p1647_p2 = por %p1646_p1, %p1645_p0 }
  0xa4   : > { %p1648_p3 = pnand %p1647_p2, %p1641_p13 }
 0x10a   : > { %v682_v9 = vpop.permute.xlu0 %681  ;;  %v679_v10 = vpop.permute.xlu1 %678 }
 0x10b   : > { %1519 = vmatpush3.msra.mxu0 %v682_v9 }
 0x10c   : > { %1520 = vmatprep.subr.mxu0 %v1700_v0 }
 0x10d   : > { %1521 = vmatpush3.msra.mxu0 %v679_v10 }
 0x10e   : > { %1522 = vmatprep.subr.mxu0 %v1700_v0  ;;  %v886_v12 = vpop.permute.xlu0 %885 }
 0x10f   : > { %1523 = vmatpush3.msk.msra.mxu0 %vm675_vm2, %v674_v4  ;;  %v888_v13 = vsel %vm865_vm4, 0.0, %v886_v12  ;;  %v855_v4 = vld [vmem:[%s2054_s10] sm:$0xf] }
 0x110   : > { %1525 = vmatmul.mubr.msk.f32.vlgmr.msra.gmra.mxu0 %vm689_vm3, %v667_v11  ;;  %1541 = vmatprep.subr.mxu0 %v1700_v0  ;;  %v889_v14 = vsel %vm867_vm5, %v888_v13, 0.0 }
 0x111   : > { %1547 = vmatprep.mubr.msk.f32.mxu0 %vm1702_vm0, %v1700_v0  ;;  %901 = vrot.lane.b32.xlu1 %v889_v14, %s1707_s19  ;;  %v891_v16 = vrot.slane %v889_v14, 4 }
 0x115   : > { %898 = vrot.lane.b32.xlu1 %v891_v16, %s1708_s21 }
 0x117   : > { %v687_v15 = vpop.permute.xlu1 %686 }
 0x11b   : > { %v1058_v17 = vpop.permute.xlu1 %1057 }
 0x11c   : > { %v1900_v18 = vsel %vm865_vm4, 0.0, %v1058_v17 }
 0x11d   : > { %v1061_v19 = vsel %vm867_vm5, %v1900_v18, 0.0 }
 0x11e   : > { %1072 = vrot.lane.b32.xlu1 %v1061_v19, %s1707_s19 }
 0x122   : > { %1069 = vrot.lane.b32.xlu1 %v1061_v19, %s1708_s21 }
 0x183   : > { %v902_v24 = vpop.permute.xlu1 %901 }
 0x187   : > { %v899_v28 = vpop.permute.xlu1 %898 }
 0x190   : > { %v1073_v32 = vpop.permute.xlu1 %1072 }
 0x194   : > { %v1070_v37 = vpop.permute.xlu1 %1069 }
 0x1d0   : > { %v759_v20 = vpop.f32.mrf.mxu0 }
 0x1d1   : > { %v760_v21 = vadd.f32 %v759_v20, %v687_v15 }
 0x1d2   : > { %v1526_v23 = vpop.f32.mrf.mxu0 }
 0x1d3   : > { %862 = vrot.lane.b32.xlu0 %v760_v21, %s1706_s29  ;;  %1528 = vmatpush3.msk.msra.mxu1 %vm776_vm6, %v760_v21 }
 0x1d4   : > { %1532 = vmatprep.subr.mxu1 %v1700_v0  ;;  %1530 = vmatmul.mubr.msk.f32.vlgmr.msra.gmra.mxu1 %vm772_vm7, %v765_v22 }
 0x1d5   : > { %1533 = vmatpush3.msk.msra.mxu1 %vm776_vm6, %v902_v24  ;;  %1538 = vmatprep.mubr.msk.f32.mxu1 %vm1702_vm0, %v1700_v0 }
 0x1d6   : > { %1534 = vmatprep.subr.mxu1 %v1700_v0 }
 0x1d7   : > { %895 = vrot.lane.b32.xlu0 %v889_v14, %s1705_s2 }
 0x1db   : > { %892 = vrot.lane.b32.xlu0 %v891_v16, %s1704_s24 }
 0x1df   : > { %1066 = vrot.lane.b32.xlu0 %v1061_v19, %s1705_s2 }
 0x245   : > { %v863_v25 = vpop.permute.xlu0 %862 }
 0x246   : > { %v866_v26 = vsel %vm865_vm4, 0.0, %v863_v25 }
 0x247   : > { %v868_v27 = vsel %vm867_vm5, %v866_v26, 0.0 }
 0x248   : > { %880 = vrot.lane.b32.xlu0 %v868_v27, %s1707_s19  ;;  %v870_v29 = vrot.slane %v868_v27, 4 }
 0x249   : > { %v896_v30 = vpop.permute.xlu0 %895 }
 0x24a   : > { %877 = vrot.lane.b32.xlu1 %v870_v29, %s1708_s21  ;;  %v904_v31 = vsel %vm776_vm6, %v896_v30, %v899_v28 }
 0x24b   : > { %1535 = vmatpush3.msra.mxu1 %v904_v31 }
 0x24c   : > { %874 = vrot.lane.b32.xlu0 %v868_v27, %s1705_s2  ;;  %1536 = vmatprep.subr.mxu1 %v1700_v0 }
 0x24d   : > { %v893_v33 = vpop.permute.xlu0 %892 }
 0x24e   : > { %v903_v34 = vsel %vm776_vm6, %v889_v14, %v893_v33  ;;  %871 = vrot.lane.b32.xlu1 %v870_v29, %s1704_s24 }
 0x24f   : > { %1537 = vmatpush3.msra.mxu1 %v903_v34  ;;  %v859_v34 = vld [vmem:[%s2058_s14] sm:$0xf] }
 0x250   : > { %1063 = vrot.lane.b32.xlu0 %v1061_v19, %s1704_s24  ;;  %1550 = vmatprep.subr.mxu1 %v1700_v0 }
 0x251   : > { %1539 = vmatmul.mubr.msk.f32.vlgmr.msra.gmra.mxu1 %vm905_vm8, %v851_v35  ;;  %v1067_v38 = vpop.permute.xlu0 %1066 }
 0x252   : > { %1152 = vperm.xlu1 %1620, %v853_v36   ;;  %1551 = vmatpush3.msra.mxu1 %v1073_v32 }
 0x253   : > { %1552 = vmatprep.subr.mxu1 %v1700_v0  ;;  %1560 = vmatprep.mubr.msk.f32.mxu1 %vm1702_vm0, %v1700_v0 }
 0x254   : > { %1553 = vmatpush3.msra.mxu1 %v1070_v37 }
 0x255   : > { %1554 = vmatprep.subr.mxu1 %v1700_v0 }
 0x256   : > { %1555 = vmatpush3.msra.mxu1 %v1067_v38 }
 0x257   : > { %1556 = vmatprep.subr.mxu1 %v1700_v0 }
 0x294   : > { %v1942_v39 = vpop.f32.mrf.mxu1 }
 0x296   : > { %v1531_v40 = vpop.f32.mrf.mxu1 }
 0x2ba   : > { %v881_v41 = vpop.permute.xlu0 %880 }
 0x2bb   : > { %1542 = vmatpush3.msk.msra.mxu0 %vm776_vm6, %v881_v41  ;;  %v858_v41 = vld [vmem:[%s2057_s13] sm:$0xf] }
 0x2bc   : > { %v878_v42 = vpop.permute.xlu1 %877  ;;  %1543 = vmatprep.subr.mxu0 %v1700_v0 }
 0x2be   : > { %v875_v43 = vpop.permute.xlu0 %874 }
 0x2bf   : > { %v883_v44 = vsel %vm776_vm6, %v875_v43, %v878_v42 }
 0x2c0   : > { %v872_v45 = vpop.permute.xlu1 %871  ;;  %1544 = vmatpush3.msra.mxu0 %v883_v44 }
 0x2c1   : > { %v882_v47 = vsel %vm776_vm6, %v868_v27, %v872_v45  ;;  %1545 = vmatprep.subr.mxu0 %v1700_v0 }
 0x2c2   : > { %1546 = vmatpush3.msra.mxu0 %v882_v47  ;;  %v1064_v48 = vpop.permute.xlu0 %1063 }
 0x2c3   : > { %1548 = vmatmul.mubr.msk.f32.vlgmr.msra.gmra.mxu0 %vm905_vm8, %v850_v46  ;;  %1557 = vmatpush3.msra.mxu1 %v1064_v48  ;;  %v860_v48 = vld [vmem:[%s2059_s15] sm:$0xf] }
 0x2c4   : > { %1558 = vmatprep.subr.mxu1 %v1700_v0  ;;  %1563 = vmatprep.subr.mxu0 %v1700_v0 }
 0x2c5   : > { %1559 = vmatpush3.msk.msra.mxu1 %vm867_vm5, %v1900_v18  ;;  %1569 = vmatprep.mubr.msk.f32.mxu0 %vm1702_vm0, %v1700_v0 }
 0x2c6   : > { %1561 = vmatmul.mubr.msk.f32.vlgmr.msra.gmra.mxu1 %vm1075_vm9, %v852_v49  ;;  %v766_v49 = vld [vmem:[%s2062_s18] sm:$0xf] }
 0x2cd   : > { %v1153_v57 = vpop.permute.xlu1 %1152 }
 0x311   : > { %v977_v50 = vpop.f32.mrf.mxu1 }
 0x313   : > { %v1540_v51 = vpop.f32.mrf.mxu1 }
 0x383   : > { %v1052_v52 = vpop.f32.mrf.mxu0 }
 0x384   : > { %v1053_v53 = vadd.f32 %v1052_v52, %v977_v50 }
 0x385   : > { %v1549_v54 = vpop.f32.mrf.mxu0 }
 0x386   : > { %v1145_v55 = vpop.f32.mrf.mxu1  ;;  %v861_v54 = vld [vmem:[%s2060_s16] sm:$0xf] }
 0x387   : > { %v1149_v56 = vadd.f32 %v1145_v55, %v1053_v53 }
 0x388   : > { %v1562_v58 = vpop.f32.mrf.mxu1 }
 0x389   : > { %v1155_v59 = vadd.f32 %v1153_v57, %v1149_v56 }
 0x38b   : > { %v1157_v60 = vsel %vm1156_vm10, %v1155_v59, 0.0 }
 0x38c   : > { %1158 = vadd.xlane.f32.xlu0 %v1157_v60 }
 0x3a2   : > { %1173 = vperm.xlu0 %1621, %v854_v61  }
 0x415   : > { %v1159_v62 = vpop.xlane.xlu0 %1158 }
 0x416   : > { %v1161_v63 = vmul.f32 0.0625, %v1159_v62 }
 0x418   : > { %v1162_v1 = vsub.f32 %v1155_v59, %v1161_v63 }
 0x41a   : > { %v1163_v2 = vmul.f32 %v1162_v1, %v1162_v1 }
 0x41c   : > { %v1164_v3 = vsel %vm1156_vm10, %v1163_v2, 0.0 }
 0x41d   : > { %1165 = vadd.xlane.f32.xlu1 %v1164_v3  ;;  %v1174_v11 = vpop.permute.xlu0 %1173 }
 0x42e   : > { %1179 = vperm.xlu1 %1620, %v855_v4  }
 0x432   : > { %1192 = vperm.xlu1 %1620, %v856_v5  }
 0x436   : > { %1198 = vperm.xlu1 %1620, %v857_v6  }
 0x4a6   : > { %v1166_v7 = vpop.xlane.xlu1 %1165 }
 0x4a7   : > { %v1167_v8 = vmul.f32 0.0625, %v1166_v7 }
 0x4a9   : > { %v1168_v9 = vadd.f32 1e-05, %v1167_v8 }
 0x4aa   : > { %v1180_v14 = vpop.permute.xlu1 %1179 }
 0x4ab   : > { %1622 = vrsqrt.f32 %v1168_v9 }
 0x4ae   : > { %v1193_v19 = vpop.permute.xlu1 %1192 }
 0x4b2   : > { %v1199_v23 = vpop.permute.xlu1 %1198 }
 0x4b8   : > { %v1623_v10 = vpop.eup %1622 }
 0x4b9   : > { %v1170_v12 = vmul.f32 %v1623_v10, %v1162_v1 }
 0x4bb   : > { %v1176_v13 = vmul.f32 %v1174_v11, %v1170_v12 }
 0x4bd   : > { %v1182_v15 = vadd.f32 %v1180_v14, %v1176_v13 }
 0x4bf   : > { %v1485_v16 = vmul.f32 -1.442695, %v1182_v15 }
 0x4c1   : > { %1624 = vpow2.f32 %v1485_v16 }
 0x4ce   : > { %v1625_v17 = vpop.eup %1624 }
 0x4cf   : > { %v1186_v18 = vadd.f32 1.0, %v1625_v17 }
 0x4d1   : > { %1626 = vrcp.f32 %v1186_v18 }
 0x4de   : > { %v1627_v20 = vpop.eup %1626 }
 0x4df   : > { %v1189_v21 = vmul.f32 %v1627_v20, %v1182_v15 }
 0x4e1   : > { %v1195_v22 = vmul.f32 %v1193_v19, %v1189_v21 }
 0x4e3   : > { %v1201_v24 = vadd.f32 %v1199_v23, %v1195_v22 }
 0x4e5   : > { %v1486_v25 = vmul.f32 -1.442695, %v1201_v24 }
 0x4e7   : > { %1628 = vpow2.f32 %v1486_v25 }
 0x4f4   : > { %v1629_v26 = vpop.eup %1628 }
 0x4f5   : > { %v1205_v27 = vadd.f32 1.0, %v1629_v26 }
 0x4f7   : > { %1630 = vrcp.f32 %v1205_v27 }
 0x504   : > { %v1631_v28 = vpop.eup %1630 }
 0x505   : > { %v1208_v29 = vmul.f32 %v1631_v28, %v1201_v24 }
 0x507   : > { %1210 = vrot.lane.b32.xlu1 %v1208_v29, %s1706_s29  ;;  %s2092_s29 = sld [smem:[#allocation16_spill]] }
 0x579   : > { %v1211_v30 = vpop.permute.xlu1 %1210 }
 0x57a   : > { %v1213_v31 = vsel %vm865_vm4, 0.0, %v1211_v30 }
 0x57b   : > { %v1214_v32 = vsel %vm867_vm5, %v1213_v31, 0.0 }
 0x57c   : > { %1226 = vrot.lane.b32.xlu1 %v1214_v32, %s1707_s19  ;;  %v1216_v33 = vrot.slane %v1214_v32, 4  ;;  %s1356_s19 = scalar_lea.hbm %s2092_s29, %s1491_s23 }
 0x57e   : > { %1217 = vrot.lane.b32.xlu0 %v1216_v33, %s1704_s24 }
 0x580   : > { %1220 = vrot.lane.b32.xlu1 %v1214_v32, %s1705_s2 }
 0x584   : > { %1223 = vrot.lane.b32.xlu1 %v1216_v33, %s1708_s21  ;;  %s1345_s21 = scalar_lea.sflag [#allocation3], %s643_s3 }
 0x588   : > { %1232 = vperm.xlu1 %1620, %v859_v34  }
 0x5ee   : > { %v1227_v35 = vpop.permute.xlu1 %1226 }
 0x5ef   : > { %1564 = vmatpush3.msk.msra.mxu0 %vm776_vm6, %v1227_v35 }
 0x5f0   : > { %1565 = vmatprep.subr.mxu0 %v1700_v0  ;;  %v1218_v37 = vpop.permute.xlu0 %1217 }
 0x5f1   : > { %v1228_v42 = vsel %vm776_vm6, %v1214_v32, %v1218_v37 }
 0x5f2   : > { %v1221_v36 = vpop.permute.xlu1 %1220 }
 0x5f6   : > { %v1224_v38 = vpop.permute.xlu1 %1223 }
 0x5f7   : > { %v1229_v40 = vsel %vm776_vm6, %v1221_v36, %v1224_v38 }
 0x5f8   : > { %1566 = vmatpush3.msra.mxu0 %v1229_v40 }
 0x5f9   : > { %1567 = vmatprep.subr.mxu0 %v1700_v0 }
 0x5fa   : > { %1568 = vmatpush3.msra.mxu0 %v1228_v42 }
 0x5fb   : > { %1570 = vmatmul.mubr.msk.f32.vlgmr.msra.gmra.mxu0 %vm905_vm8, %v858_v41 }
 0x603   : > { %v1233_v43 = vpop.permute.xlu1 %1232 }
 0x6bb   : > { %v1306_v44 = vpop.f32.mrf.mxu0 }
 0x6bc   : > { %v1307_v45 = vadd.f32 %v1306_v44, %v1233_v43 }
 0x6bd   : > { %v1571_v46 = vpop.f32.mrf.mxu0 }
 0x6be   : > { %v1310_v47 = vsel %vm1156_vm10, %v1307_v45, 0.0 }
 0x6bf   : > { %1311 = vadd.xlane.f32.xlu0 %v1310_v47 }
 0x6d5   : > { %1325 = vperm.xlu0 %1621, %v860_v48  }
 0x6d9   : > { %769 = vperm.xlu0 %1621, %v766_v49  }
 0x748   : > { %v1312_v0 = vpop.xlane.xlu0 %1311 }
 0x749   : > { %v1313_v50 = vmul.f32 0.0625, %v1312_v0 }
 0x74b   : > { %v1314_v51 = vsub.f32 %v1307_v45, %v1313_v50 }
 0x74d   : > { %v1315_v52 = vmul.f32 %v1314_v51, %v1314_v51 }
 0x74f   : > { %v1316_v53 = vsel %vm1156_vm10, %v1315_v52, 0.0 }
 0x750   : > { %1317 = vadd.xlane.f32.xlu1 %v1316_v53  ;;  %v1326_v60 = vpop.permute.xlu0 %1325 }
 0x754   : > { %v770_v4 = vpop.permute.xlu0 %769 }
 0x755   : > { %v847_v6 = vadd.f32 %v1942_v39, %v770_v4 }
 0x761   : > { %1331 = vperm.xlu1 %1620, %v861_v54  }
 0x7d9   : > { %v1318_v55 = vpop.xlane.xlu1 %1317 }
 0x7da   : > { %v1319_v56 = vmul.f32 0.0625, %v1318_v55 }
 0x7dc   : > { %v1320_v57 = vadd.f32 1e-05, %v1319_v56 }
 0x7dd   : > { %v1332_v62 = vpop.permute.xlu1 %1331 }
 0x7de   : > { %1632 = vrsqrt.f32 %v1320_v57 }
 0x7eb   : > { %v1633_v58 = vpop.eup %1632 }
 0x7ec   : > { %v1322_v59 = vmul.f32 %v1633_v58, %v1314_v51 }
 0x7ee   : > { %v1328_v61 = vmul.f32 %v1326_v60, %v1322_v59 }
 0x7f0   : > { %v1334_v63 = vadd.f32 %v1332_v62, %v1328_v61 }
 0x7f2   : > { %v1489_v1 = vmul.f32 -1.442695, %v1334_v63 }
 0x7f4   : > { %1634 = vpow2.f32 %v1489_v1 }
 0x801   : > { %v1635_v2 = vpop.eup %1634 }
 0x802   : > { %v1338_v3 = vadd.f32 1.0, %v1635_v2 }
 0x804   : > { %1636 = vrcp.f32 %v1338_v3 }
 0x811   : > { %v1637_v5 = vpop.eup %1636 }
 0x812   : > { %v1341_v7 = vmul.f32 %v1637_v5, %v1334_v63 }
 0x814   : > { %v1342_v8 = vadd.f32 %v1341_v7, %v847_v6 }
 0x816   : > { %1343 = vst.msk [vmem:[%s645_s20] sm:$0xf] %vm1156_vm10, %v1342_v8 }
 0x817   : > { %1651 = shalt.err (!%p1648_p3)
}
 0x818   : > { %s1652_s25 = scalar_lea.hbm %s1356_s19, 64  ;;  %s1656_s20 = scalar_lea.hbm %s2092_s29, 128 }
 0x819   : > { %p1653_p4 = scmp.ne.s32.totalorder %s1356_s19, %s1652_s25  ;;  %p1657_p9 = scmp.lt.s32.totalorder %s1356_s19, %s2092_s29 }
 0x81a   : > { %p1658_p10 = scmp.lt.s32.totalorder %s1656_s20, %s1652_s25 }
 0x81b   : > { %p1654_p7 = pnand %p1653_p4, %p1848_p5 }
 0x81c   : > { %p1659_p11 = por %p1658_p10, %p1657_p9 }
 0x81d   : > { %p1655_p8 = pneg %p1654_p7 }
 0x81f   : > { %p1660_p12 = pnand %p1659_p11, %p1655_p8 }
 0x821   : > { %1663 = shalt.err (!%p1660_p12)
}
 0x822   : > { %1572 = dma.vmem_to_hbm [thread:$0]  (%p1848_p5), %s1359_s27, 64, %s1356_s19, %s1345_s21  }
 0x823 PF: > { %s2093_s0 = sld [smem:[#allocation7_spill]] }
 0x824   : > { %s2094_s1 = sld [smem:[#allocation5_spill]] }
 0x829   : > { %p1578_p13 = scmp.ge.s32.totalorder %s2093_s0, 2 }
 0x82a   : > { %s1370_s22 = sand.u32 1, %s2094_s1  }
 0x82b   : > { %p1575_p0 = pnand %p1578_p13, %p1852_p6  ;;  %s1371_s3 = scalar_lea.sflag [#allocation3], %s1370_s22 }
 0x82d   : > { %p1576_p1 = pneg %p1575_p0 }
 0x82f   : > { %1681 = dma.done.wait (%p1576_p1), %s1371_s3, 64  }
 0x830   : > { %1683 = vsyncadd (%p1576_p1), %s1371_s3, 4294967232  ;;  %s2096_s21 = sld [smem:[#allocation8_spill]]  ;;  %s2099_s0 = smov %s1690_s30 }
 0x831   : > { %s2097_s25 = sld [smem:[#allocation6_spill]] }
 0x832   : > { %s2098_s20 = sld [smem:[#allocation9_spill]] }
 0x836   : > { %p29_p2 = scmp.ge.s32.totalorder %s2096_s21, 4  }
 0x837   : > { %s2100_s30 = smov %s2097_s25 }
 0x838   :  { %31 = sbr.rel (!%p29_p2) target bundleno = 9 (0x9), region = 143 }
 0x83d   :  { %1376 = vsyncpa [#allocation3], 1 }
 0x83e   :  { %1378 = vsyncpa [#allocation3 + $0x1], 1 }

</bundles_post_ra>
